<compile_context>
chip_gen: v7x
topology: tpu7x:2x2x1
jax: 0.10.0
libtpu: 0.0.40
codegen_flags: <defaults>
</compile_context>

<pallas_src>
import numpy as np
import jax
import jax.numpy as jnp
from jax.experimental import pallas as pl
from jax.experimental.pallas import tpu as pltpu


# ----------------------- mask / rel-pos helpers (host, numpy) ----------------

def _create_mask(window_size, displacement, zero_dimension=False, one_dimension=False):
    mask = np.zeros((window_size ** 2, window_size ** 2), dtype=np.float32)
    if zero_dimension:
        mask[-displacement * window_size:, :-displacement * window_size] = -np.inf
        mask[:-displacement * window_size, -displacement * window_size:] = -np.inf
    if one_dimension:
        template = np.zeros((window_size, window_size), dtype=np.float32)
        template[-displacement:, :-displacement] = -np.inf
        template[:-displacement, -displacement:] = -np.inf
        for i in range(0, window_size ** 2, window_size):
            for j in range(0, window_size ** 2, window_size):
                mask[i:i + window_size, j:j + window_size] = template
    return mask


def _get_relative_distances(window_size):
    indices = np.array([[x, y] for x in range(window_size) for y in range(window_size)])
    return indices[None, :, :] - indices[:, None, :]


# --------------------- kernel 1/3: fused depthwise-separable conv ------------

def dsconv_fused(x, w_comb, bias, *, roll_shift=0, out_dtype=jnp.float32, row_groups=4):
    """Fused depthwise-3x3 (stride 1, pad 1, no bias) + pointwise-1x1 (+ bias).

    The depthwise filter is pre-folded into the pointwise weight on the host
    (w_comb[k*C + c, co] = dw[c, kh, kw] * pw[co, c], k = kh*3 + kw), so the
    kernel only has to build the 9-tap im2col and run a single
    (rows, 9C) @ (9C, Cout) MXU matmul per grid step.  The optional Swin cyclic
    roll (applied BEFORE the zero-padded conv, as in the reference) is folded
    into the in-kernel halo build.

    x      : (B, S, S, C)   f32 or bf16, NHWC
    w_comb : (9C, Cout)     bf16
    bias   : (1, Cout)      f32
    returns: (B, S*S, Cout) out_dtype, raster row order
    """
    B, S, S2, C = x.shape
    assert S == S2
    Cout = w_comb.shape[1]
    G = max(1, row_groups)
    while S % G:
        G -= 1
    RG = S // G
    t = roll_shift % S                     # python modulo: -d -> S-d, 0 -> 0

    def kernel(x_ref, w_ref, b_ref, o_ref, pad_ref, im_ref):
        g = pl.program_id(1)

        # Build the zero-bordered (and cyclically rolled) halo image once per
        # batch element.  The scratch persists across the (arbitrary) row-group
        # axis, so g > 0 steps reuse it.  All writes are static ref slices.
        @pl.when(g == 0)
        def _build_halo():
            pad_ref[...] = jnp.zeros_like(pad_ref)
            if t == 0:
                pad_ref[1:1 + S, 1:1 + S, :] = x_ref[...].astype(jnp.float32)
            else:
                u = S - t
                pad_ref[1 + t:1 + S, 1 + t:1 + S, :] = x_ref[:u, :u, :].astype(jnp.float32)
                pad_ref[1:1 + t, 1 + t:1 + S, :] = x_ref[u:, :u, :].astype(jnp.float32)
                pad_ref[1 + t:1 + S, 1:1 + t, :] = x_ref[:u, u:, :].astype(jnp.float32)
                pad_ref[1:1 + t, 1:1 + t, :] = x_ref[u:, u:, :].astype(jnp.float32)

        # 9-tap im2col for this row-group: lane-slice stores into the bf16
        # staging scratch (one cast per tap, no per-step weight cast).
        r0 = pl.multiple_of(g * RG, RG)
        for k in range(9):                                   # static unroll
            dr, dc = divmod(k, 3)
            tap = pad_ref[pl.ds(r0 + dr, RG), dc:dc + S, :]  # (RG, S, C) f32
            im_ref[:, :, k * C:(k + 1) * C] = tap.astype(jnp.bfloat16)

        # Single MXU matmul with K = 9C (>= 128 for realistic C), f32 accumulate.
        im = im_ref[...].reshape(RG * S, 9 * C)              # tile-aligned collapse
        y = jnp.dot(im, w_ref[...], preferred_element_type=jnp.float32) + b_ref[...]
        o_ref[...] = y.astype(o_ref.dtype)

    return pl.pallas_call(
        kernel,
        out_shape=jax.ShapeDtypeStruct((B, S * S, Cout), out_dtype),
        grid=(B, G),
        in_specs=[
            # whole image per batch element; constant over g -> DMA'd once per b
            pl.BlockSpec((None, S, S, C), lambda b, g: (b, 0, 0, 0)),
            pl.BlockSpec((9 * C, Cout), lambda b, g: (0, 0)),
            pl.BlockSpec((1, Cout), lambda b, g: (0, 0)),
        ],
        out_specs=pl.BlockSpec((None, RG * S, Cout), lambda b, g: (b, g, 0)),
        scratch_shapes=[
            pltpu.VMEM((S + 2, S + 2, C), jnp.float32),      # zero-bordered halo
            pltpu.VMEM((RG, S, 9 * C), jnp.bfloat16),        # im2col staging
        ],
        compiler_params=pltpu.CompilerParams(
            dimension_semantics=("parallel", "arbitrary")),
    )(x, w_comb, bias)


# -------------------------- kernel 2: window attention -----------------------

def window_attention(qkv, bias, *, heads, window_size):
    """Window MSA.  One grid step = one batch element x one row of windows.

    qkv  : (B, S, S, 3C) bf16 image layout (q | k | v along channels; the
           1/sqrt(d) scale is already folded into q by the qkv projection).
    bias : (NW, WS2, WS2) f32 additive term (rel-pos bias and/or shift masks).
    returns (B, S, S, C) bf16, image layout.
    """
    B, S, _, C3 = qkv.shape
    C = C3 // 3
    ws = window_size
    wn = S // ws
    WS2 = ws * ws
    HD = C // heads

    def kernel(qkv_ref, b_ref, o_ref, win_ref, ow_ref):
        # Gather the wn windows of this window-row into a (wn, WS2, 3C) VMEM
        # scratch using static ref copies (replaces the XLA windowing transpose).
        for wx in range(wn):
            for r in range(ws):
                win_ref[wx, r * ws:(r + 1) * ws, :] = \
                    qkv_ref[r, wx * ws:(wx + 1) * ws, :]

        bias_v = b_ref[...]                                   # (wn, WS2, WS2), once
        for h in range(heads):                                # static unroll
            q = win_ref[:, :, h * HD:(h + 1) * HD]            # (wn, WS2, HD) bf16
            k = win_ref[:, :, C + h * HD:C + (h + 1) * HD]
            v = win_ref[:, :, 2 * C + h * HD:2 * C + (h + 1) * HD]
            # QK^T batched over the wn windows of this row, f32 accumulate.
            dots = jax.lax.dot_general(q, k, (((2,), (2,)), ((0,), (0,))),
                                       preferred_element_type=jnp.float32)
            dots = dots + bias_v
            # f32 softmax (max-subtract); reciprocal goes to the EUP slot.
            # NOTE: approx reciprocal -> small relative error vs exact divide.
            m = jnp.max(dots, axis=-1, keepdims=True)
            e = jnp.exp(dots - m)
            inv = pl.reciprocal(jnp.sum(e, axis=-1, keepdims=True), approx=True)
            attn = (e * inv).astype(jnp.bfloat16)
            oh = jax.lax.dot_general(attn, v, (((2,), (1,)), ((0,), (0,))),
                                     preferred_element_type=jnp.float32)
            ow_ref[:, :, h * HD:(h + 1) * HD] = oh.astype(ow_ref.dtype)

        # Scatter back to image layout; every store carries the FULL channel
        # width (lane dense) instead of per-head partial-lane writes.
        for wx in range(wn):
            for r in range(ws):
                o_ref[r, wx * ws:(wx + 1) * ws, :] = \
                    ow_ref[wx, r * ws:(r + 1) * ws, :]

    return pl.pallas_call(
        kernel,
        out_shape=jax.ShapeDtypeStruct((B, S, S, C), jnp.bfloat16),
        grid=(B, wn),
        in_specs=[
            pl.BlockSpec((None, ws, S, C3), lambda b, r: (b, r, 0, 0)),
            pl.BlockSpec((wn, WS2, WS2), lambda b, r: (r, 0, 0)),
        ],
        out_specs=pl.BlockSpec((None, ws, S, C), lambda b, r: (b, r, 0, 0)),
        scratch_shapes=[
            pltpu.VMEM((wn, WS2, C3), jnp.bfloat16),          # gathered windows
            pltpu.VMEM((wn, WS2, C), jnp.bfloat16),           # per-row output
        ],
        compiler_params=pltpu.CompilerParams(
            dimension_semantics=("parallel", "parallel")),
    )(qkv, bias)


# ------------------------------- module wrapper ------------------------------

def _combine_dsconv(dw_w, pw_w, pw_b, col_scale=None):
    """Fold the depthwise 3x3 into the pointwise 1x1 (host-side, once).

    dw_w (C,3,3), pw_w (Cout,C), pw_b (Cout,) ->
      w_comb (9C, Cout) bf16 with w_comb[k*C + c, o] = dw_w[c,kh,kw] * pw_w[o,c]
      (k = kh*3 + kw, matching the kernel's tap order), bias (1, Cout) f32.
    `col_scale` optionally folds a per-output-channel scale (1/sqrt(d) for q).
    """
    C = dw_w.shape[0]
    Cout = pw_w.shape[0]
    w = jnp.einsum('ck,oc->kco', dw_w.reshape(C, 9), pw_w).reshape(9 * C, Cout)
    b = pw_b
    if col_scale is not None:
        w = w * col_scale[None, :]
        b = b * col_scale
    return w.astype(jnp.bfloat16), b.reshape(1, Cout).astype(jnp.float32)


class AttentionPallas:
    def __init__(self, heads, feature_num, feature_size, window_size,
                 shifted=False, relative_pos_embedding=False, *, key):
        assert feature_size % window_size == 0
        assert feature_num % heads == 0
        self.heads = heads
        self.feature_num = feature_num
        self.feature_size = feature_size
        self.window_size = window_size
        self.window_num = feature_size // window_size
        self.head_dim = feature_num // heads
        self.shifted = shifted
        self.relative_pos_embedding = relative_pos_embedding
        self.dk = float((feature_num / heads) ** (-0.5))
        self.displacement = window_size // 2 if shifted else 0

        k0, k1, k2, k3, k4, k5, k6 = jax.random.split(key, 7)
        s = 0.1
        C = feature_num
        # deterministic synthetic parameters (torch layouts, 1x1/group dims dropped)
        qkv_dw_w = s * jax.random.normal(k0, (C, 3, 3), jnp.float32)
        qkv_pw_w = s * jax.random.normal(k1, (3 * C, C), jnp.float32)
        qkv_pw_b = s * jax.random.normal(k2, (3 * C,), jnp.float32)
        out_dw_w = s * jax.random.normal(k3, (C, 3, 3), jnp.float32)
        out_pw_w = s * jax.random.normal(k4, (C, C), jnp.float32)
        out_pw_b = s * jax.random.normal(k5, (C,), jnp.float32)

        # fold 1/sqrt(d) into the q output channels (chunk-0 of the 3C output)
        qscale = jnp.concatenate([jnp.full((C,), self.dk, jnp.float32),
                                  jnp.ones((2 * C,), jnp.float32)])
        self.qkv_w, self.qkv_b = _combine_dsconv(qkv_dw_w, qkv_pw_w, qkv_pw_b, qscale)
        self.out_w, self.out_b = _combine_dsconv(out_dw_w, out_pw_w, out_pw_b)

        # additive attention bias: relative-position embedding + Swin shift masks
        ws = window_size
        WS2 = ws * ws
        NW = self.window_num ** 2
        bias = jnp.zeros((NW, WS2, WS2), jnp.float32)
        if relative_pos_embedding:
            self.pos_embedding = jax.random.normal(
                k6, (2 * ws - 1, 2 * ws - 1), jnp.float32)
            rel = _get_relative_distances(ws) + ws - 1          # (WS2, WS2, 2)
            bias = bias + self.pos_embedding[rel[..., 0], rel[..., 1]][None]
        if shifted:
            d = self.displacement
            zmask = jnp.asarray(_create_mask(ws, d, zero_dimension=True))
            omask = jnp.asarray(_create_mask(ws, d, one_dimension=True))
            wn = self.window_num
            widx = jnp.arange(NW)
            bias = bias + jnp.where((widx >= NW - wn)[:, None, None], zmask[None], 0.0)
            bias = bias + jnp.where((widx % wn == wn - 1)[:, None, None], omask[None], 0.0)
        self.window_bias = bias

    def __call__(self, x_nchw):
        B = x_nchw.shape[0]
        C, S = self.feature_num, self.feature_size
        d = self.displacement

        # NCHW -> NHWC so channels sit on the lane axis (module-boundary glue).
        x = jnp.transpose(x_nchw.astype(jnp.float32), (0, 2, 3, 1))

        # fused qkv projection; cyclic shift by -d folded into the halo build
        qkv = dsconv_fused(x, self.qkv_w, self.qkv_b,
                           roll_shift=-d, out_dtype=jnp.bfloat16)   # (B, S*S, 3C)
        qkv = qkv.reshape(B, S, S, 3 * C)               # row-major reshape (free)

        # window MSA; windowing done inside the kernel
        attn = window_attention(qkv, self.window_bias,
                                heads=self.heads, window_size=self.window_size)

        # fused output projection; cyclic back-shift by +d folded into the halo
        out = dsconv_fused(attn, self.out_w, self.out_b,
                           roll_shift=d, out_dtype=jnp.float32)     # (B, S*S, C)
        out = out.reshape(B, S, S, C)
        return jnp.transpose(out, (0, 3, 1, 2))          # NHWC -> NCHW


if __name__ == "__main__":
    B, C, S = 2, 16, 16
    heads, ws = 2, 4
    x = jax.random.normal(jax.random.PRNGKey(0), (B, C, S, S), jnp.float32)

    module = AttentionPallas(heads=heads, feature_num=C, feature_size=S,
                             window_size=ws, shifted=False,
                             relative_pos_embedding=False,
                             key=jax.random.PRNGKey(1))
    out = jax.jit(module.__call__)(x)
    jax.block_until_ready(out)
    assert out.shape == (B, C, S, S), out.shape
    assert bool(jnp.all(jnp.isfinite(out)))

    # exercise the shifted + relative-position-bias path (same kernels,
    # different additive bias and in-kernel cyclic roll)
    module2 = AttentionPallas(heads=heads, feature_num=C, feature_size=S,
                              window_size=ws, shifted=True,
                              relative_pos_embedding=True,
                              key=jax.random.PRNGKey(2))
    out2 = jax.jit(module2.__call__)(x)
    jax.block_until_ready(out2)
    assert out2.shape == (B, C, S, S), out2.shape
    assert bool(jnp.all(jnp.isfinite(out2)))

    print("KERNEL_OK")
</pallas_src>

<mosaic_0001>
module attributes {stable_mosaic.version = 11 : i64} {
  func.func @kernel(%arg0: i32, %arg1: i32, %arg2: memref<1x16x16x16xf32, #tpu.memory_space<vmem>>, %arg3: memref<144x48xbf16, #tpu.memory_space<vmem>>, %arg4: memref<1x48xf32, #tpu.memory_space<vmem>>, %arg5: memref<1x64x48xbf16, #tpu.memory_space<vmem>>, %arg6: memref<18x18x16xf32, #tpu.memory_space<vmem>>, %arg7: memref<4x16x144xbf16, #tpu.memory_space<vmem>>) attributes {dimension_semantics = [#tpu.dimension_semantics<parallel>, #tpu.dimension_semantics<arbitrary>], iteration_bounds = array<i64: 2, 4>, scalar_prefetch = 0 : i64, scratch_operands = 2 : i64, tpu.core_type = #tpu.core_type<tc>, window_params = [{transform_indices = @transform_0, window_bounds = array<i64: 1, 16, 16, 16>}, {pipeline_mode = #tpu.pipeline_mode<synchronous>, transform_indices = @transform_1, window_bounds = array<i64: 144, 48>}, {pipeline_mode = #tpu.pipeline_mode<synchronous>, transform_indices = @transform_2, window_bounds = array<i64: 1, 48>}, {transform_indices = @transform_3, window_bounds = array<i64: 1, 64, 48>}]} {
    %c0_i32 = arith.constant 0 : i32
    %0 = arith.cmpi eq, %arg1, %c0_i32 : i32
    %1 = arith.extui %0 : i1 to i32
    %c0_i32_0 = arith.constant 0 : i32
    %2 = arith.cmpi ne, %1, %c0_i32_0 : i32
    scf.if %2 {
      %cst_52 = arith.constant 0.000000e+00 : f32
      %61 = vector.broadcast %cst_52 : f32 to vector<18x18x16xf32>
      %c0_53 = arith.constant 0 : index
      %c0_54 = arith.constant 0 : index
      %c0_55 = arith.constant 0 : index
      %62 = vector.load %arg6[%c0_53, %c0_54, %c0_55] : memref<18x18x16xf32, #tpu.memory_space<vmem>>, vector<18x18x16xf32>
      tpu.vector_store %arg6[%c0_53, %c0_54, %c0_55], %61 {strides = array<i32>} : memref<18x18x16xf32, #tpu.memory_space<vmem>>, vector<18x18x16xf32>,
      %c0_56 = arith.constant 0 : index
      %c0_57 = arith.constant 0 : index
      %c0_58 = arith.constant 0 : index
      %c0_59 = arith.constant 0 : index
      %63 = vector.load %arg2[%c0_56, %c0_57, %c0_58, %c0_59] : memref<1x16x16x16xf32, #tpu.memory_space<vmem>>, vector<1x16x16x16xf32>
      %64 = vector.shape_cast %63 : vector<1x16x16x16xf32> to vector<16x16x16xf32>
      %c1_60 = arith.constant 1 : index
      %c1_61 = arith.constant 1 : index
      %c0_62 = arith.constant 0 : index
      %65 = vector.load %arg6[%c1_60, %c1_61, %c0_62] : memref<18x18x16xf32, #tpu.memory_space<vmem>>, vector<16x16x16xf32>
      tpu.vector_store %arg6[%c1_60, %c1_61, %c0_62], %64 {strides = array<i32>} : memref<18x18x16xf32, #tpu.memory_space<vmem>>, vector<16x16x16xf32>,
    } else {
    }
    %c4_i32 = arith.constant 4 : i32
    %3 = arith.muli %arg1, %c4_i32 : i32
    %4 = tpu.assume_multiple %3, 4 : i32
    %c0_i32_1 = arith.constant 0 : i32
    %5 = arith.addi %4, %c0_i32_1 : i32
    %6 = arith.index_cast %5 : i32 to index
    %c0 = arith.constant 0 : index
    %c0_2 = arith.constant 0 : index
    %7 = vector.load %arg6[%6, %c0, %c0_2] : memref<18x18x16xf32, #tpu.memory_space<vmem>>, vector<4x16x16xf32>
    %8 = arith.truncf %7 : vector<4x16x16xf32> to vector<4x16x16xbf16>
    %c0_3 = arith.constant 0 : index
    %c0_4 = arith.constant 0 : index
    %c0_5 = arith.constant 0 : index
    %9 = vector.load %arg7[%c0_3, %c0_4, %c0_5] : memref<4x16x144xbf16, #tpu.memory_space<vmem>>, vector<4x16x16xbf16>
    tpu.vector_store %arg7[%c0_3, %c0_4, %c0_5], %8 {strides = array<i32>} : memref<4x16x144xbf16, #tpu.memory_space<vmem>>, vector<4x16x16xbf16>,
    %c0_i32_6 = arith.constant 0 : i32
    %10 = arith.addi %4, %c0_i32_6 : i32
    %11 = arith.index_cast %10 : i32 to index
    %c1 = arith.constant 1 : index
    %c0_7 = arith.constant 0 : index
    %12 = vector.load %arg6[%11, %c1, %c0_7] : memref<18x18x16xf32, #tpu.memory_space<vmem>>, vector<4x16x16xf32>
    %13 = arith.truncf %12 : vector<4x16x16xf32> to vector<4x16x16xbf16>
    %c0_8 = arith.constant 0 : index
    %c0_9 = arith.constant 0 : index
    %c16 = arith.constant 16 : index
    %14 = vector.load %arg7[%c0_8, %c0_9, %c16] : memref<4x16x144xbf16, #tpu.memory_space<vmem>>, vector<4x16x16xbf16>
    tpu.vector_store %arg7[%c0_8, %c0_9, %c16], %13 {strides = array<i32>} : memref<4x16x144xbf16, #tpu.memory_space<vmem>>, vector<4x16x16xbf16>,
    %c0_i32_10 = arith.constant 0 : i32
    %15 = arith.addi %4, %c0_i32_10 : i32
    %16 = arith.index_cast %15 : i32 to index
    %c2 = arith.constant 2 : index
    %c0_11 = arith.constant 0 : index
    %17 = vector.load %arg6[%16, %c2, %c0_11] : memref<18x18x16xf32, #tpu.memory_space<vmem>>, vector<4x16x16xf32>
    %18 = arith.truncf %17 : vector<4x16x16xf32> to vector<4x16x16xbf16>
    %c0_12 = arith.constant 0 : index
    %c0_13 = arith.constant 0 : index
    %c32 = arith.constant 32 : index
    %19 = vector.load %arg7[%c0_12, %c0_13, %c32] : memref<4x16x144xbf16, #tpu.memory_space<vmem>>, vector<4x16x16xbf16>
    tpu.vector_store %arg7[%c0_12, %c0_13, %c32], %18 {strides = array<i32>} : memref<4x16x144xbf16, #tpu.memory_space<vmem>>, vector<4x16x16xbf16>,
    %c1_i32 = arith.constant 1 : i32
    %20 = arith.addi %4, %c1_i32 : i32
    %21 = arith.index_cast %20 : i32 to index
    %c0_14 = arith.constant 0 : index
    %c0_15 = arith.constant 0 : index
    %22 = vector.load %arg6[%21, %c0_14, %c0_15] : memref<18x18x16xf32, #tpu.memory_space<vmem>>, vector<4x16x16xf32>
    %23 = arith.truncf %22 : vector<4x16x16xf32> to vector<4x16x16xbf16>
    %c0_16 = arith.constant 0 : index
    %c0_17 = arith.constant 0 : index
    %c48 = arith.constant 48 : index
    %24 = vector.load %arg7[%c0_16, %c0_17, %c48] : memref<4x16x144xbf16, #tpu.memory_space<vmem>>, vector<4x16x16xbf16>
    tpu.vector_store %arg7[%c0_16, %c0_17, %c48], %23 {strides = array<i32>} : memref<4x16x144xbf16, #tpu.memory_space<vmem>>, vector<4x16x16xbf16>,
    %c1_i32_18 = arith.constant 1 : i32
    %25 = arith.addi %4, %c1_i32_18 : i32
    %26 = arith.index_cast %25 : i32 to index
    %c1_19 = arith.constant 1 : index
    %c0_20 = arith.constant 0 : index
    %27 = vector.load %arg6[%26, %c1_19, %c0_20] : memref<18x18x16xf32, #tpu.memory_space<vmem>>, vector<4x16x16xf32>
    %28 = arith.truncf %27 : vector<4x16x16xf32> to vector<4x16x16xbf16>
    %c0_21 = arith.constant 0 : index
    %c0_22 = arith.constant 0 : index
    %c64 = arith.constant 64 : index
    %29 = vector.load %arg7[%c0_21, %c0_22, %c64] : memref<4x16x144xbf16, #tpu.memory_space<vmem>>, vector<4x16x16xbf16>
    tpu.vector_store %arg7[%c0_21, %c0_22, %c64], %28 {strides = array<i32>} : memref<4x16x144xbf16, #tpu.memory_space<vmem>>, vector<4x16x16xbf16>,
    %c1_i32_23 = arith.constant 1 : i32
    %30 = arith.addi %4, %c1_i32_23 : i32
    %31 = arith.index_cast %30 : i32 to index
    %c2_24 = arith.constant 2 : index
    %c0_25 = arith.constant 0 : index
    %32 = vector.load %arg6[%31, %c2_24, %c0_25] : memref<18x18x16xf32, #tpu.memory_space<vmem>>, vector<4x16x16xf32>
    %33 = arith.truncf %32 : vector<4x16x16xf32> to vector<4x16x16xbf16>
    %c0_26 = arith.constant 0 : index
    %c0_27 = arith.constant 0 : index
    %c80 = arith.constant 80 : index
    %34 = vector.load %arg7[%c0_26, %c0_27, %c80] : memref<4x16x144xbf16, #tpu.memory_space<vmem>>, vector<4x16x16xbf16>
    tpu.vector_store %arg7[%c0_26, %c0_27, %c80], %33 {strides = array<i32>} : memref<4x16x144xbf16, #tpu.memory_space<vmem>>, vector<4x16x16xbf16>,
    %c2_i32 = arith.constant 2 : i32
    %35 = arith.addi %4, %c2_i32 : i32
    %36 = arith.index_cast %35 : i32 to index
    %c0_28 = arith.constant 0 : index
    %c0_29 = arith.constant 0 : index
    %37 = vector.load %arg6[%36, %c0_28, %c0_29] : memref<18x18x16xf32, #tpu.memory_space<vmem>>, vector<4x16x16xf32>
    %38 = arith.truncf %37 : vector<4x16x16xf32> to vector<4x16x16xbf16>
    %c0_30 = arith.constant 0 : index
    %c0_31 = arith.constant 0 : index
    %c96 = arith.constant 96 : index
    %39 = vector.load %arg7[%c0_30, %c0_31, %c96] : memref<4x16x144xbf16, #tpu.memory_space<vmem>>, vector<4x16x16xbf16>
    tpu.vector_store %arg7[%c0_30, %c0_31, %c96], %38 {strides = array<i32>} : memref<4x16x144xbf16, #tpu.memory_space<vmem>>, vector<4x16x16xbf16>,
    %c2_i32_32 = arith.constant 2 : i32
    %40 = arith.addi %4, %c2_i32_32 : i32
    %41 = arith.index_cast %40 : i32 to index
    %c1_33 = arith.constant 1 : index
    %c0_34 = arith.constant 0 : index
    %42 = vector.load %arg6[%41, %c1_33, %c0_34] : memref<18x18x16xf32, #tpu.memory_space<vmem>>, vector<4x16x16xf32>
    %43 = arith.truncf %42 : vector<4x16x16xf32> to vector<4x16x16xbf16>
    %c0_35 = arith.constant 0 : index
    %c0_36 = arith.constant 0 : index
    %c112 = arith.constant 112 : index
    %44 = vector.load %arg7[%c0_35, %c0_36, %c112] : memref<4x16x144xbf16, #tpu.memory_space<vmem>>, vector<4x16x16xbf16>
    tpu.vector_store %arg7[%c0_35, %c0_36, %c112], %43 {strides = array<i32>} : memref<4x16x144xbf16, #tpu.memory_space<vmem>>, vector<4x16x16xbf16>,
    %c2_i32_37 = arith.constant 2 : i32
    %45 = arith.addi %4, %c2_i32_37 : i32
    %46 = arith.index_cast %45 : i32 to index
    %c2_38 = arith.constant 2 : index
    %c0_39 = arith.constant 0 : index
    %47 = vector.load %arg6[%46, %c2_38, %c0_39] : memref<18x18x16xf32, #tpu.memory_space<vmem>>, vector<4x16x16xf32>
    %48 = arith.truncf %47 : vector<4x16x16xf32> to vector<4x16x16xbf16>
    %c0_40 = arith.constant 0 : index
    %c0_41 = arith.constant 0 : index
    %c128 = arith.constant 128 : index
    %49 = vector.load %arg7[%c0_40, %c0_41, %c128] : memref<4x16x144xbf16, #tpu.memory_space<vmem>>, vector<4x16x16xbf16>
    tpu.vector_store %arg7[%c0_40, %c0_41, %c128], %48 {strides = array<i32>} : memref<4x16x144xbf16, #tpu.memory_space<vmem>>, vector<4x16x16xbf16>,
    %c0_42 = arith.constant 0 : index
    %c0_43 = arith.constant 0 : index
    %c0_44 = arith.constant 0 : index
    %50 = vector.load %arg7[%c0_42, %c0_43, %c0_44] : memref<4x16x144xbf16, #tpu.memory_space<vmem>>, vector<4x16x144xbf16>
    %51 = vector.shape_cast %50 : vector<4x16x144xbf16> to vector<64x144xbf16>
    %c0_45 = arith.constant 0 : index
    %c0_46 = arith.constant 0 : index
    %52 = vector.load %arg3[%c0_45, %c0_46] : memref<144x48xbf16, #tpu.memory_space<vmem>>, vector<144x48xbf16>
    %cst = arith.constant dense<0.000000e+00> : vector<64x48xf32>
    %53 = tpu.matmul %51, %52, %cst {dimension_numbers = #tpu.dot_dimension_numbers<[1], [0], [0], [1], [0, 0, 1, 1], [], []>} : vector<64x144xbf16>, vector<144x48xbf16>, vector<64x48xf32> -> vector<64x48xf32>
    %c0_47 = arith.constant 0 : index
    %c0_48 = arith.constant 0 : index
    %54 = vector.load %arg4[%c0_47, %c0_48] : memref<1x48xf32, #tpu.memory_space<vmem>>, vector<1x48xf32>
    %55 = vector.broadcast %54 : vector<1x48xf32> to vector<64x48xf32>
    %56 = arith.addf %53, %55 : vector<64x48xf32>
    %57 = arith.truncf %56 : vector<64x48xf32> to vector<64x48xbf16>
    %c0_49 = arith.constant 0 : index
    %c0_50 = arith.constant 0 : index
    %c0_51 = arith.constant 0 : index
    %58 = vector.load %arg5[%c0_49, %c0_50, %c0_51] : memref<1x64x48xbf16, #tpu.memory_space<vmem>>, vector<1x64x48xbf16>
    %59 = vector.shape_cast %58 : vector<1x64x48xbf16> to vector<64x48xbf16>
    %60 = vector.shape_cast %57 : vector<64x48xbf16> to vector<1x64x48xbf16>
    tpu.vector_store %arg5[%c0_49, %c0_50, %c0_51], %60 {strides = array<i32>} : memref<1x64x48xbf16, #tpu.memory_space<vmem>>, vector<1x64x48xbf16>,
    return
  }
  func.func @transform_0(%arg0: i32, %arg1: i32) -> (i32, i32, i32, i32) {
    %c0_i32 = arith.constant 0 : i32
    %c0_i32_0 = arith.constant 0 : i32
    %c0_i32_1 = arith.constant 0 : i32
    %c0_i32_2 = arith.constant 0 : i32
    return %arg0, %c0_i32, %c0_i32_0, %c0_i32_1 : i32, i32, i32, i32
  }
  func.func @transform_1(%arg0: i32, %arg1: i32) -> (i32, i32) {
    %c0_i32 = arith.constant 0 : i32
    %c0_i32_0 = arith.constant 0 : i32
    %c0_i32_1 = arith.constant 0 : i32
    return %c0_i32, %c0_i32_0 : i32, i32
  }
  func.func @transform_2(%arg0: i32, %arg1: i32) -> (i32, i32) {
    %c0_i32 = arith.constant 0 : i32
    %c0_i32_0 = arith.constant 0 : i32
    %c0_i32_1 = arith.constant 0 : i32
    return %c0_i32, %c0_i32_0 : i32, i32
  }
  func.func @transform_3(%arg0: i32, %arg1: i32) -> (i32, i32, i32) {
    %c0_i32 = arith.constant 0 : i32
    %c0_i32_0 = arith.constant 0 : i32
    return %arg0, %arg1, %c0_i32 : i32, i32, i32
  }
}

module attributes {stable_mosaic.version = 11 : i64} {
  func.func @kernel(%arg0: i32, %arg1: i32, %arg2: memref<1x4x16x48xbf16, #tpu.memory_space<vmem>>, %arg3: memref<4x16x16xf32, #tpu.memory_space<vmem>>, %arg4: memref<1x4x16x16xbf16, #tpu.memory_space<vmem>>, %arg5: memref<4x16x48xbf16, #tpu.memory_space<vmem>>, %arg6: memref<4x16x16xbf16, #tpu.memory_space<vmem>>) attributes {dimension_semantics = [#tpu.dimension_semantics<parallel>, #tpu.dimension_semantics<parallel>], iteration_bounds = array<i64: 2, 4>, scalar_prefetch = 0 : i64, scratch_operands = 2 : i64, tpu.core_type = #tpu.core_type<tc>, window_params = [{transform_indices = @transform_0, window_bounds = array<i64: 1, 4, 16, 48>}, {transform_indices = @transform_1, window_bounds = array<i64: 4, 16, 16>}, {transform_indices = @transform_2, window_bounds = array<i64: 1, 4, 16, 16>}]} {
    %c0 = arith.constant 0 : index
    %c0_0 = arith.constant 0 : index
    %c0_1 = arith.constant 0 : index
    %c0_2 = arith.constant 0 : index
    %0 = vector.load %arg2[%c0, %c0_0, %c0_1, %c0_2] : memref<1x4x16x48xbf16, #tpu.memory_space<vmem>>, vector<1x1x4x48xbf16>
    %1 = vector.shape_cast %0 : vector<1x1x4x48xbf16> to vector<4x48xbf16>
    %c0_3 = arith.constant 0 : index
    %c0_4 = arith.constant 0 : index
    %c0_5 = arith.constant 0 : index
    %2 = vector.load %arg5[%c0_3, %c0_4, %c0_5] : memref<4x16x48xbf16, #tpu.memory_space<vmem>>, vector<1x4x48xbf16>
    %3 = vector.shape_cast %2 : vector<1x4x48xbf16> to vector<4x48xbf16>
    %4 = vector.shape_cast %1 : vector<4x48xbf16> to vector<1x4x48xbf16>
    tpu.vector_store %arg5[%c0_3, %c0_4, %c0_5], %4 {strides = array<i32>} : memref<4x16x48xbf16, #tpu.memory_space<vmem>>, vector<1x4x48xbf16>,
    %c0_6 = arith.constant 0 : index
    %c1 = arith.constant 1 : index
    %c0_7 = arith.constant 0 : index
    %c0_8 = arith.constant 0 : index
    %5 = vector.load %arg2[%c0_6, %c1, %c0_7, %c0_8] : memref<1x4x16x48xbf16, #tpu.memory_space<vmem>>, vector<1x1x4x48xbf16>
    %6 = vector.shape_cast %5 : vector<1x1x4x48xbf16> to vector<4x48xbf16>
    %c0_9 = arith.constant 0 : index
    %c4 = arith.constant 4 : index
    %c0_10 = arith.constant 0 : index
    %7 = vector.load %arg5[%c0_9, %c4, %c0_10] : memref<4x16x48xbf16, #tpu.memory_space<vmem>>, vector<1x4x48xbf16>
    %8 = vector.shape_cast %7 : vector<1x4x48xbf16> to vector<4x48xbf16>
    %9 = vector.shape_cast %6 : vector<4x48xbf16> to vector<1x4x48xbf16>
    tpu.vector_store %arg5[%c0_9, %c4, %c0_10], %9 {strides = array<i32>} : memref<4x16x48xbf16, #tpu.memory_space<vmem>>, vector<1x4x48xbf16>,
    %c0_11 = arith.constant 0 : index
    %c2 = arith.constant 2 : index
    %c0_12 = arith.constant 0 : index
    %c0_13 = arith.constant 0 : index
    %10 = vector.load %arg2[%c0_11, %c2, %c0_12, %c0_13] : memref<1x4x16x48xbf16, #tpu.memory_space<vmem>>, vector<1x1x4x48xbf16>
    %11 = vector.shape_cast %10 : vector<1x1x4x48xbf16> to vector<4x48xbf16>
    %c0_14 = arith.constant 0 : index
    %c8 = arith.constant 8 : index
    %c0_15 = arith.constant 0 : index
    %12 = vector.load %arg5[%c0_14, %c8, %c0_15] : memref<4x16x48xbf16, #tpu.memory_space<vmem>>, vector<1x4x48xbf16>
    %13 = vector.shape_cast %12 : vector<1x4x48xbf16> to vector<4x48xbf16>
    %14 = vector.shape_cast %11 : vector<4x48xbf16> to vector<1x4x48xbf16>
    tpu.vector_store %arg5[%c0_14, %c8, %c0_15], %14 {strides = array<i32>} : memref<4x16x48xbf16, #tpu.memory_space<vmem>>, vector<1x4x48xbf16>,
    %c0_16 = arith.constant 0 : index
    %c3 = arith.constant 3 : index
    %c0_17 = arith.constant 0 : index
    %c0_18 = arith.constant 0 : index
    %15 = vector.load %arg2[%c0_16, %c3, %c0_17, %c0_18] : memref<1x4x16x48xbf16, #tpu.memory_space<vmem>>, vector<1x1x4x48xbf16>
    %16 = vector.shape_cast %15 : vector<1x1x4x48xbf16> to vector<4x48xbf16>
    %c0_19 = arith.constant 0 : index
    %c12 = arith.constant 12 : index
    %c0_20 = arith.constant 0 : index
    %17 = vector.load %arg5[%c0_19, %c12, %c0_20] : memref<4x16x48xbf16, #tpu.memory_space<vmem>>, vector<1x4x48xbf16>
    %18 = vector.shape_cast %17 : vector<1x4x48xbf16> to vector<4x48xbf16>
    %19 = vector.shape_cast %16 : vector<4x48xbf16> to vector<1x4x48xbf16>
    tpu.vector_store %arg5[%c0_19, %c12, %c0_20], %19 {strides = array<i32>} : memref<4x16x48xbf16, #tpu.memory_space<vmem>>, vector<1x4x48xbf16>,
    %c0_21 = arith.constant 0 : index
    %c0_22 = arith.constant 0 : index
    %c4_23 = arith.constant 4 : index
    %c0_24 = arith.constant 0 : index
    %20 = vector.load %arg2[%c0_21, %c0_22, %c4_23, %c0_24] : memref<1x4x16x48xbf16, #tpu.memory_space<vmem>>, vector<1x1x4x48xbf16>
    %21 = vector.shape_cast %20 : vector<1x1x4x48xbf16> to vector<4x48xbf16>
    %c1_25 = arith.constant 1 : index
    %c0_26 = arith.constant 0 : index
    %c0_27 = arith.constant 0 : index
    %22 = vector.load %arg5[%c1_25, %c0_26, %c0_27] : memref<4x16x48xbf16, #tpu.memory_space<vmem>>, vector<1x4x48xbf16>
    %23 = vector.shape_cast %22 : vector<1x4x48xbf16> to vector<4x48xbf16>
    %24 = vector.shape_cast %21 : vector<4x48xbf16> to vector<1x4x48xbf16>
    tpu.vector_store %arg5[%c1_25, %c0_26, %c0_27], %24 {strides = array<i32>} : memref<4x16x48xbf16, #tpu.memory_space<vmem>>, vector<1x4x48xbf16>,
    %c0_28 = arith.constant 0 : index
    %c1_29 = arith.constant 1 : index
    %c4_30 = arith.constant 4 : index
    %c0_31 = arith.constant 0 : index
    %25 = vector.load %arg2[%c0_28, %c1_29, %c4_30, %c0_31] : memref<1x4x16x48xbf16, #tpu.memory_space<vmem>>, vector<1x1x4x48xbf16>
    %26 = vector.shape_cast %25 : vector<1x1x4x48xbf16> to vector<4x48xbf16>
    %c1_32 = arith.constant 1 : index
    %c4_33 = arith.constant 4 : index
    %c0_34 = arith.constant 0 : index
    %27 = vector.load %arg5[%c1_32, %c4_33, %c0_34] : memref<4x16x48xbf16, #tpu.memory_space<vmem>>, vector<1x4x48xbf16>
    %28 = vector.shape_cast %27 : vector<1x4x48xbf16> to vector<4x48xbf16>
    %29 = vector.shape_cast %26 : vector<4x48xbf16> to vector<1x4x48xbf16>
    tpu.vector_store %arg5[%c1_32, %c4_33, %c0_34], %29 {strides = array<i32>} : memref<4x16x48xbf16, #tpu.memory_space<vmem>>, vector<1x4x48xbf16>,
    %c0_35 = arith.constant 0 : index
    %c2_36 = arith.constant 2 : index
    %c4_37 = arith.constant 4 : index
    %c0_38 = arith.constant 0 : index
    %30 = vector.load %arg2[%c0_35, %c2_36, %c4_37, %c0_38] : memref<1x4x16x48xbf16, #tpu.memory_space<vmem>>, vector<1x1x4x48xbf16>
    %31 = vector.shape_cast %30 : vector<1x1x4x48xbf16> to vector<4x48xbf16>
    %c1_39 = arith.constant 1 : index
    %c8_40 = arith.constant 8 : index
    %c0_41 = arith.constant 0 : index
    %32 = vector.load %arg5[%c1_39, %c8_40, %c0_41] : memref<4x16x48xbf16, #tpu.memory_space<vmem>>, vector<1x4x48xbf16>
    %33 = vector.shape_cast %32 : vector<1x4x48xbf16> to vector<4x48xbf16>
    %34 = vector.shape_cast %31 : vector<4x48xbf16> to vector<1x4x48xbf16>
    tpu.vector_store %arg5[%c1_39, %c8_40, %c0_41], %34 {strides = array<i32>} : memref<4x16x48xbf16, #tpu.memory_space<vmem>>, vector<1x4x48xbf16>,
    %c0_42 = arith.constant 0 : index
    %c3_43 = arith.constant 3 : index
    %c4_44 = arith.constant 4 : index
    %c0_45 = arith.constant 0 : index
    %35 = vector.load %arg2[%c0_42, %c3_43, %c4_44, %c0_45] : memref<1x4x16x48xbf16, #tpu.memory_space<vmem>>, vector<1x1x4x48xbf16>
    %36 = vector.shape_cast %35 : vector<1x1x4x48xbf16> to vector<4x48xbf16>
    %c1_46 = arith.constant 1 : index
    %c12_47 = arith.constant 12 : index
    %c0_48 = arith.constant 0 : index
    %37 = vector.load %arg5[%c1_46, %c12_47, %c0_48] : memref<4x16x48xbf16, #tpu.memory_space<vmem>>, vector<1x4x48xbf16>
    %38 = vector.shape_cast %37 : vector<1x4x48xbf16> to vector<4x48xbf16>
    %39 = vector.shape_cast %36 : vector<4x48xbf16> to vector<1x4x48xbf16>
    tpu.vector_store %arg5[%c1_46, %c12_47, %c0_48], %39 {strides = array<i32>} : memref<4x16x48xbf16, #tpu.memory_space<vmem>>, vector<1x4x48xbf16>,
    %c0_49 = arith.constant 0 : index
    %c0_50 = arith.constant 0 : index
    %c8_51 = arith.constant 8 : index
    %c0_52 = arith.constant 0 : index
    %40 = vector.load %arg2[%c0_49, %c0_50, %c8_51, %c0_52] : memref<1x4x16x48xbf16, #tpu.memory_space<vmem>>, vector<1x1x4x48xbf16>
    %41 = vector.shape_cast %40 : vector<1x1x4x48xbf16> to vector<4x48xbf16>
    %c2_53 = arith.constant 2 : index
    %c0_54 = arith.constant 0 : index
    %c0_55 = arith.constant 0 : index
    %42 = vector.load %arg5[%c2_53, %c0_54, %c0_55] : memref<4x16x48xbf16, #tpu.memory_space<vmem>>, vector<1x4x48xbf16>
    %43 = vector.shape_cast %42 : vector<1x4x48xbf16> to vector<4x48xbf16>
    %44 = vector.shape_cast %41 : vector<4x48xbf16> to vector<1x4x48xbf16>
    tpu.vector_store %arg5[%c2_53, %c0_54, %c0_55], %44 {strides = array<i32>} : memref<4x16x48xbf16, #tpu.memory_space<vmem>>, vector<1x4x48xbf16>,
    %c0_56 = arith.constant 0 : index
    %c1_57 = arith.constant 1 : index
    %c8_58 = arith.constant 8 : index
    %c0_59 = arith.constant 0 : index
    %45 = vector.load %arg2[%c0_56, %c1_57, %c8_58, %c0_59] : memref<1x4x16x48xbf16, #tpu.memory_space<vmem>>, vector<1x1x4x48xbf16>
    %46 = vector.shape_cast %45 : vector<1x1x4x48xbf16> to vector<4x48xbf16>
    %c2_60 = arith.constant 2 : index
    %c4_61 = arith.constant 4 : index
    %c0_62 = arith.constant 0 : index
    %47 = vector.load %arg5[%c2_60, %c4_61, %c0_62] : memref<4x16x48xbf16, #tpu.memory_space<vmem>>, vector<1x4x48xbf16>
    %48 = vector.shape_cast %47 : vector<1x4x48xbf16> to vector<4x48xbf16>
    %49 = vector.shape_cast %46 : vector<4x48xbf16> to vector<1x4x48xbf16>
    tpu.vector_store %arg5[%c2_60, %c4_61, %c0_62], %49 {strides = array<i32>} : memref<4x16x48xbf16, #tpu.memory_space<vmem>>, vector<1x4x48xbf16>,
    %c0_63 = arith.constant 0 : index
    %c2_64 = arith.constant 2 : index
    %c8_65 = arith.constant 8 : index
    %c0_66 = arith.constant 0 : index
    %50 = vector.load %arg2[%c0_63, %c2_64, %c8_65, %c0_66] : memref<1x4x16x48xbf16, #tpu.memory_space<vmem>>, vector<1x1x4x48xbf16>
    %51 = vector.shape_cast %50 : vector<1x1x4x48xbf16> to vector<4x48xbf16>
    %c2_67 = arith.constant 2 : index
    %c8_68 = arith.constant 8 : index
    %c0_69 = arith.constant 0 : index
    %52 = vector.load %arg5[%c2_67, %c8_68, %c0_69] : memref<4x16x48xbf16, #tpu.memory_space<vmem>>, vector<1x4x48xbf16>
    %53 = vector.shape_cast %52 : vector<1x4x48xbf16> to vector<4x48xbf16>
    %54 = vector.shape_cast %51 : vector<4x48xbf16> to vector<1x4x48xbf16>
    tpu.vector_store %arg5[%c2_67, %c8_68, %c0_69], %54 {strides = array<i32>} : memref<4x16x48xbf16, #tpu.memory_space<vmem>>, vector<1x4x48xbf16>,
    %c0_70 = arith.constant 0 : index
    %c3_71 = arith.constant 3 : index
    %c8_72 = arith.constant 8 : index
    %c0_73 = arith.constant 0 : index
    %55 = vector.load %arg2[%c0_70, %c3_71, %c8_72, %c0_73] : memref<1x4x16x48xbf16, #tpu.memory_space<vmem>>, vector<1x1x4x48xbf16>
    %56 = vector.shape_cast %55 : vector<1x1x4x48xbf16> to vector<4x48xbf16>
    %c2_74 = arith.constant 2 : index
    %c12_75 = arith.constant 12 : index
    %c0_76 = arith.constant 0 : index
    %57 = vector.load %arg5[%c2_74, %c12_75, %c0_76] : memref<4x16x48xbf16, #tpu.memory_space<vmem>>, vector<1x4x48xbf16>
    %58 = vector.shape_cast %57 : vector<1x4x48xbf16> to vector<4x48xbf16>
    %59 = vector.shape_cast %56 : vector<4x48xbf16> to vector<1x4x48xbf16>
    tpu.vector_store %arg5[%c2_74, %c12_75, %c0_76], %59 {strides = array<i32>} : memref<4x16x48xbf16, #tpu.memory_space<vmem>>, vector<1x4x48xbf16>,
    %c0_77 = arith.constant 0 : index
    %c0_78 = arith.constant 0 : index
    %c12_79 = arith.constant 12 : index
    %c0_80 = arith.constant 0 : index
    %60 = vector.load %arg2[%c0_77, %c0_78, %c12_79, %c0_80] : memref<1x4x16x48xbf16, #tpu.memory_space<vmem>>, vector<1x1x4x48xbf16>
    %61 = vector.shape_cast %60 : vector<1x1x4x48xbf16> to vector<4x48xbf16>
    %c3_81 = arith.constant 3 : index
    %c0_82 = arith.constant 0 : index
    %c0_83 = arith.constant 0 : index
    %62 = vector.load %arg5[%c3_81, %c0_82, %c0_83] : memref<4x16x48xbf16, #tpu.memory_space<vmem>>, vector<1x4x48xbf16>
    %63 = vector.shape_cast %62 : vector<1x4x48xbf16> to vector<4x48xbf16>
    %64 = vector.shape_cast %61 : vector<4x48xbf16> to vector<1x4x48xbf16>
    tpu.vector_store %arg5[%c3_81, %c0_82, %c0_83], %64 {strides = array<i32>} : memref<4x16x48xbf16, #tpu.memory_space<vmem>>, vector<1x4x48xbf16>,
    %c0_84 = arith.constant 0 : index
    %c1_85 = arith.constant 1 : index
    %c12_86 = arith.constant 12 : index
    %c0_87 = arith.constant 0 : index
    %65 = vector.load %arg2[%c0_84, %c1_85, %c12_86, %c0_87] : memref<1x4x16x48xbf16, #tpu.memory_space<vmem>>, vector<1x1x4x48xbf16>
    %66 = vector.shape_cast %65 : vector<1x1x4x48xbf16> to vector<4x48xbf16>
    %c3_88 = arith.constant 3 : index
    %c4_89 = arith.constant 4 : index
    %c0_90 = arith.constant 0 : index
    %67 = vector.load %arg5[%c3_88, %c4_89, %c0_90] : memref<4x16x48xbf16, #tpu.memory_space<vmem>>, vector<1x4x48xbf16>
    %68 = vector.shape_cast %67 : vector<1x4x48xbf16> to vector<4x48xbf16>
    %69 = vector.shape_cast %66 : vector<4x48xbf16> to vector<1x4x48xbf16>
    tpu.vector_store %arg5[%c3_88, %c4_89, %c0_90], %69 {strides = array<i32>} : memref<4x16x48xbf16, #tpu.memory_space<vmem>>, vector<1x4x48xbf16>,
    %c0_91 = arith.constant 0 : index
    %c2_92 = arith.constant 2 : index
    %c12_93 = arith.constant 12 : index
    %c0_94 = arith.constant 0 : index
    %70 = vector.load %arg2[%c0_91, %c2_92, %c12_93, %c0_94] : memref<1x4x16x48xbf16, #tpu.memory_space<vmem>>, vector<1x1x4x48xbf16>
    %71 = vector.shape_cast %70 : vector<1x1x4x48xbf16> to vector<4x48xbf16>
    %c3_95 = arith.constant 3 : index
    %c8_96 = arith.constant 8 : index
    %c0_97 = arith.constant 0 : index
    %72 = vector.load %arg5[%c3_95, %c8_96, %c0_97] : memref<4x16x48xbf16, #tpu.memory_space<vmem>>, vector<1x4x48xbf16>
    %73 = vector.shape_cast %72 : vector<1x4x48xbf16> to vector<4x48xbf16>
    %74 = vector.shape_cast %71 : vector<4x48xbf16> to vector<1x4x48xbf16>
    tpu.vector_store %arg5[%c3_95, %c8_96, %c0_97], %74 {strides = array<i32>} : memref<4x16x48xbf16, #tpu.memory_space<vmem>>, vector<1x4x48xbf16>,
    %c0_98 = arith.constant 0 : index
    %c3_99 = arith.constant 3 : index
    %c12_100 = arith.constant 12 : index
    %c0_101 = arith.constant 0 : index
    %75 = vector.load %arg2[%c0_98, %c3_99, %c12_100, %c0_101] : memref<1x4x16x48xbf16, #tpu.memory_space<vmem>>, vector<1x1x4x48xbf16>
    %76 = vector.shape_cast %75 : vector<1x1x4x48xbf16> to vector<4x48xbf16>
    %c3_102 = arith.constant 3 : index
    %c12_103 = arith.constant 12 : index
    %c0_104 = arith.constant 0 : index
    %77 = vector.load %arg5[%c3_102, %c12_103, %c0_104] : memref<4x16x48xbf16, #tpu.memory_space<vmem>>, vector<1x4x48xbf16>
    %78 = vector.shape_cast %77 : vector<1x4x48xbf16> to vector<4x48xbf16>
    %79 = vector.shape_cast %76 : vector<4x48xbf16> to vector<1x4x48xbf16>
    tpu.vector_store %arg5[%c3_102, %c12_103, %c0_104], %79 {strides = array<i32>} : memref<4x16x48xbf16, #tpu.memory_space<vmem>>, vector<1x4x48xbf16>,
    %c0_105 = arith.constant 0 : index
    %c0_106 = arith.constant 0 : index
    %c0_107 = arith.constant 0 : index
    %80 = vector.load %arg3[%c0_105, %c0_106, %c0_107] : memref<4x16x16xf32, #tpu.memory_space<vmem>>, vector<4x16x16xf32>
    %c0_108 = arith.constant 0 : index
    %c0_109 = arith.constant 0 : index
    %c0_110 = arith.constant 0 : index
    %81 = vector.load %arg5[%c0_108, %c0_109, %c0_110] : memref<4x16x48xbf16, #tpu.memory_space<vmem>>, vector<4x16x8xbf16>
    %c0_111 = arith.constant 0 : index
    %c0_112 = arith.constant 0 : index
    %c16 = arith.constant 16 : index
    %82 = vector.load %arg5[%c0_111, %c0_112, %c16] : memref<4x16x48xbf16, #tpu.memory_space<vmem>>, vector<4x16x8xbf16>
    %c0_113 = arith.constant 0 : index
    %c0_114 = arith.constant 0 : index
    %c32 = arith.constant 32 : index
    %83 = vector.load %arg5[%c0_113, %c0_114, %c32] : memref<4x16x48xbf16, #tpu.memory_space<vmem>>, vector<4x16x8xbf16>
    %cst = arith.constant dense<0.000000e+00> : vector<4x16x16xf32>
    %84 = tpu.matmul %81, %82, %cst {dimension_numbers = #tpu.dot_dimension_numbers<[2], [2], [1], [1], [0, 0, 0, 1, 1, 1], [0], [0]>} : vector<4x16x8xbf16>, vector<4x16x8xbf16>, vector<4x16x16xf32> -> vector<4x16x16xf32>
    %85 = arith.addf %84, %80 : vector<4x16x16xf32>
    %cst_115 = arith.constant dense<0xFF800000> : vector<4x16xf32>
    %86 = vector.multi_reduction <maximumf>, %85, %cst_115 [2] : vector<4x16x16xf32> to vector<4x16xf32>
    %87 = vector.shape_cast %86 : vector<4x16xf32> to vector<4x16x1xf32>
    %88 = vector.broadcast %87 : vector<4x16x1xf32> to vector<4x16x16xf32>
    %89 = arith.subf %85, %88 : vector<4x16x16xf32>
    %90 = math.exp %89 : vector<4x16x16xf32>
    %cst_116 = arith.constant dense<0.000000e+00> : vector<4x16xf32>
    %91 = vector.multi_reduction <add>, %90, %cst_116 [2] : vector<4x16x16xf32> to vector<4x16xf32>
    %92 = vector.shape_cast %91 : vector<4x16xf32> to vector<4x16x1xf32>
    %93 = tpu.reciprocal %92 {approx = true} : vector<4x16x1xf32> -> vector<4x16x1xf32>
    %94 = vector.broadcast %93 : vector<4x16x1xf32> to vector<4x16x16xf32>
    %95 = arith.mulf %90, %94 : vector<4x16x16xf32>
    %96 = arith.truncf %95 : vector<4x16x16xf32> to vector<4x16x16xbf16>
    %cst_117 = arith.constant dense<0.000000e+00> : vector<4x16x8xf32>
    %97 = tpu.matmul %96, %83, %cst_117 {dimension_numbers = #tpu.dot_dimension_numbers<[2], [1], [1], [2], [0, 0, 0, 1, 1, 2], [0], [0]>} : vector<4x16x16xbf16>, vector<4x16x8xbf16>, vector<4x16x8xf32> -> vector<4x16x8xf32>
    %98 = arith.truncf %97 : vector<4x16x8xf32> to vector<4x16x8xbf16>
    %c0_118 = arith.constant 0 : index
    %c0_119 = arith.constant 0 : index
    %c0_120 = arith.constant 0 : index
    %99 = vector.load %arg6[%c0_118, %c0_119, %c0_120] : memref<4x16x16xbf16, #tpu.memory_space<vmem>>, vector<4x16x8xbf16>
    tpu.vector_store %arg6[%c0_118, %c0_119, %c0_120], %98 {strides = array<i32>} : memref<4x16x16xbf16, #tpu.memory_space<vmem>>, vector<4x16x8xbf16>,
    %c0_121 = arith.constant 0 : index
    %c0_122 = arith.constant 0 : index
    %c8_123 = arith.constant 8 : index
    %100 = vector.load %arg5[%c0_121, %c0_122, %c8_123] : memref<4x16x48xbf16, #tpu.memory_space<vmem>>, vector<4x16x8xbf16>
    %c0_124 = arith.constant 0 : index
    %c0_125 = arith.constant 0 : index
    %c24 = arith.constant 24 : index
    %101 = vector.load %arg5[%c0_124, %c0_125, %c24] : memref<4x16x48xbf16, #tpu.memory_space<vmem>>, vector<4x16x8xbf16>
    %c0_126 = arith.constant 0 : index
    %c0_127 = arith.constant 0 : index
    %c40 = arith.constant 40 : index
    %102 = vector.load %arg5[%c0_126, %c0_127, %c40] : memref<4x16x48xbf16, #tpu.memory_space<vmem>>, vector<4x16x8xbf16>
    %cst_128 = arith.constant dense<0.000000e+00> : vector<4x16x16xf32>
    %103 = tpu.matmul %100, %101, %cst_128 {dimension_numbers = #tpu.dot_dimension_numbers<[2], [2], [1], [1], [0, 0, 0, 1, 1, 1], [0], [0]>} : vector<4x16x8xbf16>, vector<4x16x8xbf16>, vector<4x16x16xf32> -> vector<4x16x16xf32>
    %104 = arith.addf %103, %80 : vector<4x16x16xf32>
    %cst_129 = arith.constant dense<0xFF800000> : vector<4x16xf32>
    %105 = vector.multi_reduction <maximumf>, %104, %cst_129 [2] : vector<4x16x16xf32> to vector<4x16xf32>
    %106 = vector.shape_cast %105 : vector<4x16xf32> to vector<4x16x1xf32>
    %107 = vector.broadcast %106 : vector<4x16x1xf32> to vector<4x16x16xf32>
    %108 = arith.subf %104, %107 : vector<4x16x16xf32>
    %109 = math.exp %108 : vector<4x16x16xf32>
    %cst_130 = arith.constant dense<0.000000e+00> : vector<4x16xf32>
    %110 = vector.multi_reduction <add>, %109, %cst_130 [2] : vector<4x16x16xf32> to vector<4x16xf32>
    %111 = vector.shape_cast %110 : vector<4x16xf32> to vector<4x16x1xf32>
    %112 = tpu.reciprocal %111 {approx = true} : vector<4x16x1xf32> -> vector<4x16x1xf32>
    %113 = vector.broadcast %112 : vector<4x16x1xf32> to vector<4x16x16xf32>
    %114 = arith.mulf %109, %113 : vector<4x16x16xf32>
    %115 = arith.truncf %114 : vector<4x16x16xf32> to vector<4x16x16xbf16>
    %cst_131 = arith.constant dense<0.000000e+00> : vector<4x16x8xf32>
    %116 = tpu.matmul %115, %102, %cst_131 {dimension_numbers = #tpu.dot_dimension_numbers<[2], [1], [1], [2], [0, 0, 0, 1, 1, 2], [0], [0]>} : vector<4x16x16xbf16>, vector<4x16x8xbf16>, vector<4x16x8xf32> -> vector<4x16x8xf32>
    %117 = arith.truncf %116 : vector<4x16x8xf32> to vector<4x16x8xbf16>
    %c0_132 = arith.constant 0 : index
    %c0_133 = arith.constant 0 : index
    %c8_134 = arith.constant 8 : index
    %118 = vector.load %arg6[%c0_132, %c0_133, %c8_134] : memref<4x16x16xbf16, #tpu.memory_space<vmem>>, vector<4x16x8xbf16>
    tpu.vector_store %arg6[%c0_132, %c0_133, %c8_134], %117 {strides = array<i32>} : memref<4x16x16xbf16, #tpu.memory_space<vmem>>, vector<4x16x8xbf16>,
    %c0_135 = arith.constant 0 : index
    %c0_136 = arith.constant 0 : index
    %c0_137 = arith.constant 0 : index
    %119 = vector.load %arg6[%c0_135, %c0_136, %c0_137] : memref<4x16x16xbf16, #tpu.memory_space<vmem>>, vector<1x4x16xbf16>
    %120 = vector.shape_cast %119 : vector<1x4x16xbf16> to vector<4x16xbf16>
    %c0_138 = arith.constant 0 : index
    %c0_139 = arith.constant 0 : index
    %c0_140 = arith.constant 0 : index
    %c0_141 = arith.constant 0 : index
    %121 = vector.load %arg4[%c0_138, %c0_139, %c0_140, %c0_141] : memref<1x4x16x16xbf16, #tpu.memory_space<vmem>>, vector<1x1x4x16xbf16>
    %122 = vector.shape_cast %121 : vector<1x1x4x16xbf16> to vector<4x16xbf16>
    %123 = vector.shape_cast %120 : vector<4x16xbf16> to vector<1x1x4x16xbf16>
    tpu.vector_store %arg4[%c0_138, %c0_139, %c0_140, %c0_141], %123 {strides = array<i32>} : memref<1x4x16x16xbf16, #tpu.memory_space<vmem>>, vector<1x1x4x16xbf16>,
    %c0_142 = arith.constant 0 : index
    %c4_143 = arith.constant 4 : index
    %c0_144 = arith.constant 0 : index
    %124 = vector.load %arg6[%c0_142, %c4_143, %c0_144] : memref<4x16x16xbf16, #tpu.memory_space<vmem>>, vector<1x4x16xbf16>
    %125 = vector.shape_cast %124 : vector<1x4x16xbf16> to vector<4x16xbf16>
    %c0_145 = arith.constant 0 : index
    %c1_146 = arith.constant 1 : index
    %c0_147 = arith.constant 0 : index
    %c0_148 = arith.constant 0 : index
    %126 = vector.load %arg4[%c0_145, %c1_146, %c0_147, %c0_148] : memref<1x4x16x16xbf16, #tpu.memory_space<vmem>>, vector<1x1x4x16xbf16>
    %127 = vector.shape_cast %126 : vector<1x1x4x16xbf16> to vector<4x16xbf16>
    %128 = vector.shape_cast %125 : vector<4x16xbf16> to vector<1x1x4x16xbf16>
    tpu.vector_store %arg4[%c0_145, %c1_146, %c0_147, %c0_148], %128 {strides = array<i32>} : memref<1x4x16x16xbf16, #tpu.memory_space<vmem>>, vector<1x1x4x16xbf16>,
    %c0_149 = arith.constant 0 : index
    %c8_150 = arith.constant 8 : index
    %c0_151 = arith.constant 0 : index
    %129 = vector.load %arg6[%c0_149, %c8_150, %c0_151] : memref<4x16x16xbf16, #tpu.memory_space<vmem>>, vector<1x4x16xbf16>
    %130 = vector.shape_cast %129 : vector<1x4x16xbf16> to vector<4x16xbf16>
    %c0_152 = arith.constant 0 : index
    %c2_153 = arith.constant 2 : index
    %c0_154 = arith.constant 0 : index
    %c0_155 = arith.constant 0 : index
    %131 = vector.load %arg4[%c0_152, %c2_153, %c0_154, %c0_155] : memref<1x4x16x16xbf16, #tpu.memory_space<vmem>>, vector<1x1x4x16xbf16>
    %132 = vector.shape_cast %131 : vector<1x1x4x16xbf16> to vector<4x16xbf16>
    %133 = vector.shape_cast %130 : vector<4x16xbf16> to vector<1x1x4x16xbf16>
    tpu.vector_store %arg4[%c0_152, %c2_153, %c0_154, %c0_155], %133 {strides = array<i32>} : memref<1x4x16x16xbf16, #tpu.memory_space<vmem>>, vector<1x1x4x16xbf16>,
    %c0_156 = arith.constant 0 : index
    %c12_157 = arith.constant 12 : index
    %c0_158 = arith.constant 0 : index
    %134 = vector.load %arg6[%c0_156, %c12_157, %c0_158] : memref<4x16x16xbf16, #tpu.memory_space<vmem>>, vector<1x4x16xbf16>
    %135 = vector.shape_cast %134 : vector<1x4x16xbf16> to vector<4x16xbf16>
    %c0_159 = arith.constant 0 : index
    %c3_160 = arith.constant 3 : index
    %c0_161 = arith.constant 0 : index
    %c0_162 = arith.constant 0 : index
    %136 = vector.load %arg4[%c0_159, %c3_160, %c0_161, %c0_162] : memref<1x4x16x16xbf16, #tpu.memory_space<vmem>>, vector<1x1x4x16xbf16>
    %137 = vector.shape_cast %136 : vector<1x1x4x16xbf16> to vector<4x16xbf16>
    %138 = vector.shape_cast %135 : vector<4x16xbf16> to vector<1x1x4x16xbf16>
    tpu.vector_store %arg4[%c0_159, %c3_160, %c0_161, %c0_162], %138 {strides = array<i32>} : memref<1x4x16x16xbf16, #tpu.memory_space<vmem>>, vector<1x1x4x16xbf16>,
    %c1_163 = arith.constant 1 : index
    %c0_164 = arith.constant 0 : index
    %c0_165 = arith.constant 0 : index
    %139 = vector.load %arg6[%c1_163, %c0_164, %c0_165] : memref<4x16x16xbf16, #tpu.memory_space<vmem>>, vector<1x4x16xbf16>
    %140 = vector.shape_cast %139 : vector<1x4x16xbf16> to vector<4x16xbf16>
    %c0_166 = arith.constant 0 : index
    %c0_167 = arith.constant 0 : index
    %c4_168 = arith.constant 4 : index
    %c0_169 = arith.constant 0 : index
    %141 = vector.load %arg4[%c0_166, %c0_167, %c4_168, %c0_169] : memref<1x4x16x16xbf16, #tpu.memory_space<vmem>>, vector<1x1x4x16xbf16>
    %142 = vector.shape_cast %141 : vector<1x1x4x16xbf16> to vector<4x16xbf16>
    %143 = vector.shape_cast %140 : vector<4x16xbf16> to vector<1x1x4x16xbf16>
    tpu.vector_store %arg4[%c0_166, %c0_167, %c4_168, %c0_169], %143 {strides = array<i32>} : memref<1x4x16x16xbf16, #tpu.memory_space<vmem>>, vector<1x1x4x16xbf16>,
    %c1_170 = arith.constant 1 : index
    %c4_171 = arith.constant 4 : index
    %c0_172 = arith.constant 0 : index
    %144 = vector.load %arg6[%c1_170, %c4_171, %c0_172] : memref<4x16x16xbf16, #tpu.memory_space<vmem>>, vector<1x4x16xbf16>
    %145 = vector.shape_cast %144 : vector<1x4x16xbf16> to vector<4x16xbf16>
    %c0_173 = arith.constant 0 : index
    %c1_174 = arith.constant 1 : index
    %c4_175 = arith.constant 4 : index
    %c0_176 = arith.constant 0 : index
    %146 = vector.load %arg4[%c0_173, %c1_174, %c4_175, %c0_176] : memref<1x4x16x16xbf16, #tpu.memory_space<vmem>>, vector<1x1x4x16xbf16>
    %147 = vector.shape_cast %146 : vector<1x1x4x16xbf16> to vector<4x16xbf16>
    %148 = vector.shape_cast %145 : vector<4x16xbf16> to vector<1x1x4x16xbf16>
    tpu.vector_store %arg4[%c0_173, %c1_174, %c4_175, %c0_176], %148 {strides = array<i32>} : memref<1x4x16x16xbf16, #tpu.memory_space<vmem>>, vector<1x1x4x16xbf16>,
    %c1_177 = arith.constant 1 : index
    %c8_178 = arith.constant 8 : index
    %c0_179 = arith.constant 0 : index
    %149 = vector.load %arg6[%c1_177, %c8_178, %c0_179] : memref<4x16x16xbf16, #tpu.memory_space<vmem>>, vector<1x4x16xbf16>
    %150 = vector.shape_cast %149 : vector<1x4x16xbf16> to vector<4x16xbf16>
    %c0_180 = arith.constant 0 : index
    %c2_181 = arith.constant 2 : index
    %c4_182 = arith.constant 4 : index
    %c0_183 = arith.constant 0 : index
    %151 = vector.load %arg4[%c0_180, %c2_181, %c4_182, %c0_183] : memref<1x4x16x16xbf16, #tpu.memory_space<vmem>>, vector<1x1x4x16xbf16>
    %152 = vector.shape_cast %151 : vector<1x1x4x16xbf16> to vector<4x16xbf16>
    %153 = vector.shape_cast %150 : vector<4x16xbf16> to vector<1x1x4x16xbf16>
    tpu.vector_store %arg4[%c0_180, %c2_181, %c4_182, %c0_183], %153 {strides = array<i32>} : memref<1x4x16x16xbf16, #tpu.memory_space<vmem>>, vector<1x1x4x16xbf16>,
    %c1_184 = arith.constant 1 : index
    %c12_185 = arith.constant 12 : index
    %c0_186 = arith.constant 0 : index
    %154 = vector.load %arg6[%c1_184, %c12_185, %c0_186] : memref<4x16x16xbf16, #tpu.memory_space<vmem>>, vector<1x4x16xbf16>
    %155 = vector.shape_cast %154 : vector<1x4x16xbf16> to vector<4x16xbf16>
    %c0_187 = arith.constant 0 : index
    %c3_188 = arith.constant 3 : index
    %c4_189 = arith.constant 4 : index
    %c0_190 = arith.constant 0 : index
    %156 = vector.load %arg4[%c0_187, %c3_188, %c4_189, %c0_190] : memref<1x4x16x16xbf16, #tpu.memory_space<vmem>>, vector<1x1x4x16xbf16>
    %157 = vector.shape_cast %156 : vector<1x1x4x16xbf16> to vector<4x16xbf16>
    %158 = vector.shape_cast %155 : vector<4x16xbf16> to vector<1x1x4x16xbf16>
    tpu.vector_store %arg4[%c0_187, %c3_188, %c4_189, %c0_190], %158 {strides = array<i32>} : memref<1x4x16x16xbf16, #tpu.memory_space<vmem>>, vector<1x1x4x16xbf16>,
    %c2_191 = arith.constant 2 : index
    %c0_192 = arith.constant 0 : index
    %c0_193 = arith.constant 0 : index
    %159 = vector.load %arg6[%c2_191, %c0_192, %c0_193] : memref<4x16x16xbf16, #tpu.memory_space<vmem>>, vector<1x4x16xbf16>
    %160 = vector.shape_cast %159 : vector<1x4x16xbf16> to vector<4x16xbf16>
    %c0_194 = arith.constant 0 : index
    %c0_195 = arith.constant 0 : index
    %c8_196 = arith.constant 8 : index
    %c0_197 = arith.constant 0 : index
    %161 = vector.load %arg4[%c0_194, %c0_195, %c8_196, %c0_197] : memref<1x4x16x16xbf16, #tpu.memory_space<vmem>>, vector<1x1x4x16xbf16>
    %162 = vector.shape_cast %161 : vector<1x1x4x16xbf16> to vector<4x16xbf16>
    %163 = vector.shape_cast %160 : vector<4x16xbf16> to vector<1x1x4x16xbf16>
    tpu.vector_store %arg4[%c0_194, %c0_195, %c8_196, %c0_197], %163 {strides = array<i32>} : memref<1x4x16x16xbf16, #tpu.memory_space<vmem>>, vector<1x1x4x16xbf16>,
    %c2_198 = arith.constant 2 : index
    %c4_199 = arith.constant 4 : index
    %c0_200 = arith.constant 0 : index
    %164 = vector.load %arg6[%c2_198, %c4_199, %c0_200] : memref<4x16x16xbf16, #tpu.memory_space<vmem>>, vector<1x4x16xbf16>
    %165 = vector.shape_cast %164 : vector<1x4x16xbf16> to vector<4x16xbf16>
    %c0_201 = arith.constant 0 : index
    %c1_202 = arith.constant 1 : index
    %c8_203 = arith.constant 8 : index
    %c0_204 = arith.constant 0 : index
    %166 = vector.load %arg4[%c0_201, %c1_202, %c8_203, %c0_204] : memref<1x4x16x16xbf16, #tpu.memory_space<vmem>>, vector<1x1x4x16xbf16>
    %167 = vector.shape_cast %166 : vector<1x1x4x16xbf16> to vector<4x16xbf16>
    %168 = vector.shape_cast %165 : vector<4x16xbf16> to vector<1x1x4x16xbf16>
    tpu.vector_store %arg4[%c0_201, %c1_202, %c8_203, %c0_204], %168 {strides = array<i32>} : memref<1x4x16x16xbf16, #tpu.memory_space<vmem>>, vector<1x1x4x16xbf16>,
    %c2_205 = arith.constant 2 : index
    %c8_206 = arith.constant 8 : index
    %c0_207 = arith.constant 0 : index
    %169 = vector.load %arg6[%c2_205, %c8_206, %c0_207] : memref<4x16x16xbf16, #tpu.memory_space<vmem>>, vector<1x4x16xbf16>
    %170 = vector.shape_cast %169 : vector<1x4x16xbf16> to vector<4x16xbf16>
    %c0_208 = arith.constant 0 : index
    %c2_209 = arith.constant 2 : index
    %c8_210 = arith.constant 8 : index
    %c0_211 = arith.constant 0 : index
    %171 = vector.load %arg4[%c0_208, %c2_209, %c8_210, %c0_211] : memref<1x4x16x16xbf16, #tpu.memory_space<vmem>>, vector<1x1x4x16xbf16>
    %172 = vector.shape_cast %171 : vector<1x1x4x16xbf16> to vector<4x16xbf16>
    %173 = vector.shape_cast %170 : vector<4x16xbf16> to vector<1x1x4x16xbf16>
    tpu.vector_store %arg4[%c0_208, %c2_209, %c8_210, %c0_211], %173 {strides = array<i32>} : memref<1x4x16x16xbf16, #tpu.memory_space<vmem>>, vector<1x1x4x16xbf16>,
    %c2_212 = arith.constant 2 : index
    %c12_213 = arith.constant 12 : index
    %c0_214 = arith.constant 0 : index
    %174 = vector.load %arg6[%c2_212, %c12_213, %c0_214] : memref<4x16x16xbf16, #tpu.memory_space<vmem>>, vector<1x4x16xbf16>
    %175 = vector.shape_cast %174 : vector<1x4x16xbf16> to vector<4x16xbf16>
    %c0_215 = arith.constant 0 : index
    %c3_216 = arith.constant 3 : index
    %c8_217 = arith.constant 8 : index
    %c0_218 = arith.constant 0 : index
    %176 = vector.load %arg4[%c0_215, %c3_216, %c8_217, %c0_218] : memref<1x4x16x16xbf16, #tpu.memory_space<vmem>>, vector<1x1x4x16xbf16>
    %177 = vector.shape_cast %176 : vector<1x1x4x16xbf16> to vector<4x16xbf16>
    %178 = vector.shape_cast %175 : vector<4x16xbf16> to vector<1x1x4x16xbf16>
    tpu.vector_store %arg4[%c0_215, %c3_216, %c8_217, %c0_218], %178 {strides = array<i32>} : memref<1x4x16x16xbf16, #tpu.memory_space<vmem>>, vector<1x1x4x16xbf16>,
    %c3_219 = arith.constant 3 : index
    %c0_220 = arith.constant 0 : index
    %c0_221 = arith.constant 0 : index
    %179 = vector.load %arg6[%c3_219, %c0_220, %c0_221] : memref<4x16x16xbf16, #tpu.memory_space<vmem>>, vector<1x4x16xbf16>
    %180 = vector.shape_cast %179 : vector<1x4x16xbf16> to vector<4x16xbf16>
    %c0_222 = arith.constant 0 : index
    %c0_223 = arith.constant 0 : index
    %c12_224 = arith.constant 12 : index
    %c0_225 = arith.constant 0 : index
    %181 = vector.load %arg4[%c0_222, %c0_223, %c12_224, %c0_225] : memref<1x4x16x16xbf16, #tpu.memory_space<vmem>>, vector<1x1x4x16xbf16>
    %182 = vector.shape_cast %181 : vector<1x1x4x16xbf16> to vector<4x16xbf16>
    %183 = vector.shape_cast %180 : vector<4x16xbf16> to vector<1x1x4x16xbf16>
    tpu.vector_store %arg4[%c0_222, %c0_223, %c12_224, %c0_225], %183 {strides = array<i32>} : memref<1x4x16x16xbf16, #tpu.memory_space<vmem>>, vector<1x1x4x16xbf16>,
    %c3_226 = arith.constant 3 : index
    %c4_227 = arith.constant 4 : index
    %c0_228 = arith.constant 0 : index
    %184 = vector.load %arg6[%c3_226, %c4_227, %c0_228] : memref<4x16x16xbf16, #tpu.memory_space<vmem>>, vector<1x4x16xbf16>
    %185 = vector.shape_cast %184 : vector<1x4x16xbf16> to vector<4x16xbf16>
    %c0_229 = arith.constant 0 : index
    %c1_230 = arith.constant 1 : index
    %c12_231 = arith.constant 12 : index
    %c0_232 = arith.constant 0 : index
    %186 = vector.load %arg4[%c0_229, %c1_230, %c12_231, %c0_232] : memref<1x4x16x16xbf16, #tpu.memory_space<vmem>>, vector<1x1x4x16xbf16>
    %187 = vector.shape_cast %186 : vector<1x1x4x16xbf16> to vector<4x16xbf16>
    %188 = vector.shape_cast %185 : vector<4x16xbf16> to vector<1x1x4x16xbf16>
    tpu.vector_store %arg4[%c0_229, %c1_230, %c12_231, %c0_232], %188 {strides = array<i32>} : memref<1x4x16x16xbf16, #tpu.memory_space<vmem>>, vector<1x1x4x16xbf16>,
    %c3_233 = arith.constant 3 : index
    %c8_234 = arith.constant 8 : index
    %c0_235 = arith.constant 0 : index
    %189 = vector.load %arg6[%c3_233, %c8_234, %c0_235] : memref<4x16x16xbf16, #tpu.memory_space<vmem>>, vector<1x4x16xbf16>
    %190 = vector.shape_cast %189 : vector<1x4x16xbf16> to vector<4x16xbf16>
    %c0_236 = arith.constant 0 : index
    %c2_237 = arith.constant 2 : index
    %c12_238 = arith.constant 12 : index
    %c0_239 = arith.constant 0 : index
    %191 = vector.load %arg4[%c0_236, %c2_237, %c12_238, %c0_239] : memref<1x4x16x16xbf16, #tpu.memory_space<vmem>>, vector<1x1x4x16xbf16>
    %192 = vector.shape_cast %191 : vector<1x1x4x16xbf16> to vector<4x16xbf16>
    %193 = vector.shape_cast %190 : vector<4x16xbf16> to vector<1x1x4x16xbf16>
    tpu.vector_store %arg4[%c0_236, %c2_237, %c12_238, %c0_239], %193 {strides = array<i32>} : memref<1x4x16x16xbf16, #tpu.memory_space<vmem>>, vector<1x1x4x16xbf16>,
    %c3_240 = arith.constant 3 : index
    %c12_241 = arith.constant 12 : index
    %c0_242 = arith.constant 0 : index
    %194 = vector.load %arg6[%c3_240, %c12_241, %c0_242] : memref<4x16x16xbf16, #tpu.memory_space<vmem>>, vector<1x4x16xbf16>
    %195 = vector.shape_cast %194 : vector<1x4x16xbf16> to vector<4x16xbf16>
    %c0_243 = arith.constant 0 : index
    %c3_244 = arith.constant 3 : index
    %c12_245 = arith.constant 12 : index
    %c0_246 = arith.constant 0 : index
    %196 = vector.load %arg4[%c0_243, %c3_244, %c12_245, %c0_246] : memref<1x4x16x16xbf16, #tpu.memory_space<vmem>>, vector<1x1x4x16xbf16>
    %197 = vector.shape_cast %196 : vector<1x1x4x16xbf16> to vector<4x16xbf16>
    %198 = vector.shape_cast %195 : vector<4x16xbf16> to vector<1x1x4x16xbf16>
    tpu.vector_store %arg4[%c0_243, %c3_244, %c12_245, %c0_246], %198 {strides = array<i32>} : memref<1x4x16x16xbf16, #tpu.memory_space<vmem>>, vector<1x1x4x16xbf16>,
    return
  }
  func.func @transform_0(%arg0: i32, %arg1: i32) -> (i32, i32, i32, i32) {
    %c0_i32 = arith.constant 0 : i32
    %c0_i32_0 = arith.constant 0 : i32
    %c0_i32_1 = arith.constant 0 : i32
    return %arg0, %arg1, %c0_i32, %c0_i32_0 : i32, i32, i32, i32
  }
  func.func @transform_1(%arg0: i32, %arg1: i32) -> (i32, i32, i32) {
    %c0_i32 = arith.constant 0 : i32
    %c0_i32_0 = arith.constant 0 : i32
    %c0_i32_1 = arith.constant 0 : i32
    return %arg1, %c0_i32, %c0_i32_0 : i32, i32, i32
  }
  func.func @transform_2(%arg0: i32, %arg1: i32) -> (i32, i32, i32, i32) {
    %c0_i32 = arith.constant 0 : i32
    %c0_i32_0 = arith.constant 0 : i32
    %c0_i32_1 = arith.constant 0 : i32
    return %arg0, %arg1, %c0_i32, %c0_i32_0 : i32, i32, i32, i32
  }
}

module attributes {stable_mosaic.version = 11 : i64} {
  func.func @kernel(%arg0: i32, %arg1: i32, %arg2: memref<1x16x16x16xbf16, #tpu.memory_space<vmem>>, %arg3: memref<144x16xbf16, #tpu.memory_space<vmem>>, %arg4: memref<1x16xf32, #tpu.memory_space<vmem>>, %arg5: memref<1x64x16xf32, #tpu.memory_space<vmem>>, %arg6: memref<18x18x16xf32, #tpu.memory_space<vmem>>, %arg7: memref<4x16x144xbf16, #tpu.memory_space<vmem>>) attributes {dimension_semantics = [#tpu.dimension_semantics<parallel>, #tpu.dimension_semantics<arbitrary>], iteration_bounds = array<i64: 2, 4>, scalar_prefetch = 0 : i64, scratch_operands = 2 : i64, tpu.core_type = #tpu.core_type<tc>, window_params = [{transform_indices = @transform_0, window_bounds = array<i64: 1, 16, 16, 16>}, {pipeline_mode = #tpu.pipeline_mode<synchronous>, transform_indices = @transform_1, window_bounds = array<i64: 144, 16>}, {pipeline_mode = #tpu.pipeline_mode<synchronous>, transform_indices = @transform_2, window_bounds = array<i64: 1, 16>}, {transform_indices = @transform_3, window_bounds = array<i64: 1, 64, 16>}]} {
    %c0_i32 = arith.constant 0 : i32
    %0 = arith.cmpi eq, %arg1, %c0_i32 : i32
    %1 = arith.extui %0 : i1 to i32
    %c0_i32_0 = arith.constant 0 : i32
    %2 = arith.cmpi ne, %1, %c0_i32_0 : i32
    scf.if %2 {
      %cst_52 = arith.constant 0.000000e+00 : f32
      %60 = vector.broadcast %cst_52 : f32 to vector<18x18x16xf32>
      %c0_53 = arith.constant 0 : index
      %c0_54 = arith.constant 0 : index
      %c0_55 = arith.constant 0 : index
      %61 = vector.load %arg6[%c0_53, %c0_54, %c0_55] : memref<18x18x16xf32, #tpu.memory_space<vmem>>, vector<18x18x16xf32>
      tpu.vector_store %arg6[%c0_53, %c0_54, %c0_55], %60 {strides = array<i32>} : memref<18x18x16xf32, #tpu.memory_space<vmem>>, vector<18x18x16xf32>,
      %c0_56 = arith.constant 0 : index
      %c0_57 = arith.constant 0 : index
      %c0_58 = arith.constant 0 : index
      %c0_59 = arith.constant 0 : index
      %62 = vector.load %arg2[%c0_56, %c0_57, %c0_58, %c0_59] : memref<1x16x16x16xbf16, #tpu.memory_space<vmem>>, vector<1x16x16x16xbf16>
      %63 = vector.shape_cast %62 : vector<1x16x16x16xbf16> to vector<16x16x16xbf16>
      %64 = arith.extf %63 : vector<16x16x16xbf16> to vector<16x16x16xf32>
      %c1_60 = arith.constant 1 : index
      %c1_61 = arith.constant 1 : index
      %c0_62 = arith.constant 0 : index
      %65 = vector.load %arg6[%c1_60, %c1_61, %c0_62] : memref<18x18x16xf32, #tpu.memory_space<vmem>>, vector<16x16x16xf32>
      tpu.vector_store %arg6[%c1_60, %c1_61, %c0_62], %64 {strides = array<i32>} : memref<18x18x16xf32, #tpu.memory_space<vmem>>, vector<16x16x16xf32>,
    } else {
    }
    %c4_i32 = arith.constant 4 : i32
    %3 = arith.muli %arg1, %c4_i32 : i32
    %4 = tpu.assume_multiple %3, 4 : i32
    %c0_i32_1 = arith.constant 0 : i32
    %5 = arith.addi %4, %c0_i32_1 : i32
    %6 = arith.index_cast %5 : i32 to index
    %c0 = arith.constant 0 : index
    %c0_2 = arith.constant 0 : index
    %7 = vector.load %arg6[%6, %c0, %c0_2] : memref<18x18x16xf32, #tpu.memory_space<vmem>>, vector<4x16x16xf32>
    %8 = arith.truncf %7 : vector<4x16x16xf32> to vector<4x16x16xbf16>
    %c0_3 = arith.constant 0 : index
    %c0_4 = arith.constant 0 : index
    %c0_5 = arith.constant 0 : index
    %9 = vector.load %arg7[%c0_3, %c0_4, %c0_5] : memref<4x16x144xbf16, #tpu.memory_space<vmem>>, vector<4x16x16xbf16>
    tpu.vector_store %arg7[%c0_3, %c0_4, %c0_5], %8 {strides = array<i32>} : memref<4x16x144xbf16, #tpu.memory_space<vmem>>, vector<4x16x16xbf16>,
    %c0_i32_6 = arith.constant 0 : i32
    %10 = arith.addi %4, %c0_i32_6 : i32
    %11 = arith.index_cast %10 : i32 to index
    %c1 = arith.constant 1 : index
    %c0_7 = arith.constant 0 : index
    %12 = vector.load %arg6[%11, %c1, %c0_7] : memref<18x18x16xf32, #tpu.memory_space<vmem>>, vector<4x16x16xf32>
    %13 = arith.truncf %12 : vector<4x16x16xf32> to vector<4x16x16xbf16>
    %c0_8 = arith.constant 0 : index
    %c0_9 = arith.constant 0 : index
    %c16 = arith.constant 16 : index
    %14 = vector.load %arg7[%c0_8, %c0_9, %c16] : memref<4x16x144xbf16, #tpu.memory_space<vmem>>, vector<4x16x16xbf16>
    tpu.vector_store %arg7[%c0_8, %c0_9, %c16], %13 {strides = array<i32>} : memref<4x16x144xbf16, #tpu.memory_space<vmem>>, vector<4x16x16xbf16>,
    %c0_i32_10 = arith.constant 0 : i32
    %15 = arith.addi %4, %c0_i32_10 : i32
    %16 = arith.index_cast %15 : i32 to index
    %c2 = arith.constant 2 : index
    %c0_11 = arith.constant 0 : index
    %17 = vector.load %arg6[%16, %c2, %c0_11] : memref<18x18x16xf32, #tpu.memory_space<vmem>>, vector<4x16x16xf32>
    %18 = arith.truncf %17 : vector<4x16x16xf32> to vector<4x16x16xbf16>
    %c0_12 = arith.constant 0 : index
    %c0_13 = arith.constant 0 : index
    %c32 = arith.constant 32 : index
    %19 = vector.load %arg7[%c0_12, %c0_13, %c32] : memref<4x16x144xbf16, #tpu.memory_space<vmem>>, vector<4x16x16xbf16>
    tpu.vector_store %arg7[%c0_12, %c0_13, %c32], %18 {strides = array<i32>} : memref<4x16x144xbf16, #tpu.memory_space<vmem>>, vector<4x16x16xbf16>,
    %c1_i32 = arith.constant 1 : i32
    %20 = arith.addi %4, %c1_i32 : i32
    %21 = arith.index_cast %20 : i32 to index
    %c0_14 = arith.constant 0 : index
    %c0_15 = arith.constant 0 : index
    %22 = vector.load %arg6[%21, %c0_14, %c0_15] : memref<18x18x16xf32, #tpu.memory_space<vmem>>, vector<4x16x16xf32>
    %23 = arith.truncf %22 : vector<4x16x16xf32> to vector<4x16x16xbf16>
    %c0_16 = arith.constant 0 : index
    %c0_17 = arith.constant 0 : index
    %c48 = arith.constant 48 : index
    %24 = vector.load %arg7[%c0_16, %c0_17, %c48] : memref<4x16x144xbf16, #tpu.memory_space<vmem>>, vector<4x16x16xbf16>
    tpu.vector_store %arg7[%c0_16, %c0_17, %c48], %23 {strides = array<i32>} : memref<4x16x144xbf16, #tpu.memory_space<vmem>>, vector<4x16x16xbf16>,
    %c1_i32_18 = arith.constant 1 : i32
    %25 = arith.addi %4, %c1_i32_18 : i32
    %26 = arith.index_cast %25 : i32 to index
    %c1_19 = arith.constant 1 : index
    %c0_20 = arith.constant 0 : index
    %27 = vector.load %arg6[%26, %c1_19, %c0_20] : memref<18x18x16xf32, #tpu.memory_space<vmem>>, vector<4x16x16xf32>
    %28 = arith.truncf %27 : vector<4x16x16xf32> to vector<4x16x16xbf16>
    %c0_21 = arith.constant 0 : index
    %c0_22 = arith.constant 0 : index
    %c64 = arith.constant 64 : index
    %29 = vector.load %arg7[%c0_21, %c0_22, %c64] : memref<4x16x144xbf16, #tpu.memory_space<vmem>>, vector<4x16x16xbf16>
    tpu.vector_store %arg7[%c0_21, %c0_22, %c64], %28 {strides = array<i32>} : memref<4x16x144xbf16, #tpu.memory_space<vmem>>, vector<4x16x16xbf16>,
    %c1_i32_23 = arith.constant 1 : i32
    %30 = arith.addi %4, %c1_i32_23 : i32
    %31 = arith.index_cast %30 : i32 to index
    %c2_24 = arith.constant 2 : index
    %c0_25 = arith.constant 0 : index
    %32 = vector.load %arg6[%31, %c2_24, %c0_25] : memref<18x18x16xf32, #tpu.memory_space<vmem>>, vector<4x16x16xf32>
    %33 = arith.truncf %32 : vector<4x16x16xf32> to vector<4x16x16xbf16>
    %c0_26 = arith.constant 0 : index
    %c0_27 = arith.constant 0 : index
    %c80 = arith.constant 80 : index
    %34 = vector.load %arg7[%c0_26, %c0_27, %c80] : memref<4x16x144xbf16, #tpu.memory_space<vmem>>, vector<4x16x16xbf16>
    tpu.vector_store %arg7[%c0_26, %c0_27, %c80], %33 {strides = array<i32>} : memref<4x16x144xbf16, #tpu.memory_space<vmem>>, vector<4x16x16xbf16>,
    %c2_i32 = arith.constant 2 : i32
    %35 = arith.addi %4, %c2_i32 : i32
    %36 = arith.index_cast %35 : i32 to index
    %c0_28 = arith.constant 0 : index
    %c0_29 = arith.constant 0 : index
    %37 = vector.load %arg6[%36, %c0_28, %c0_29] : memref<18x18x16xf32, #tpu.memory_space<vmem>>, vector<4x16x16xf32>
    %38 = arith.truncf %37 : vector<4x16x16xf32> to vector<4x16x16xbf16>
    %c0_30 = arith.constant 0 : index
    %c0_31 = arith.constant 0 : index
    %c96 = arith.constant 96 : index
    %39 = vector.load %arg7[%c0_30, %c0_31, %c96] : memref<4x16x144xbf16, #tpu.memory_space<vmem>>, vector<4x16x16xbf16>
    tpu.vector_store %arg7[%c0_30, %c0_31, %c96], %38 {strides = array<i32>} : memref<4x16x144xbf16, #tpu.memory_space<vmem>>, vector<4x16x16xbf16>,
    %c2_i32_32 = arith.constant 2 : i32
    %40 = arith.addi %4, %c2_i32_32 : i32
    %41 = arith.index_cast %40 : i32 to index
    %c1_33 = arith.constant 1 : index
    %c0_34 = arith.constant 0 : index
    %42 = vector.load %arg6[%41, %c1_33, %c0_34] : memref<18x18x16xf32, #tpu.memory_space<vmem>>, vector<4x16x16xf32>
    %43 = arith.truncf %42 : vector<4x16x16xf32> to vector<4x16x16xbf16>
    %c0_35 = arith.constant 0 : index
    %c0_36 = arith.constant 0 : index
    %c112 = arith.constant 112 : index
    %44 = vector.load %arg7[%c0_35, %c0_36, %c112] : memref<4x16x144xbf16, #tpu.memory_space<vmem>>, vector<4x16x16xbf16>
    tpu.vector_store %arg7[%c0_35, %c0_36, %c112], %43 {strides = array<i32>} : memref<4x16x144xbf16, #tpu.memory_space<vmem>>, vector<4x16x16xbf16>,
    %c2_i32_37 = arith.constant 2 : i32
    %45 = arith.addi %4, %c2_i32_37 : i32
    %46 = arith.index_cast %45 : i32 to index
    %c2_38 = arith.constant 2 : index
    %c0_39 = arith.constant 0 : index
    %47 = vector.load %arg6[%46, %c2_38, %c0_39] : memref<18x18x16xf32, #tpu.memory_space<vmem>>, vector<4x16x16xf32>
    %48 = arith.truncf %47 : vector<4x16x16xf32> to vector<4x16x16xbf16>
    %c0_40 = arith.constant 0 : index
    %c0_41 = arith.constant 0 : index
    %c128 = arith.constant 128 : index
    %49 = vector.load %arg7[%c0_40, %c0_41, %c128] : memref<4x16x144xbf16, #tpu.memory_space<vmem>>, vector<4x16x16xbf16>
    tpu.vector_store %arg7[%c0_40, %c0_41, %c128], %48 {strides = array<i32>} : memref<4x16x144xbf16, #tpu.memory_space<vmem>>, vector<4x16x16xbf16>,
    %c0_42 = arith.constant 0 : index
    %c0_43 = arith.constant 0 : index
    %c0_44 = arith.constant 0 : index
    %50 = vector.load %arg7[%c0_42, %c0_43, %c0_44] : memref<4x16x144xbf16, #tpu.memory_space<vmem>>, vector<4x16x144xbf16>
    %51 = vector.shape_cast %50 : vector<4x16x144xbf16> to vector<64x144xbf16>
    %c0_45 = arith.constant 0 : index
    %c0_46 = arith.constant 0 : index
    %52 = vector.load %arg3[%c0_45, %c0_46] : memref<144x16xbf16, #tpu.memory_space<vmem>>, vector<144x16xbf16>
    %cst = arith.constant dense<0.000000e+00> : vector<64x16xf32>
    %53 = tpu.matmul %51, %52, %cst {dimension_numbers = #tpu.dot_dimension_numbers<[1], [0], [0], [1], [0, 0, 1, 1], [], []>} : vector<64x144xbf16>, vector<144x16xbf16>, vector<64x16xf32> -> vector<64x16xf32>
    %c0_47 = arith.constant 0 : index
    %c0_48 = arith.constant 0 : index
    %54 = vector.load %arg4[%c0_47, %c0_48] : memref<1x16xf32, #tpu.memory_space<vmem>>, vector<1x16xf32>
    %55 = vector.broadcast %54 : vector<1x16xf32> to vector<64x16xf32>
    %56 = arith.addf %53, %55 : vector<64x16xf32>
    %c0_49 = arith.constant 0 : index
    %c0_50 = arith.constant 0 : index
    %c0_51 = arith.constant 0 : index
    %57 = vector.load %arg5[%c0_49, %c0_50, %c0_51] : memref<1x64x16xf32, #tpu.memory_space<vmem>>, vector<1x64x16xf32>
    %58 = vector.shape_cast %57 : vector<1x64x16xf32> to vector<64x16xf32>
    %59 = vector.shape_cast %56 : vector<64x16xf32> to vector<1x64x16xf32>
    tpu.vector_store %arg5[%c0_49, %c0_50, %c0_51], %59 {strides = array<i32>} : memref<1x64x16xf32, #tpu.memory_space<vmem>>, vector<1x64x16xf32>,
    return
  }
  func.func @transform_0(%arg0: i32, %arg1: i32) -> (i32, i32, i32, i32) {
    %c0_i32 = arith.constant 0 : i32
    %c0_i32_0 = arith.constant 0 : i32
    %c0_i32_1 = arith.constant 0 : i32
    %c0_i32_2 = arith.constant 0 : i32
    return %arg0, %c0_i32, %c0_i32_0, %c0_i32_1 : i32, i32, i32, i32
  }
  func.func @transform_1(%arg0: i32, %arg1: i32) -> (i32, i32) {
    %c0_i32 = arith.constant 0 : i32
    %c0_i32_0 = arith.constant 0 : i32
    %c0_i32_1 = arith.constant 0 : i32
    return %c0_i32, %c0_i32_0 : i32, i32
  }
  func.func @transform_2(%arg0: i32, %arg1: i32) -> (i32, i32) {
    %c0_i32 = arith.constant 0 : i32
    %c0_i32_0 = arith.constant 0 : i32
    %c0_i32_1 = arith.constant 0 : i32
    return %c0_i32, %c0_i32_0 : i32, i32
  }
  func.func @transform_3(%arg0: i32, %arg1: i32) -> (i32, i32, i32) {
    %c0_i32 = arith.constant 0 : i32
    %c0_i32_0 = arith.constant 0 : i32
    return %arg0, %arg1, %c0_i32 : i32, i32, i32
  }
}

</mosaic_0001>

<bundles_post_ra>
// kernel: a_call__.3
= control target key start
LH: loop header
LB: loop body
LE: loop exit
PB: predicated region body
PF: predicated region fallthrough
CT: control target
= control target key end

     0   :  { %s1135_s12 = smov 0   ;;  %s1137_s13 = smov 0   ;;  %s1517_s0 = inlined_call_operand.vmem [shape: f32[2,16,16,16], index: 0, kind: input, shape index: {}]   ;;  %s1518_s1 = inlined_call_operand.vmem [shape: bf16[144,48], index: 1, kind: input, shape index: {}]   ;;  %s1519_s2 = inlined_call_operand.vmem [shape: f32[1,48], index: 2, kind: input, shape index: {}]   ;;  %s1520_s3 = inlined_call_operand.vmem [shape: bf16[2,256,48], index: 3, kind: output, shape index: {}]  }
   0x1   :  { %s1139_s14 = smov 0   ;;  %s1141_s15 = smov 0  }
   0x2   :  { %s1143_s16 = smov 0  }
   0x3 LB: > { %s22_s17 = sadd.s32 1, %s1096_s14  ;;  %s25_s18 = sadd.s32 1, %s1100_s15  ;;  %s1104_s16 = sphi %s1143_s16, %s13_s16   ;;  %s1100_s15 = sphi %s1141_s15, %s1524_s15   ;;  %s1096_s14 = sphi %s1139_s14, %s1523_s14   ;;  %s1092_s13 = sphi %s1137_s13, %s1522_s13   ;;  %s1088_s12 = sphi %s1135_s12, %s1521_s12  }
   0x4   : > { %p23_p0 = scmp.ge.s32.totalorder %s22_s17, 4  ;;  %p896_p1 = scmp.ge.s32.totalorder %s1104_s16, 1 }
   0x5   : > { %p151_p2 = scmp.lt.s32.totalorder %s1104_s16, 9 }
   0x6   : > { %s1526_s17 = smov (%p23_p0, %s22_s17), 0  ;;  %s1528_s18 = smov (!%p23_p0, %s25_s18), %s1100_s15 }
   0x7   : > { %p152_p3 = pnand %p896_p1, %p151_p2  ;;  %p27_p4 = scmp.ge.s32.totalorder %s1528_s18, 2 }
   0x8   : > { %p179_p5 = scmp.lt.s32.totalorder (!%p152_p3), %s1092_s13, 1  ;;  %s899_s19 = sshll.u32 (!%p152_p3), %s1088_s12, 3 }
   0x9   : > { %s1530_s18 = smov (%p27_p4, %s1528_s18), 0  ;;  %155 = sbr.rel (%p152_p3) target bundleno = 466 (0x1d2), region = 32 }
   0xa   : > { %p187_p6 = scmp.lt.s32.totalorder (!%p152_p3), %s899_s19, 31  ;;  %p902_p7 = scmp.ne.s32.totalorder (!%p152_p3), %s1088_s12, 0 }
  0x10   : > { %s1532_s13 = smov (!%p179_p5, %s1092_s13), 1  ;;  %s1534_s19 = smov (!%p187_p6, %s899_s19), 31 }
  0x11   : > { %s981_s20 = sshll.u32 %s1532_s13, 8  ;;  %s900_s21 = sshll.u32 %s1532_s13, 5  ;;  %vm199_vm0 = vcmask (!%p902_p7), 130048   ;;  %vm202_vm1 = vcmask (!%p902_p7), 123904   ;;  %v1106_v3 = vmov (!%p902_p7), 0.0  }
  0x12   : > { %s1171_s24 = scalar_lea.vmem %s1517_s0, %s981_s20  ;;  %s190_s25 = sadd.s32 %s900_s21, %s1534_s19  ;;  %204 = vst.msk [vmem:[#allocation2 + $0x18] sm:$0xff] (!%p902_p7), %vm199_vm0, %v1106_v3  ;;  %200 = vst.msk [vmem:[#allocation2] sm:$0xff] (!%p902_p7), %vm199_vm0, %v1106_v3 }
  0x13   : > { %s901_s26 = sshll.u32 %s190_s25, 2  ;;  %198 = sbr.rel (%p902_p7) target bundleno = 62 (0x3e), region = 36  ;;  %v255_v0 = vld [vmem:[%s1171_s24] sm:$0xff] (!%p902_p7)  ;;  %v256_v1 = vld [vmem:[%s1171_s24 + $0x8] sm:$0xff] (!%p902_p7)  ;;  %v257_v2 = vld [vmem:[%s1171_s24 + $0x10] sm:$0xff] (!%p902_p7)  ;;  %201 = vst.msk [vmem:[#allocation2 + $0x8] sm:$0xff] (!%p902_p7), %vm199_vm0, %v1106_v3 }
  0x14   : > { %s1176_s29 = scalar_lea.vmem %s1520_s3, %s901_s26  ;;  %205 = vst.msk [vmem:[#allocation2 + $0x20] sm:$0xff] (!%p902_p7), %vm199_vm0, %v1106_v3  ;;  %207 = vst.msk [vmem:[#allocation2 + $0x30] sm:$0xff] (!%p902_p7), %vm199_vm0, %v1106_v3  ;;  %v258_v4 = vld [vmem:[%s1171_s24 + $0x18] sm:$0xff] (!%p902_p7)  ;;  %v259_v5 = vld [vmem:[%s1171_s24 + $0x20] sm:$0xff] (!%p902_p7) }
  0x15   : > { %208 = vst.msk [vmem:[#allocation2 + $0x38] sm:$0xff] (!%p902_p7), %vm199_vm0, %v1106_v3  ;;  %210 = vst.msk [vmem:[#allocation2 + $0x48] sm:$0xff] (!%p902_p7), %vm199_vm0, %v1106_v3  ;;  %v260_v6 = vld [vmem:[%s1171_s24 + $0x28] sm:$0xff] (!%p902_p7)  ;;  %v261_v7 = vld [vmem:[%s1171_s24 + $0x30] sm:$0xff] (!%p902_p7) }
  0x16   : > { %211 = vst.msk [vmem:[#allocation2 + $0x50] sm:$0xff] (!%p902_p7), %vm199_vm0, %v1106_v3  ;;  %213 = vst.msk [vmem:[#allocation2 + $0x60] sm:$0xff] (!%p902_p7), %vm199_vm0, %v1106_v3  ;;  %v262_v8 = vld [vmem:[%s1171_s24 + $0x38] sm:$0xff] (!%p902_p7)  ;;  %v263_v9 = vld [vmem:[%s1171_s24 + $0x40] sm:$0xff] (!%p902_p7) }
  0x17   : > { %214 = vst.msk [vmem:[#allocation2 + $0x68] sm:$0xff] (!%p902_p7), %vm199_vm0, %v1106_v3  ;;  %216 = vst.msk [vmem:[#allocation2 + $0x78] sm:$0xff] (!%p902_p7), %vm199_vm0, %v1106_v3  ;;  %v264_v10 = vld [vmem:[%s1171_s24 + $0x48] sm:$0xff] (!%p902_p7)  ;;  %v265_v11 = vld [vmem:[%s1171_s24 + $0x50] sm:$0xff] (!%p902_p7) }
  0x18   : > { %217 = vst.msk [vmem:[#allocation2 + $0x80] sm:$0xff] (!%p902_p7), %vm199_vm0, %v1106_v3  ;;  %219 = vst.msk [vmem:[#allocation2 + $0x90] sm:$0xff] (!%p902_p7), %vm199_vm0, %v1106_v3  ;;  %v266_v12 = vld [vmem:[%s1171_s24 + $0x58] sm:$0xff] (!%p902_p7)  ;;  %v267_v13 = vld [vmem:[%s1171_s24 + $0x60] sm:$0xff] (!%p902_p7) }
  0x19   : > { %220 = vst.msk [vmem:[#allocation2 + $0x98] sm:$0xff] (!%p902_p7), %vm199_vm0, %v1106_v3  ;;  %222 = vst.msk [vmem:[#allocation2 + $0xa8] sm:$0xff] (!%p902_p7), %vm199_vm0, %v1106_v3  ;;  %v268_v14 = vld [vmem:[%s1171_s24 + $0x68] sm:$0xff] (!%p902_p7)  ;;  %v269_v15 = vld [vmem:[%s1171_s24 + $0x70] sm:$0xff] (!%p902_p7) }
  0x1a   : > { %223 = vst.msk [vmem:[#allocation2 + $0xb0] sm:$0xff] %vm199_vm0, %v1106_v3  ;;  %225 = vst.msk [vmem:[#allocation2 + $0xc0] sm:$0xff] %vm199_vm0, %v1106_v3  ;;  %v270_v16 = vld [vmem:[%s1171_s24 + $0x78] sm:$0xff]  ;;  %v271_v17 = vld [vmem:[%s1171_s24 + $0x80] sm:$0xff] }
  0x1b   : > { %226 = vst.msk [vmem:[#allocation2 + $0xc8] sm:$0xff] %vm199_vm0, %v1106_v3  ;;  %228 = vst.msk [vmem:[#allocation2 + $0xd8] sm:$0xff] %vm199_vm0, %v1106_v3  ;;  %v272_v18 = vld [vmem:[%s1171_s24 + $0x88] sm:$0xff]  ;;  %v273_v19 = vld [vmem:[%s1171_s24 + $0x90] sm:$0xff] }
  0x1c   : > { %229 = vst.msk [vmem:[#allocation2 + $0xe0] sm:$0xff] %vm199_vm0, %v1106_v3  ;;  %231 = vst.msk [vmem:[#allocation2 + $0xf0] sm:$0xff] %vm199_vm0, %v1106_v3  ;;  %v274_v20 = vld [vmem:[%s1171_s24 + $0x98] sm:$0xff]  ;;  %v275_v21 = vld [vmem:[%s1171_s24 + $0xa0] sm:$0xff] }
  0x1d   : > { %232 = vst.msk [vmem:[#allocation2 + $0xf8] sm:$0xff] %vm199_vm0, %v1106_v3  ;;  %234 = vst.msk [vmem:[#allocation2 + $0x108] sm:$0xff] %vm199_vm0, %v1106_v3  ;;  %v276_v22 = vld [vmem:[%s1171_s24 + $0xa8] sm:$0xff]  ;;  %v277_v23 = vld [vmem:[%s1171_s24 + $0xb0] sm:$0xff] }
  0x1e   : > { %235 = vst.msk [vmem:[#allocation2 + $0x110] sm:$0xff] %vm199_vm0, %v1106_v3  ;;  %237 = vst.msk [vmem:[#allocation2 + $0x120] sm:$0xff] %vm199_vm0, %v1106_v3  ;;  %v278_v24 = vld [vmem:[%s1171_s24 + $0xb8] sm:$0xff]  ;;  %v279_v25 = vld [vmem:[%s1171_s24 + $0xc0] sm:$0xff] }
  0x1f   : > { %238 = vst.msk [vmem:[#allocation2 + $0x128] sm:$0xff] %vm199_vm0, %v1106_v3  ;;  %240 = vst.msk [vmem:[#allocation2 + $0x138] sm:$0xff] %vm199_vm0, %v1106_v3  ;;  %v280_v26 = vld [vmem:[%s1171_s24 + $0xc8] sm:$0xff]  ;;  %v281_v27 = vld [vmem:[%s1171_s24 + $0xd0] sm:$0xff] }
  0x20   : > { %241 = vst.msk [vmem:[#allocation2 + $0x140] sm:$0xff] %vm199_vm0, %v1106_v3  ;;  %243 = vst.msk [vmem:[#allocation2 + $0x150] sm:$0xff] %vm199_vm0, %v1106_v3  ;;  %v282_v28 = vld [vmem:[%s1171_s24 + $0xd8] sm:$0xff]  ;;  %v283_v29 = vld [vmem:[%s1171_s24 + $0xe0] sm:$0xff] }
  0x21   : > { %244 = vst.msk [vmem:[#allocation2 + $0x158] sm:$0xff] %vm199_vm0, %v1106_v3  ;;  %246 = vst.msk [vmem:[#allocation2 + $0x168] sm:$0xff] %vm199_vm0, %v1106_v3  ;;  %v284_v30 = vld [vmem:[%s1171_s24 + $0xe8] sm:$0xff]  ;;  %v285_v31 = vld [vmem:[%s1171_s24 + $0xf0] sm:$0xff] }
  0x22   : > { %247 = vst.msk [vmem:[#allocation2 + $0x170] sm:$0xff] %vm199_vm0, %v1106_v3  ;;  %249 = vst.msk [vmem:[#allocation2 + $0x180] sm:$0xff] %vm199_vm0, %v1106_v3  ;;  %v286_v32 = vld [vmem:[%s1171_s24 + $0xf8] sm:$0xff] }
  0x23   : > { %250 = vst.msk [vmem:[#allocation2 + $0x188] sm:$0xff] %vm199_vm0, %v1106_v3  ;;  %252 = vst.msk [vmem:[#allocation2 + $0x198] sm:$0xff] %vm199_vm0, %v1106_v3 }
  0x24   : > { %253 = vst.msk [vmem:[#allocation2 + $0x1a0] sm:$0xff] %vm199_vm0, %v1106_v3  ;;  %288 = vst.msk [vmem:[#allocation2 + $0x19] sm:$0xff] %vm199_vm0, %v255_v0 }
  0x25   : > { %206 = vst.msk [vmem:[#allocation2 + $0x28] sm:$0x3] %vm202_vm1, %v1106_v3  ;;  %203 = vst.msk [vmem:[#allocation2 + $0x10] sm:$0x3] %vm202_vm1, %v1106_v3 }
  0x26   : > { %209 = vst.msk [vmem:[#allocation2 + $0x40] sm:$0x3] %vm202_vm1, %v1106_v3  ;;  %212 = vst.msk [vmem:[#allocation2 + $0x58] sm:$0x3] %vm202_vm1, %v1106_v3 }
  0x27   : > { %215 = vst.msk [vmem:[#allocation2 + $0x70] sm:$0x3] %vm202_vm1, %v1106_v3  ;;  %218 = vst.msk [vmem:[#allocation2 + $0x88] sm:$0x3] %vm202_vm1, %v1106_v3 }
  0x28   : > { %221 = vst.msk [vmem:[#allocation2 + $0xa0] sm:$0x3] %vm202_vm1, %v1106_v3  ;;  %224 = vst.msk [vmem:[#allocation2 + $0xb8] sm:$0x3] %vm202_vm1, %v1106_v3 }
  0x29   : > { %227 = vst.msk [vmem:[#allocation2 + $0xd0] sm:$0x3] %vm202_vm1, %v1106_v3  ;;  %230 = vst.msk [vmem:[#allocation2 + $0xe8] sm:$0x3] %vm202_vm1, %v1106_v3 }
  0x2a   : > { %233 = vst.msk [vmem:[#allocation2 + $0x100] sm:$0x3] %vm202_vm1, %v1106_v3  ;;  %236 = vst.msk [vmem:[#allocation2 + $0x118] sm:$0x3] %vm202_vm1, %v1106_v3 }
  0x2b   : > { %239 = vst.msk [vmem:[#allocation2 + $0x130] sm:$0x3] %vm202_vm1, %v1106_v3  ;;  %242 = vst.msk [vmem:[#allocation2 + $0x148] sm:$0x3] %vm202_vm1, %v1106_v3 }
  0x2c   : > { %245 = vst.msk [vmem:[#allocation2 + $0x160] sm:$0x3] %vm202_vm1, %v1106_v3  ;;  %248 = vst.msk [vmem:[#allocation2 + $0x178] sm:$0x3] %vm202_vm1, %v1106_v3 }
  0x2d   : > { %251 = vst.msk [vmem:[#allocation2 + $0x190] sm:$0x3] %vm202_vm1, %v1106_v3  ;;  %254 = vst.msk [vmem:[#allocation2 + $0x1a8] sm:$0x3] %vm202_vm1, %v1106_v3 }
  0x2e   : > { %289 = vst.msk [vmem:[#allocation2 + $0x21] sm:$0xff] %vm199_vm0, %v256_v1  ;;  %290 = vst.msk [vmem:[#allocation2 + $0x31] sm:$0xff] %vm199_vm0, %v257_v2 }
  0x2f   : > { %291 = vst.msk [vmem:[#allocation2 + $0x39] sm:$0xff] %vm199_vm0, %v258_v4  ;;  %292 = vst.msk [vmem:[#allocation2 + $0x49] sm:$0xff] %vm199_vm0, %v259_v5 }
  0x30   : > { %293 = vst.msk [vmem:[#allocation2 + $0x51] sm:$0xff] %vm199_vm0, %v260_v6  ;;  %294 = vst.msk [vmem:[#allocation2 + $0x61] sm:$0xff] %vm199_vm0, %v261_v7 }
  0x31   : > { %295 = vst.msk [vmem:[#allocation2 + $0x69] sm:$0xff] %vm199_vm0, %v262_v8  ;;  %296 = vst.msk [vmem:[#allocation2 + $0x79] sm:$0xff] %vm199_vm0, %v263_v9 }
  0x32   : > { %297 = vst.msk [vmem:[#allocation2 + $0x81] sm:$0xff] %vm199_vm0, %v264_v10  ;;  %298 = vst.msk [vmem:[#allocation2 + $0x91] sm:$0xff] %vm199_vm0, %v265_v11 }
  0x33   : > { %299 = vst.msk [vmem:[#allocation2 + $0x99] sm:$0xff] %vm199_vm0, %v266_v12  ;;  %300 = vst.msk [vmem:[#allocation2 + $0xa9] sm:$0xff] %vm199_vm0, %v267_v13 }
  0x34   : > { %301 = vst.msk [vmem:[#allocation2 + $0xb1] sm:$0xff] %vm199_vm0, %v268_v14  ;;  %302 = vst.msk [vmem:[#allocation2 + $0xc1] sm:$0xff] %vm199_vm0, %v269_v15 }
  0x35   : > { %303 = vst.msk [vmem:[#allocation2 + $0xc9] sm:$0xff] %vm199_vm0, %v270_v16  ;;  %304 = vst.msk [vmem:[#allocation2 + $0xd9] sm:$0xff] %vm199_vm0, %v271_v17 }
  0x36   : > { %305 = vst.msk [vmem:[#allocation2 + $0xe1] sm:$0xff] %vm199_vm0, %v272_v18  ;;  %306 = vst.msk [vmem:[#allocation2 + $0xf1] sm:$0xff] %vm199_vm0, %v273_v19 }
  0x37   : > { %307 = vst.msk [vmem:[#allocation2 + $0xf9] sm:$0xff] %vm199_vm0, %v274_v20  ;;  %308 = vst.msk [vmem:[#allocation2 + $0x109] sm:$0xff] %vm199_vm0, %v275_v21 }
  0x38   : > { %309 = vst.msk [vmem:[#allocation2 + $0x111] sm:$0xff] %vm199_vm0, %v276_v22  ;;  %310 = vst.msk [vmem:[#allocation2 + $0x121] sm:$0xff] %vm199_vm0, %v277_v23 }
  0x39   : > { %311 = vst.msk [vmem:[#allocation2 + $0x129] sm:$0xff] %vm199_vm0, %v278_v24  ;;  %312 = vst.msk [vmem:[#allocation2 + $0x139] sm:$0xff] %vm199_vm0, %v279_v25 }
  0x3a   : > { %313 = vst.msk [vmem:[#allocation2 + $0x141] sm:$0xff] %vm199_vm0, %v280_v26  ;;  %314 = vst.msk [vmem:[#allocation2 + $0x151] sm:$0xff] %vm199_vm0, %v281_v27 }
  0x3b   : > { %315 = vst.msk [vmem:[#allocation2 + $0x159] sm:$0xff] %vm199_vm0, %v282_v28  ;;  %316 = vst.msk [vmem:[#allocation2 + $0x169] sm:$0xff] %vm199_vm0, %v283_v29 }
  0x3c   : > { %317 = vst.msk [vmem:[#allocation2 + $0x171] sm:$0xff] %vm199_vm0, %v284_v30  ;;  %318 = vst.msk [vmem:[#allocation2 + $0x181] sm:$0xff] %vm199_vm0, %v285_v31 }
  0x3d   : > { %319 = vst.msk [vmem:[#allocation2 + $0x189] sm:$0xff] %vm199_vm0, %v286_v32 }
  0x3e PF: > { %s904_s30 = smul.u32 96, %s1088_s12  ;;  %v1057_v33 = vld [vmem:[%s1518_s1] sm:$0xff]   ;;  %v1107_v34 = vmov 0   ;;  %s1108_s7 = smov 32   ;;  %vm335_vm2 = vcmask 130048   ;;  %v1058_v6 = vld [vmem:[%s1518_s1 + $0x8] sm:$0xff]  }
  0x3f   : > { %692 = vmatprep.subr.bf16.mxu0 %v1107_v34  ;;  %990 = vmatprep.subr.bf16.mxu1 %v1107_v34  ;;  %s1109_s8 = smov 16   ;;  %s1110_s9 = smov 48   ;;  %v1059_v10 = vld [vmem:[%s1518_s1 + $0x10] sm:$0xff]   ;;  %v1060_v14 = vld [vmem:[%s1518_s1 + $0x18] sm:$0xff]   ;;  %v1061_v20 = vld [vmem:[%s1518_s1 + $0x20] sm:$0xff]   ;;  %vm368_vm3 = vcmask 261248  }
  0x40   : > { %693 = vmatpush1.bf16.msra.mxu0 %v1057_v33  ;;  %999 = vmatpush1.bf16.msra.mxu1 %v1057_v33  ;;  %s1303_s6 = scalar_lea.vmem [#allocation2], %s904_s30  ;;  %s1111_s19 = smov 64   ;;  %v1062_v22 = vld [vmem:[%s1518_s1 + $0x28] sm:$0xff]   ;;  %v1063_v23 = vld [vmem:[%s1518_s1 + $0x30] sm:$0xff]   ;;  %v1064_v24 = vld [vmem:[%s1518_s1 + $0x38] sm:$0xff]   ;;  %vm401_vm4 = vcmask 392448  }
  0x41   : > { %694 = vmatprep.subr.bf16.mxu0 %v1107_v34  ;;  %991 = vmatprep.subr.bf16.mxu1 %v1107_v34  ;;  %s1112_s22 = smov 80   ;;  %s1113_s25 = smov 96   ;;  %v1065_v25 = vld [vmem:[%s1518_s1 + $0x40] sm:$0xff]   ;;  %vm437_vm5 = vcmask 523648   ;;  %vm470_vm6 = vcmask 654848   ;;  %vm503_vm7 = vcmask 786048  }
  0x42   : > { %s1114_s28 = smov 112   ;;  %vm539_vm8 = vcmask 917248   ;;  %vm572_vm9 = vcmask 1048448   ;;  %vm789_vm10 = vcmask 388096  }
  0x44   : > { %v373_v35 = vld [vmem:[%s1303_s6 + $0x2] sm:$0xff]  ;;  %v374_v36 = vld [vmem:[%s1303_s6 + $0xa] sm:$0xff]  ;;  %v377_v40 = vld [vmem:[%s1303_s6 + $0x32] sm:$0xff]  ;;  %695 = vmatpush1.bf16.msra.mxu0 %v1058_v6  ;;  %1000 = vmatpush1.bf16.msra.mxu1 %v1058_v6 }
  0x45   : > { %v340_v37 = vld [vmem:[%s1303_s6 + $0x1] sm:$0xff]  ;;  %v381_v38 = vpack.c.bf16 %v374_v36, %v373_v35  ;;  %v341_v39 = vld [vmem:[%s1303_s6 + $0x9] sm:$0xff]  ;;  %v344_v44 = vld [vmem:[%s1303_s6 + $0x31] sm:$0xff]  ;;  %696 = vmatprep.subr.bf16.mxu0 %v1107_v34  ;;  %992 = vmatprep.subr.bf16.mxu1 %v1107_v34 }
  0x46   : > { %v378_v41 = vld [vmem:[%s1303_s6 + $0x3a] sm:$0xff]  ;;  %v348_v42 = vpack.c.bf16 %v341_v39, %v340_v37  ;;  %v911_v46 = vld [vmem:[%s1303_s6 + $0x48] sm:$0xff]  ;;  %v912_v47 = vld [vmem:[%s1303_s6 + $0x50] sm:$0xff] }
  0x47   : > { %v1313_v43 = vpack.c.bf16 %v378_v41, %v377_v40  ;;  %v345_v45 = vld [vmem:[%s1303_s6 + $0x39] sm:$0xff]  ;;  %389 = vrot.lane.b32.xlu1 %v381_v38, %s1108_s7  ;;  %v1325_v51 = vpack.c.bf16 %v912_v47, %v911_v46  ;;  %v927_v53 = vld [vmem:[%s1303_s6 + $0x4a] sm:$0xff]  ;;  %v929_v61 = vld [vmem:[%s1303_s6 + $0x62] sm:$0xff] }
  0x48   : > { %v907_v48 = vld [vmem:[%s1303_s6 + $0x18] sm:$0xff]  ;;  %v908_v49 = vld [vmem:[%s1303_s6 + $0x20] sm:$0xff]  ;;  %356 = vrot.lane.b32.xlu0 %v348_v42, %s1109_s8  ;;  %v1323_v50 = vpack.c.bf16 %v345_v45, %v344_v44  ;;  %v933_v56 = vld [vmem:[%s1303_s6 + $0x30] sm:$0xff]  ;;  %697 = vmatpush1.bf16.msra.mxu0 %v1059_v10 }
  0x49   : > { %v417_v52 = vpack.c.bf16 %v908_v49, %v907_v48  ;;  %589 = vst.msk [vmem:[#allocation3 + $0x8] sm:$0xff] %vm335_vm2, %v1313_v43  ;;  %v928_v54 = vld [vmem:[%s1303_s6 + $0x52] sm:$0xff]  ;;  %339 = vst.msk [vmem:[#allocation3 + $0x30] sm:$0xff] %vm335_vm2, %v1325_v51  ;;  %v919_v58 = vld [vmem:[%s1303_s6 + $0x49] sm:$0xff]  ;;  %1001 = vmatpush1.bf16.msra.mxu1 %v1059_v10  ;;  %698 = vmatprep.subr.bf16.mxu0 %v1107_v34 }
  0x4a   : > { %v1331_v55 = vpack.c.bf16 %v928_v54, %v927_v53  ;;  %v934_v57 = vld [vmem:[%s1303_s6 + $0x38] sm:$0xff]  ;;  %v916_v63 = vld [vmem:[%s1303_s6 + $0x21] sm:$0xff]  ;;  %v930_v0 = vld [vmem:[%s1303_s6 + $0x6a] sm:$0xff]  ;;  %993 = vmatprep.subr.bf16.mxu1 %v1107_v34 }
  0x4b   : > { %337 = vst.msk [vmem:[#allocation3 + $0x10] sm:$0xff] %vm335_vm2, %v417_v52  ;;  %393 = vrot.lane.b32.xlu1 %v1313_v43, %s1108_s7  ;;  %v920_v59 = vld [vmem:[%s1303_s6 + $0x51] sm:$0xff]  ;;  %v1344_v60 = vpack.c.bf16 %v934_v57, %v933_v56  ;;  %v915_v62 = vld [vmem:[%s1303_s6 + $0x19] sm:$0xff]  ;;  %v1352_v1 = vpack.c.bf16 %v930_v0, %v929_v61  ;;  %v324_v5 = vld [vmem:[%s1303_s6 + $0x8] sm:$0xff] }
  0x4c   : > { %360 = vrot.lane.b32.xlu0 %v1323_v50, %s1109_s8  ;;  %590 = vst.msk [vmem:[#allocation3 + $0x18] sm:$0xff] %vm335_vm2, %v1331_v55  ;;  %v323_v2 = vld [vmem:[%s1303_s6] sm:$0xff]  ;;  %v1359_v3 = vpack.c.bf16 %v920_v59, %v919_v58  ;;  %v450_v7 = vpack.c.bf16 %v916_v63, %v915_v62  ;;  %v938_v13 = vld [vmem:[%s1303_s6 + $0x68] sm:$0xff]  ;;  %699 = vmatpush1.bf16.msra.mxu0 %v1060_v14  ;;  %v939_v29 = vld [vmem:[%s1303_s6 + $0x78] sm:$0xff] }
  0x4d   : > { %338 = vst.msk [vmem:[#allocation3 + $0x20] sm:$0xff] %vm335_vm2, %v1344_v60  ;;  %v923_v4 = vld [vmem:[%s1303_s6 + $0x1a] sm:$0xff]  ;;  %v924_v8 = vld [vmem:[%s1303_s6 + $0x22] sm:$0xff]  ;;  %v331_v9 = vpack.c.bf16 %v324_v5, %v323_v2  ;;  %591 = vst.msk [vmem:[#allocation3 + $0x28] sm:$0xff] %vm335_vm2, %v1352_v1  ;;  %1002 = vmatpush1.bf16.msra.mxu1 %v1060_v14  ;;  %700 = vmatprep.subr.bf16.mxu0 %v1107_v34 }
  0x4e   : > { %v937_v11 = vld [vmem:[%s1303_s6 + $0x60] sm:$0xff]  ;;  %v483_v12 = vpack.c.bf16 %v924_v8, %v923_v4  ;;  %v946_v18 = vld [vmem:[%s1303_s6 + $0x69] sm:$0xff]  ;;  %994 = vmatprep.subr.bf16.mxu1 %v1107_v34 }
  0x4f   : > { %429 = vrot.lane.b32.xlu1 %v1325_v51, %s1110_s9  ;;  %336 = vst.msk [vmem:[#allocation3] sm:$0xff] %vm335_vm2, %v331_v9  ;;  %v521_v15 = vpack.c.bf16 %v938_v13, %v937_v11  ;;  %v945_v17 = vld [vmem:[%s1303_s6 + $0x61] sm:$0xff]  ;;  %v947_v32 = vld [vmem:[%s1303_s6 + $0x79] sm:$0xff] }
  0x50   : > { %425 = vrot.lane.b32.xlu0 %v417_v52, %s1110_s9  ;;  %v594_v16 = vld [vmem:[#allocation3 + $0x8] sm:$0xff]  ;;  %v554_v21 = vpack.c.bf16 %v946_v18, %v945_v17  ;;  %701 = vmatpush1.bf16.msra.mxu0 %v1061_v20  ;;  %v956_v27 = vld [vmem:[%s1303_s6 + $0x82] sm:$0xff]  ;;  %v957_v5 = vld [vmem:[%s1519_s2] ss:$0 sm:$0xff] }
  0x51   : > { %967 = vmatprep.mubr.msk.bf16.mxu0 %vm335_vm2, %v594_v16  ;;  %1003 = vmatpush1.bf16.msra.mxu1 %v1061_v20  ;;  %v955_v26 = vld [vmem:[%s1303_s6 + $0x7a] sm:$0xff] }
  0x52   : > { %702 = vmatprep.subr.bf16.mxu0 %v1107_v34  ;;  %995 = vmatprep.subr.bf16.mxu1 %v1107_v34  ;;  %v588_v28 = vpack.c.bf16 %v956_v27, %v955_v26  ;;  %v940_v30 = vld [vmem:[%s1303_s6 + $0x80] sm:$0xff] }
  0x53   : > { %462 = vrot.lane.b32.xlu1 %v1359_v3, %s1111_s19  ;;  %v522_v31 = vpack.c.bf16 %v940_v30, %v939_v29  ;;  %v948_v33 = vld [vmem:[%s1303_s6 + $0x81] sm:$0xff] }
  0x54   : > { %458 = vrot.lane.b32.xlu0 %v450_v7, %s1111_s19  ;;  %v598_v19 = vld [vmem:[#allocation3 + $0x28] sm:$0xff]  ;;  %703 = vmatpush1.bf16.msra.mxu0 %v1062_v22  ;;  %592 = vst.msk [vmem:[#allocation3 + $0x38] sm:$0xff] %vm335_vm2, %v588_v28  ;;  %v596_v54 = vld [vmem:[#allocation3 + $0x18] sm:$0xff] }
  0x55   : > { %969 = vmatprep.mubr.msk.bf16.mxu1 %vm335_vm2, %v598_v19  ;;  %1004 = vmatpush1.bf16.msra.mxu1 %v1062_v22 }
  0x56   : > { %704 = vmatprep.subr.bf16.mxu0 %v1107_v34  ;;  %996 = vmatprep.subr.bf16.mxu1 %v1107_v34 }
  0x57   : > { %495 = vrot.lane.b32.xlu1 %v1331_v55, %s1112_s22 }
  0x58   : > { %491 = vrot.lane.b32.xlu0 %v483_v12, %s1112_s22  ;;  %705 = vmatpush1.bf16.msra.mxu0 %v1063_v23 }
  0x59   : > { %1005 = vmatpush1.bf16.msra.mxu1 %v1063_v23  ;;  %706 = vmatprep.subr.bf16.mxu0 %v1107_v34 }
  0x5a   : > { %997 = vmatprep.subr.bf16.mxu1 %v1107_v34 }
  0x5b   : > { %531 = vrot.lane.b32.xlu1 %v521_v15, %s1113_s25 }
  0x5c   : > { %527 = vrot.lane.b32.xlu0 %v1344_v60, %s1113_s25  ;;  %707 = vmatpush1.bf16.msra.mxu0 %v1064_v24 }
  0x5d   : > { %1006 = vmatpush1.bf16.msra.mxu1 %v1064_v24  ;;  %708 = vmatprep.subr.bf16.mxu0 %v1107_v34 }
  0x5e   : > { %998 = vmatprep.subr.bf16.mxu1 %v1107_v34  ;;  %v555_v34 = vpack.c.bf16 %v948_v33, %v947_v32 }
  0x5f   : > { %564 = vrot.lane.b32.xlu1 %v554_v21, %s1114_s28 }
  0x60   : > { %560 = vrot.lane.b32.xlu0 %v1323_v50, %s1114_s28  ;;  %709 = vmatpush1.bf16.msra.mxu0 %v1065_v25 }
  0x61   : > { %1007 = vmatpush1.bf16.msra.mxu1 %v1065_v25 }
  0x63   : > { %362 = vrot.lane.b32.xlu1 %v1359_v3, %s1109_s8 }
  0x64   : > { %358 = vrot.lane.b32.xlu0 %v450_v7, %s1109_s8 }
  0x67   : > { %395 = vrot.lane.b32.xlu1 %v1331_v55, %s1108_s7 }
  0x68   : > { %391 = vrot.lane.b32.xlu0 %v483_v12, %s1108_s7 }
  0x6b   : > { %431 = vrot.lane.b32.xlu1 %v521_v15, %s1110_s9 }
  0x6c   : > { %427 = vrot.lane.b32.xlu0 %v1344_v60, %s1110_s9 }
  0x6f   : > { %464 = vrot.lane.b32.xlu1 %v554_v21, %s1111_s19 }
  0x70   : > { %460 = vrot.lane.b32.xlu0 %v1323_v50, %s1111_s19 }
  0x73   : > { %497 = vrot.lane.b32.xlu1 %v1352_v1, %s1112_s22 }
  0x74   : > { %493 = vrot.lane.b32.xlu0 %v1313_v43, %s1112_s22 }
  0x77   : > { %533 = vrot.lane.b32.xlu1 %v522_v31, %s1113_s25 }
  0x78   : > { %529 = vrot.lane.b32.xlu0 %v1325_v51, %s1113_s25  ;;  %v600_v51 = vld [vmem:[#allocation3 + $0x38] sm:$0xff] }
  0x7b   : > { %566 = vrot.lane.b32.xlu1 %v555_v34, %s1114_s28 }
  0x7c   : > { %562 = vrot.lane.b32.xlu0 %v1359_v3, %s1114_s28 }
  0xb9   : > { %v390_v35 = vpop.permute.xlu1 %389 }
  0xba   : > { %v357_v36 = vpop.permute.xlu0 %356 }
  0xbb   : > { %369 = vst.msk [vmem:[#allocation3] sm:$0xff] %vm368_vm3, %v357_v36 }
  0xbc   : > { %402 = vst.msk [vmem:[#allocation3] sm:$0xff] %vm401_vm4, %v390_v35 }
  0xbd   : > { %v394_v37 = vpop.permute.xlu1 %393 }
  0xbe   : > { %v361_v38 = vpop.permute.xlu0 %360 }
  0xbf   : > { %371 = vst.msk [vmem:[#allocation3 + $0x20] sm:$0xff] %vm368_vm3, %v361_v38 }
  0xc0   : > { %404 = vst.msk [vmem:[#allocation3 + $0x20] sm:$0xff] %vm401_vm4, %v394_v37 }
  0xc1   : > { %v430_v39 = vpop.permute.xlu1 %429 }
  0xc2   : > { %440 = vst.msk [vmem:[#allocation3 + $0x20] sm:$0xff] %vm437_vm5, %v430_v39  ;;  %v426_v40 = vpop.permute.xlu0 %425 }
  0xc3   : > { %438 = vst.msk [vmem:[#allocation3] sm:$0xff] %vm437_vm5, %v426_v40 }
  0xc5   : > { %v463_v41 = vpop.permute.xlu1 %462 }
  0xc6   : > { %473 = vst.msk [vmem:[#allocation3 + $0x20] sm:$0xff] %vm470_vm6, %v463_v41  ;;  %v459_v42 = vpop.permute.xlu0 %458 }
  0xc7   : > { %471 = vst.msk [vmem:[#allocation3] sm:$0xff] %vm470_vm6, %v459_v42 }
  0xc9   : > { %v496_v43 = vpop.permute.xlu1 %495 }
  0xca   : > { %506 = vst.msk [vmem:[#allocation3 + $0x20] sm:$0xff] %vm503_vm7, %v496_v43  ;;  %v492_v44 = vpop.permute.xlu0 %491 }
  0xcb   : > { %504 = vst.msk [vmem:[#allocation3] sm:$0xff] %vm503_vm7, %v492_v44 }
  0xcd   : > { %v532_v45 = vpop.permute.xlu1 %531 }
  0xce   : > { %542 = vst.msk [vmem:[#allocation3 + $0x20] sm:$0xff] %vm539_vm8, %v532_v45  ;;  %v528_v46 = vpop.permute.xlu0 %527 }
  0xcf   : > { %540 = vst.msk [vmem:[#allocation3] sm:$0xff] %vm539_vm8, %v528_v46 }
  0xd1   : > { %v565_v47 = vpop.permute.xlu1 %564 }
  0xd2   : > { %575 = vst.msk [vmem:[#allocation3 + $0x20] sm:$0xff] %vm572_vm9, %v565_v47  ;;  %v561_v48 = vpop.permute.xlu0 %560 }
  0xd3   : > { %573 = vst.msk [vmem:[#allocation3] sm:$0xff] %vm572_vm9, %v561_v48 }
  0xd5   : > { %v363_v49 = vpop.permute.xlu1 %362 }
  0xd6   : > { %372 = vst.msk [vmem:[#allocation3 + $0x30] sm:$0xff] %vm368_vm3, %v363_v49  ;;  %v359_v50 = vpop.permute.xlu0 %358 }
  0xd7   : > { %370 = vst.msk [vmem:[#allocation3 + $0x10] sm:$0xff] %vm368_vm3, %v359_v50 }
  0xd9   : > { %v396_v52 = vpop.permute.xlu1 %395  ;;  %v597_v53 = vld [vmem:[#allocation3 + $0x20] sm:$0xff] }
  0xda   : > { %405 = vst.msk [vmem:[#allocation3 + $0x30] sm:$0xff] %vm401_vm4, %v396_v52  ;;  %v392_v55 = vpop.permute.xlu0 %391  ;;  %v593_v56 = vld [vmem:[#allocation3] sm:$0xff]  ;;  %741 = vmatmul.mubr.bf16.vlgmr.msra.gmra.mrb[0].mxu1 %v597_v53 }
  0xdb   : > { %403 = vst.msk [vmem:[#allocation3 + $0x10] sm:$0xff] %vm401_vm4, %v392_v55  ;;  %725 = vmatmul.mubr.bf16.vlgmr.msra.gmra.mrb[0].mxu0 %v593_v56  ;;  %970 = vmatprep.mubr.msk.bf16.mxu1 %vm335_vm2, %v600_v51 }
  0xdc   : > { %968 = vmatprep.mubr.msk.bf16.mxu0 %vm335_vm2, %v596_v54 }
  0xdd   : > { %v432_v57 = vpop.permute.xlu1 %431 }
  0xde   : > { %441 = vst.msk [vmem:[#allocation3 + $0x30] sm:$0xff] %vm437_vm5, %v432_v57  ;;  %v428_v58 = vpop.permute.xlu0 %427 }
  0xdf   : > { %439 = vst.msk [vmem:[#allocation3 + $0x10] sm:$0xff] %vm437_vm5, %v428_v58 }
  0xe1   : > { %v465_v59 = vpop.permute.xlu1 %464 }
  0xe2   : > { %474 = vst.msk [vmem:[#allocation3 + $0x30] sm:$0xff] %vm470_vm6, %v465_v59  ;;  %v461_v60 = vpop.permute.xlu0 %460 }
  0xe3   : > { %472 = vst.msk [vmem:[#allocation3 + $0x10] sm:$0xff] %vm470_vm6, %v461_v60 }
  0xe5   : > { %v498_v61 = vpop.permute.xlu1 %497 }
  0xe6   : > { %507 = vst.msk [vmem:[#allocation3 + $0x30] sm:$0xff] %vm503_vm7, %v498_v61  ;;  %v494_v62 = vpop.permute.xlu0 %493 }
  0xe7   : > { %505 = vst.msk [vmem:[#allocation3 + $0x10] sm:$0xff] %vm503_vm7, %v494_v62 }
  0xe9   : > { %v534_v63 = vpop.permute.xlu1 %533 }
  0xea   : > { %543 = vst.msk [vmem:[#allocation3 + $0x30] sm:$0xff] %vm539_vm8, %v534_v63  ;;  %v530_v0 = vpop.permute.xlu0 %529 }
  0xeb   : > { %541 = vst.msk [vmem:[#allocation3 + $0x10] sm:$0xff] %vm539_vm8, %v530_v0 }
  0xed   : > { %v567_v1 = vpop.permute.xlu1 %566 }
  0xee   : > { %576 = vst.msk [vmem:[#allocation3 + $0x30] sm:$0xff] %vm572_vm9, %v567_v1  ;;  %v563_v2 = vpop.permute.xlu0 %562 }
  0xef   : > { %574 = vst.msk [vmem:[#allocation3 + $0x10] sm:$0xff] %vm572_vm9, %v563_v2 }
  0xf5   : > { %v599_v3 = vld [vmem:[#allocation3 + $0x30] sm:$0xff] }
  0xf6   : > { %v595_v4 = vld [vmem:[#allocation3 + $0x10] sm:$0xff]  ;;  %749 = vmatmul.mubr.bf16.gmra.mrb[4].mxu1 %v599_v3 }
  0xf7   : > { %733 = vmatmul.mubr.bf16.gmra.mrb[4].mxu0 %v595_v4 }
 0x1ad   : > { %v742_v6 = vpop.f32.mrb[0].mxu1 }
 0x1ae   : > { %v726_v7 = vpop.f32.mrb[0].mxu0  ;;  %v743_v8 = vadd.f32 %v957_v5, %v742_v6  ;;  %v744_v9 = vpop.f32.mrb[1].mxu1 }
 0x1af   : > { %v727_v10 = vadd.f32 %v957_v5, %v726_v7  ;;  %v728_v11 = vpop.f32.mrb[1].mxu0  ;;  %v745_v12 = vpop.f32.mrb[2].mxu1 }
 0x1b0   : > { %v986_v13 = vpack.c.bf16 %v743_v8, %v743_v8  ;;  %v729_v14 = vpop.f32.mrb[2].mxu0  ;;  %v746_v15 = vadd.f32 %v957_v5, %v745_v12  ;;  %v747_v16 = vpop.f32.mrb[3].mxu1 }
 0x1b1   : > { %v982_v17 = vpack.c.bf16 %v727_v10, %v727_v10  ;;  %v730_v18 = vadd.f32 %v957_v5, %v729_v14  ;;  %v731_v19 = vpop.f32.mrb[3].mxu0 }
 0x1b2   : > { %794 = vst.msk [vmem:[%s1176_s29 + $0x10] sm:$0xf] %vm789_vm10, %v986_v13  ;;  %v987_v20 = vpack.c.bf16 %v746_v15, %v746_v15 }
 0x1b3   : > { %790 = vst.msk [vmem:[%s1176_s29] sm:$0xf] %vm789_vm10, %v982_v17  ;;  %v983_v21 = vpack.c.bf16 %v730_v18, %v730_v18 }
 0x1b4   : > { %795 = vst.msk [vmem:[%s1176_s29 + $0x14] sm:$0xf] %vm789_vm10, %v987_v20 }
 0x1b5   : > { %791 = vst.msk [vmem:[%s1176_s29 + $0x4] sm:$0xf] %vm789_vm10, %v983_v21 }
 0x1c9   : > { %v750_v22 = vpop.f32.mrb[4].mxu1 }
 0x1ca   : > { %v734_v23 = vpop.f32.mrb[4].mxu0  ;;  %v751_v24 = vadd.f32 %v957_v5, %v750_v22  ;;  %v752_v25 = vpop.f32.mrb[5].mxu1 }
 0x1cb   : > { %v735_v26 = vadd.f32 %v957_v5, %v734_v23  ;;  %v736_v27 = vpop.f32.mrb[5].mxu0  ;;  %v753_v28 = vpop.f32.mrb[6].mxu1 }
 0x1cc   : > { %v988_v29 = vpack.c.bf16 %v751_v24, %v751_v24  ;;  %v737_v30 = vpop.f32.mrb[6].mxu0  ;;  %v754_v31 = vadd.f32 %v957_v5, %v753_v28  ;;  %v755_v32 = vpop.f32.mrb[7].mxu1 }
 0x1cd   : > { %v984_v33 = vpack.c.bf16 %v735_v26, %v735_v26  ;;  %v738_v34 = vadd.f32 %v957_v5, %v737_v30  ;;  %v739_v35 = vpop.f32.mrb[7].mxu0 }
 0x1ce   : > { %796 = vst.msk [vmem:[%s1176_s29 + $0x18] sm:$0xf] %vm789_vm10, %v988_v29  ;;  %v989_v36 = vpack.c.bf16 %v754_v31, %v754_v31 }
 0x1cf   : > { %792 = vst.msk [vmem:[%s1176_s29 + $0x8] sm:$0xf] %vm789_vm10, %v984_v33  ;;  %v985_v37 = vpack.c.bf16 %v738_v34, %v738_v34 }
 0x1d0   : > { %797 = vst.msk [vmem:[%s1176_s29 + $0x1c] sm:$0xf] %vm789_vm10, %v989_v36 }
 0x1d1   : > { %793 = vst.msk [vmem:[%s1176_s29 + $0xc] sm:$0xf] %vm789_vm10, %v985_v37 }
 0x1d2 PF: > { %s13_s16 = sadd.s32 1, %s1104_s16   ;;  %s1521_s12 = smov %s1096_s14 }
 0x1d3   : > { %p10_p8 = scmp.ge.s32.totalorder %s13_s16, 10   ;;  %s1522_s13 = smov %s1100_s15 }
 0x1d4   : > { %s1523_s14 = smov %s1526_s17  ;;  %s1524_s15 = smov %s1530_s18 }
 0x1d5   :  { %12 = sbr.rel (!%p10_p8) target bundleno = 3 (0x3), region = 70 }

// kernel: a_call__.4
= control target key start
LH: loop header
LB: loop body
LE: loop exit
PB: predicated region body
PF: predicated region fallthrough
CT: control target
= control target key end

     0   :  { %s1956_s9 = smov 0   ;;  %s1958_s10 = smov 0   ;;  %s2291_s0 = inlined_call_operand.vmem [shape: bf16[2,16,16,48], index: 0, kind: input, shape index: {}]   ;;  %s2292_s1 = inlined_call_operand.vmem [shape: f32[16,16,16], index: 1, kind: input, shape index: {}]   ;;  %s2293_s2 = inlined_call_operand.vmem [shape: bf16[2,16,16,16], index: 2, kind: output, shape index: {}]  }
   0x1   :  { %s1960_s11 = smov 0   ;;  %s1962_s12 = smov 0  }
   0x2   :  { %s1964_s13 = smov 0  }
   0x3 LB: > { %s21_s14 = sadd.s32 1, %s1923_s11  ;;  %s24_s15 = sadd.s32 1, %s1927_s12  ;;  %s1931_s13 = sphi %s1964_s13, %s12_s13   ;;  %s1927_s12 = sphi %s1962_s12, %s2297_s12   ;;  %s1923_s11 = sphi %s1960_s11, %s2296_s11   ;;  %s1919_s10 = sphi %s1958_s10, %s2295_s10   ;;  %s1915_s9 = sphi %s1956_s9, %s2294_s9  }
   0x4   : > { %p22_p0 = scmp.ge.s32.totalorder %s21_s14, 4  ;;  %p1546_p1 = scmp.ge.s32.totalorder %s1931_s13, 1 }
   0x5   : > { %p146_p2 = scmp.lt.s32.totalorder %s1931_s13, 9 }
   0x6   : > { %s2299_s14 = smov (%p22_p0, %s21_s14), 0  ;;  %s2301_s15 = smov (!%p22_p0, %s24_s15), %s1927_s12 }
   0x7   : > { %p147_p3 = pnand %p1546_p1, %p146_p2  ;;  %p26_p4 = scmp.ge.s32.totalorder %s2301_s15, 2 }
   0x8   : > { %s1547_s16 = sshll.u32 (!%p147_p3), %s1915_s9, 2  ;;  %p185_p5 = scmp.lt.s32.totalorder (!%p147_p3), %s1919_s10, 1  ;;  %vm215_vm0 = vcmask (!%p147_p3), 386048   ;;  %vm224_vm1 = vcmask (!%p147_p3), 388098   ;;  %vm232_vm2 = vcmask (!%p147_p3), 390148   ;;  %vm241_vm3 = vcmask (!%p147_p3), 392198  }
   0x9   : > { %s2303_s15 = smov (%p26_p4, %s2301_s15), 0  ;;  %150 = sbr.rel (%p147_p3) target bundleno = 1601 (0x641), region = 28 }
   0xa   : > { %p187_p6 = scmp.lt.s32.totalorder (!%p147_p3), %s1547_s16, 15  ;;  %v1933_v6 = vmov (!%p147_p3), 0.0   ;;  %vm1934_vm4 = vmmov (!%p147_p3), 0   ;;  %s1935_s24 = smov (!%p147_p3), 112   ;;  %vm327_vm5 = vcmask (!%p147_p3), 64512   ;;  %vm525_vm6 = vcmask (!%p147_p3), 130048  }
   0xb   : > { %1661 = vmatprep.subr.bf16.mxu0 (!%p147_p3), %v1933_v6  ;;  %1667 = vmatprep.subr.bf16.mxu1 (!%p147_p3), %v1933_v6  ;;  %s1936_s29 = smov (!%p147_p3), 96   ;;  %s1937_s30 = smov (!%p147_p3), 104   ;;  %vm1326_vm7 = vcmask (!%p147_p3), 130112   ;;  %vm1332_vm8 = vcmask (!%p147_p3), 123904   ;;  %vm1366_vm9 = vcmask (!%p147_p3), 125954  }
   0xc   : > { %1663 = vmatprep.mubr.msk.bf16.mxu0 (!%p147_p3), %vm1934_vm4, %v1933_v6  ;;  %1669 = vmatprep.mubr.msk.bf16.mxu1 (!%p147_p3), %vm1934_vm4, %v1933_v6  ;;  %s1938_s3 = smov (!%p147_p3), 120   ;;  %s1939_s4 = smov (!%p147_p3), 88  }
   0xd   : > { %s1940_s5 = smov (!%p147_p3), 8  }
  0x10   : > { %s2305_s10 = smov (!%p185_p5, %s1919_s10), 1  ;;  %s2307_s16 = smov (!%p187_p6, %s1547_s16), 15 }
  0x11   : > { %s1549_s17 = sshll.u32 %s2305_s10, 5  ;;  %s1548_s18 = sshll.u32 %s2307_s16, 1 }
  0x12   : > { %s1989_s19 = sadd.s32 %s1549_s17, %s1548_s18  ;;  %s1628_s25 = sshll.u32 %s2307_s16, 4 }
  0x13   : > { %s1550_s20 = sshll.u32 %s1989_s19, 2  ;;  %s2077_s28 = scalar_lea.vmem %s2292_s1, %s1628_s25 }
  0x14   : > { %s1997_s23 = scalar_lea.vmem %s2291_s0, %s1550_s20  ;;  %v2080_v37 = vld [vmem:[%s2077_s28] sm:$0xff]  ;;  %v2083_v39 = vld [vmem:[%s2077_s28 + $0x8] sm:$0xff]  ;;  %v2087_v43 = vld [vmem:[%s2077_s28 + $0x10] sm:$0xff]  ;;  %s2239_s8 = scalar_lea.vmem %s2293_s2, %s1550_s20 }
  0x15   : > { %v214_v0 = vld [vmem:[%s1997_s23] sm:$0x3]  ;;  %v1805_v1 = vld [vmem:[%s1997_s23 + $0x8] ss:$0 sps:$4 sm:$0x33]   ;;  %v2092_v48 = vld [vmem:[%s2077_s28 + $0x18] sm:$0xff] }
  0x16   : > { %216 = vst.msk [vmem:[#allocation2] sm:$0x3] %vm215_vm0, %v214_v0  ;;  %v1806_v2 = vld [vmem:[%s1997_s23 + $0x10] ss:$0 sps:$4 sm:$0x33]   ;;  %v222_v4 = vrot.slane %v1805_v1, 6 }
  0x17   : > { %v1807_v3 = vld [vmem:[%s1997_s23 + $0x18] ss:$0 sps:$4 sm:$0x33]   ;;  %233 = vst.msk [vmem:[#allocation2] sm:$0x30] %vm232_vm2, %v1806_v2  ;;  %v2097_v53 = vld [vmem:[%s2077_s28 + $0x20] sm:$0xff] }
  0x18   : > { %v1808_v5 = vld [vmem:[%s1997_s23] ss:$0 sps:$4 sm:$0xcc]   ;;  %v239_v7 = vrot.slane %v1807_v3, 2  ;;  %v1565_v8 = vld [vmem:[%s1997_s23 + $0x8] sm:$0xc] }
  0x19   : > { %225 = vst.msk [vmem:[#allocation2] sm:$0xc] %vm224_vm1, %v222_v4  ;;  %v247_v9 = vrot.slane %v1808_v5, 2  ;;  %252 = vst.msk [vmem:[#allocation2 + $0x8] sm:$0xc] %vm224_vm1, %v1565_v8  ;;  %v2102_v58 = vld [vmem:[%s2077_s28 + $0x28] sm:$0xff] }
  0x1a   : > { %v1809_v10 = vld [vmem:[%s1997_s23 + $0x10] ss:$0 sps:$4 sm:$0xcc]   ;;  %242 = vst.msk [vmem:[#allocation2] sm:$0xc0] %vm241_vm3, %v239_v7  ;;  %v2112_v4 = vld [vmem:[%s2077_s28 + $0x38] sm:$0xff] }
  0x1b   : > { %v1810_v11 = vld [vmem:[%s1997_s23 + $0x18] ss:$0 sps:$4 sm:$0xcc]   ;;  %v266_v12 = vld [vmem:[%s1997_s23 + $0x4] sm:$0x3]  ;;  %v257_v13 = vrot.slane %v1809_v10, 6 }
  0x1c   : > { %250 = vst.msk [vmem:[#allocation2 + $0x8] sm:$0x3] %vm215_vm0, %v247_v9  ;;  %268 = vst.msk [vmem:[#allocation2 + $0x10] sm:$0x3] %vm215_vm0, %v266_v12  ;;  %v1577_v20 = vld [vmem:[%s1997_s23 + $0xc] sm:$0xc] }
  0x1d   : > { %v1811_v14 = vld [vmem:[%s1997_s23 + $0xc] ss:$0 sps:$4 sm:$0x33]   ;;  %265 = vst.msk [vmem:[#allocation2 + $0x8] sm:$0xc0] %vm241_vm3, %v1810_v11  ;;  %v2106_v62 = vld [vmem:[%s2077_s28 + $0x30] sm:$0xff] }
  0x1e   : > { %v1812_v15 = vld [vmem:[%s1997_s23 + $0x14] ss:$0 sps:$4 sm:$0x33]   ;;  %259 = vst.msk [vmem:[#allocation2 + $0x8] sm:$0x30] %vm232_vm2, %v257_v13  ;;  %v273_v16 = vrot.slane %v1811_v14, 6 }
  0x1f   : > { %v1813_v17 = vld [vmem:[%s1997_s23 + $0x1c] ss:$0 sps:$4 sm:$0x33]   ;;  %281 = vst.msk [vmem:[#allocation2 + $0x10] sm:$0x30] %vm232_vm2, %v1812_v15 }
  0x20   : > { %v1814_v18 = vld [vmem:[%s1997_s23 + $0x4] ss:$0 sps:$4 sm:$0xcc]   ;;  %275 = vst.msk [vmem:[#allocation2 + $0x10] sm:$0xc] %vm224_vm1, %v273_v16  ;;  %v286_v19 = vrot.slane %v1813_v17, 2 }
  0x21   : > { %v293_v21 = vrot.slane %v1814_v18, 2  ;;  %298 = vst.msk [vmem:[#allocation2 + $0x18] sm:$0xc] %vm224_vm1, %v1577_v20  ;;  %v1815_v22 = vld [vmem:[%s1997_s23 + $0x14] ss:$0 sps:$4 sm:$0xcc]  }
  0x22   : > { %v2032_v23 = vld [vmem:[#allocation2] sm:$0xff]  ;;  %288 = vst.msk [vmem:[#allocation2 + $0x10] sm:$0xc0] %vm241_vm3, %v286_v19  ;;  %v1816_v24 = vld [vmem:[%s1997_s23 + $0x1c] ss:$0 sps:$4 sm:$0xcc]  }
  0x23   : > { %325 = vrot.lane.b32.xlu0 %v2032_v23, %s1935_s24  ;;  %296 = vst.msk [vmem:[#allocation2 + $0x18] sm:$0x3] %vm215_vm0, %v293_v21  ;;  %v303_v25 = vrot.slane %v1815_v22, 6 }
  0x24   : > { %311 = vst.msk [vmem:[#allocation2 + $0x18] sm:$0xc0] %vm241_vm3, %v1816_v24 }
  0x25   : > { %v2039_v26 = vld [vmem:[#allocation2 + $0x8] sm:$0xff]  ;;  %305 = vst.msk [vmem:[#allocation2 + $0x18] sm:$0x30] %vm232_vm2, %v303_v25 }
  0x27   : > { %376 = vrot.lane.b32.xlu0 %v2039_v26, %s1935_s24 }
  0x29   : > { %v2043_v27 = vld [vmem:[#allocation2 + $0x10] sm:$0xff] }
  0x2a   : > { %426 = vrot.lane.b32.xlu1 %v2043_v27, %s1935_s24 }
  0x2c   : > { %v2046_v28 = vld [vmem:[#allocation2 + $0x18] sm:$0xff] }
  0x2e   : > { %476 = vrot.lane.b32.xlu1 %v2046_v28, %s1935_s24 }
  0x95   : > { %v326_v29 = vpop.permute.xlu0 %325 }
  0x96   : > { %v332_v30 = vsel %vm327_vm5, %v326_v29, 0 }
  0x97   : > { %1662 = vmatpush3.bf16.xpose.msra.mxu0 %v332_v30 }
  0x98   : > { %1673 = vmatprep.subr.bf16.mxu0 %v1933_v6 }
  0x99   : > { %v377_v31 = vpop.permute.xlu0 %376 }
  0x9a   : > { %v382_v32 = vsel %vm327_vm5, %v377_v31, 0 }
  0x9b   : > { %1668 = vmatpush3.bf16.xpose.msra.mxu1 %v382_v32 }
  0x9c   : > { %v427_v33 = vpop.permute.xlu1 %426  ;;  %1679 = vmatprep.subr.bf16.mxu1 %v1933_v6 }
  0x9d   : > { %v432_v34 = vsel %vm327_vm5, %v427_v33, 0 }
  0x9e   : > { %1664 = vmatmul.mubr.msk.bf16.vlgmr.msra.gmra.mrb[0].mxu0 %vm327_vm5, %v2032_v23 }
  0x9f   : > { %1674 = vmatpush3.bf16.xpose.msra.mxu0 %v432_v34  ;;  %1675 = vmatprep.mubr.msk.bf16.mxu0 %vm1934_vm4, %v1933_v6 }
  0xa0   : > { %v477_v35 = vpop.permute.xlu1 %476  ;;  %1685 = vmatprep.subr.bf16.mxu0 %v1933_v6 }
  0xa1   : > { %v482_v36 = vsel %vm327_vm5, %v477_v35, 0 }
  0xa2   : > { %1670 = vmatmul.mubr.msk.bf16.vlgmr.msra.gmra.mrb[0].mxu1 %vm327_vm5, %v2039_v26 }
  0xa3   : > { %1680 = vmatpush3.bf16.xpose.msra.mxu1 %v482_v36  ;;  %1681 = vmatprep.mubr.msk.bf16.mxu1 %vm1934_vm4, %v1933_v6 }
  0xa4   : > { %1691 = vmatprep.subr.bf16.mxu1 %v1933_v6 }
  0xa6   : > { %1676 = vmatmul.mubr.msk.bf16.vlgmr.msra.gmra.mrb[4].mxu0 %vm327_vm5, %v2043_v27 }
  0xa7   : > { %1687 = vmatprep.mubr.msk.bf16.mxu0 %vm1934_vm4, %v1933_v6 }
  0xaa   : > { %1682 = vmatmul.mubr.msk.bf16.vlgmr.msra.gmra.mrb[4].mxu1 %vm327_vm5, %v2046_v28 }
  0xab   : > { %1693 = vmatprep.mubr.msk.bf16.mxu1 %vm1934_vm4, %v1933_v6 }
 0x171   : > { %v368_v38 = vpop.f32.mrb[0].mxu0 }
 0x172   : > { %v369_v40 = vadd.f32 %v368_v38, %v2080_v37  ;;  %v1665_v41 = vpop.f32.mrb[1].mxu0 }
 0x173   : > { %v371_v42 = vpop.f32.mrb[2].mxu0 }
 0x174   : > { %v372_v44 = vadd.f32 %v371_v42, %v2083_v39  ;;  %v1666_v45 = vpop.f32.mrb[3].mxu0  ;;  %v526_v46 = vsel %vm525_vm6, %v369_v40, -inf }
 0x175   : > { %527 = vmax.xlane.f32.xlu0 %v526_v46  ;;  %v418_v47 = vpop.f32.mrb[0].mxu1 }
 0x176   : > { %v419_v49 = vadd.f32 %v418_v47, %v2087_v43  ;;  %v1671_v50 = vpop.f32.mrb[1].mxu1  ;;  %v529_v51 = vsel %vm525_vm6, %v372_v44, -inf }
 0x177   : > { %530 = vmax.xlane.f32.xlu1 %v529_v51  ;;  %v421_v52 = vpop.f32.mrb[2].mxu1 }
 0x178   : > { %v422_v54 = vadd.f32 %v421_v52, %v2092_v48  ;;  %v1672_v55 = vpop.f32.mrb[3].mxu1  ;;  %v532_v56 = vsel %vm525_vm6, %v419_v49, -inf }
 0x179   : > { %v468_v57 = vpop.f32.mrb[4].mxu0  ;;  %533 = vmax.xlane.f32.xlu0 %v532_v56 }
 0x17a   : > { %v469_v59 = vadd.f32 %v468_v57, %v2097_v53  ;;  %v1677_v60 = vpop.f32.mrb[5].mxu0  ;;  %v535_v2 = vsel %vm525_vm6, %v422_v54, -inf }
 0x17b   : > { %v471_v61 = vpop.f32.mrb[6].mxu0 }
 0x17c   : > { %v472_v63 = vadd.f32 %v471_v61, %v2102_v58  ;;  %v1678_v0 = vpop.f32.mrb[7].mxu0  ;;  %v538_v1 = vsel %vm525_vm6, %v469_v59, -inf }
 0x17d   : > { %539 = vmax.xlane.f32.xlu1 %v538_v1  ;;  %536 = vmax.xlane.f32.xlu0 %v535_v2  ;;  %v518_v3 = vpop.f32.mrb[4].mxu1 }
 0x17e   : > { %v519_v5 = vadd.f32 %v518_v3, %v2106_v62  ;;  %v1683_v7 = vpop.f32.mrb[5].mxu1  ;;  %v541_v11 = vsel %vm525_vm6, %v472_v63, -inf }
 0x17f   : > { %v521_v8 = vpop.f32.mrb[6].mxu1 }
 0x180   : > { %v522_v9 = vadd.f32 %v521_v8, %v2112_v4  ;;  %v1684_v10 = vpop.f32.mrb[7].mxu1  ;;  %v544_v12 = vsel %vm525_vm6, %v519_v5, -inf }
 0x181   : > { %542 = vmax.xlane.f32.xlu0 %v541_v11  ;;  %545 = vmax.xlane.f32.xlu1 %v544_v12 }
 0x182   : > { %v547_v13 = vsel %vm525_vm6, %v522_v9, -inf }
 0x185   : > { %548 = vmax.xlane.f32.xlu0 %v547_v13 }
 0x192   : > { %618 = vrot.lane.b32.xlu1 %v2032_v23, %s1936_s29 }
 0x196   : > { %712 = vrot.lane.b32.xlu1 %v2043_v27, %s1936_s29 }
 0x19a   : > { %759 = vrot.lane.b32.xlu1 %v2046_v28, %s1936_s29 }
 0x19b   : > { %665 = vrot.lane.b32.xlu0 %v2039_v26, %s1936_s29 }
 0x202   : > { %v528_v14 = vpop.xlane.xlu0 %527 }
 0x203   : > { %v550_v15 = vsub.f32 %v369_v40, %v528_v14 }
 0x204   : > { %v531_v16 = vpop.xlane.xlu1 %530 }
 0x205   : > { %v558_v17 = vmul.f32 1.442695, %v550_v15  ;;  %v551_v18 = vsub.f32 %v372_v44, %v531_v16 }
 0x206   : > { %v534_v19 = vpop.xlane.xlu0 %533 }
 0x207   : > { %1829 = vpow2.f32 %v558_v17  ;;  %v560_v20 = vmul.f32 1.442695, %v551_v18  ;;  %v552_v21 = vsub.f32 %v419_v49, %v534_v19 }
 0x209   : > { %1831 = vpow2.f32 %v560_v20  ;;  %v562_v22 = vmul.f32 1.442695, %v552_v21 }
 0x20a   : > { %v540_v24 = vpop.xlane.xlu1 %539  ;;  %v537_v25 = vpop.xlane.xlu0 %536 }
 0x20b   : > { %1833 = vpow2.f32 %v562_v22  ;;  %v554_v29 = vsub.f32 %v469_v59, %v540_v24  ;;  %v553_v30 = vsub.f32 %v422_v54, %v537_v25 }
 0x20d   : > { %v566_v31 = vmul.f32 1.442695, %v554_v29  ;;  %v564_v32 = vmul.f32 1.442695, %v553_v30 }
 0x20e   : > { %v546_v33 = vpop.xlane.xlu1 %545  ;;  %v543_v34 = vpop.xlane.xlu0 %542 }
 0x20f   : > { %1835 = vpow2.f32 %v566_v31  ;;  %v556_v35 = vsub.f32 %v519_v5, %v546_v33  ;;  %v555_v36 = vsub.f32 %v472_v63, %v543_v34 }
 0x210   : > { %1837 = vpow2.f32 %v564_v32 }
 0x211   : > { %v2123_v38 = vpop.eup %1829  ;;  %v570_v40 = vmul.f32 1.442695, %v556_v35  ;;  %v568_v41 = vmul.f32 1.442695, %v555_v36 }
 0x212   : > { %v549_v42 = vpop.xlane.xlu0 %548  ;;  %v574_v44 = vsel %vm525_vm6, %v2123_v38, 0.0  ;;  %v619_v45 = vpop.permute.xlu1 %618 }
 0x213   : > { %v1832_v46 = vpop.eup %1831  ;;  %1839 = vpow2.f32 %v570_v40  ;;  %v557_v47 = vsub.f32 %v522_v9, %v549_v42  ;;  %575 = vadd.xlane.f32.xlu1 %v574_v44  ;;  %1686 = vmatpush3.bf16.msra.mxu0 %v619_v45 }
 0x214   : > { %1841 = vpow2.f32 %v568_v41  ;;  %v577_v49 = vsel %vm525_vm6, %v1832_v46, 0.0  ;;  %1697 = vmatprep.subr.bf16.mxu0 %v1933_v6 }
 0x215   : > { %v2129_v50 = vpop.eup %1833  ;;  %v572_v51 = vmul.f32 1.442695, %v557_v47  ;;  %578 = vadd.xlane.f32.xlu0 %v577_v49 }
 0x216   : > { %v580_v52 = vsel %vm525_vm6, %v2129_v50, 0.0  ;;  %v666_v54 = vpop.permute.xlu0 %665  ;;  %v713_v3 = vpop.permute.xlu1 %712 }
 0x217   : > { %1843 = vpow2.f32 %v572_v51  ;;  %581 = vadd.xlane.f32.xlu1 %v580_v52  ;;  %1692 = vmatpush3.bf16.msra.mxu1 %v666_v54 }
 0x218   : > { %1703 = vmatprep.subr.bf16.mxu1 %v1933_v6 }
 0x219   : > { %v1836_v55 = vpop.eup %1835 }
 0x21a   : > { %v1838_v56 = vpop.eup %1837  ;;  %v586_v57 = vsel %vm525_vm6, %v1836_v55, 0.0  ;;  %v760_v5 = vpop.permute.xlu1 %759 }
 0x21b   : > { %587 = vadd.xlane.f32.xlu1 %v586_v57  ;;  %v583_v59 = vsel %vm525_vm6, %v1838_v56, 0.0 }
 0x21c   : > { %584 = vadd.xlane.f32.xlu0 %v583_v59 }
 0x21d   : > { %v2136_v60 = vpop.eup %1839 }
 0x21e   : > { %v1842_v61 = vpop.eup %1841  ;;  %v592_v63 = vsel %vm525_vm6, %v2136_v60, 0.0 }
 0x21f   : > { %593 = vadd.xlane.f32.xlu1 %v592_v63  ;;  %v589_v0 = vsel %vm525_vm6, %v1842_v61, 0.0 }
 0x220   : > { %590 = vadd.xlane.f32.xlu0 %v589_v0 }
 0x221   : > { %v1844_v1 = vpop.eup %1843 }
 0x222   : > { %v595_v2 = vsel %vm525_vm6, %v1844_v1, 0.0 }
 0x224   : > { %596 = vadd.xlane.f32.xlu0 %v595_v2 }
 0x230   : > { %873 = vrot.lane.b32.xlu1 %v2039_v26, %s1937_s30 }
 0x234   : > { %871 = vrot.lane.b32.xlu1 %v2039_v26, %s1938_s3 }
 0x238   : > { %977 = vrot.lane.b32.xlu1 %v2046_v28, %s1937_s30 }
 0x23a   : > { %821 = vrot.lane.b32.xlu0 %v2032_v23, %s1937_s30 }
 0x23c   : > { %975 = vrot.lane.b32.xlu1 %v2046_v28, %s1938_s3 }
 0x23e   : > { %819 = vrot.lane.b32.xlu0 %v2032_v23, %s1938_s3 }
 0x242   : > { %925 = vrot.lane.b32.xlu0 %v2043_v27, %s1937_s30 }
 0x246   : > { %923 = vrot.lane.b32.xlu0 %v2043_v27, %s1938_s3 }
 0x2a0   : > { %v576_v7 = vpop.xlane.xlu1 %575 }
 0x2a1   : > { %1845 = vrcp.f32 %v576_v7 }
 0x2a2   : > { %v579_v8 = vpop.xlane.xlu0 %578 }
 0x2a3   : > { %1847 = vrcp.f32 %v579_v8 }
 0x2a4   : > { %v582_v9 = vpop.xlane.xlu1 %581 }
 0x2a5   : > { %1849 = vrcp.f32 %v582_v9 }
 0x2a8   : > { %v588_v10 = vpop.xlane.xlu1 %587 }
 0x2a9   : > { %v585_v11 = vpop.xlane.xlu0 %584 }
 0x2aa   : > { %1851 = vrcp.f32 %v585_v11 }
 0x2ab   : > { %v1846_v12 = vpop.eup %1845  ;;  %1853 = vrcp.f32 %v588_v10 }
 0x2ac   : > { %v594_v14 = vpop.xlane.xlu1 %593  ;;  %v606_v16 = vmul.f32 %v1846_v12, %v2123_v38 }
 0x2ad   : > { %v1848_v13 = vpop.eup %1847  ;;  %v591_v15 = vpop.xlane.xlu0 %590 }
 0x2ae   : > { %v607_v17 = vmul.f32 %v1848_v13, %v1832_v46  ;;  %1855 = vrcp.f32 %v591_v15 }
 0x2af   : > { %1857 = vrcp.f32 %v594_v14  ;;  %v1850_v20 = vpop.eup %1849 }
 0x2b0   : > { %v614_v18 = vpack.c.bf16 %v607_v17, %v606_v16  ;;  %v608_v22 = vmul.f32 %v1850_v20, %v2129_v50  ;;  %v874_v34 = vpop.permute.xlu1 %873 }
 0x2b1   : > { %v597_v19 = vpop.xlane.xlu0 %596  ;;  %v879_v47 = vsel %vm327_vm5, %v874_v34, 0 }
 0x2b2   : > { %1859 = vrcp.f32 %v597_v19  ;;  %1688 = vmatmul.mubr.msk.bf16.vlgmr.msra.gmra.mrb[8].mxu0 %vm525_vm6, %v614_v18 }
 0x2b3   : > { %1698 = vmatpush3.bf16.msra.mxu0 %v713_v3  ;;  %1699 = vmatprep.mubr.msk.bf16.mxu0 %vm1934_vm4, %v1933_v6 }
 0x2b4   : > { %v1852_v21 = vpop.eup %1851  ;;  %1709 = vmatprep.subr.bf16.mxu0 %v1933_v6  ;;  %v872_v46 = vpop.permute.xlu1 %871 }
 0x2b5   : > { %v609_v24 = vmul.f32 %v1852_v21, %v1838_v56  ;;  %v822_v25 = vpop.permute.xlu0 %821  ;;  %v1854_v29 = vpop.eup %1853 }
 0x2b6   : > { %v610_v32 = vmul.f32 %v1854_v29, %v1836_v55  ;;  %v827_v38 = vsel %vm327_vm5, %v822_v25, 0 }
 0x2b7   : > { %v615_v30 = vpack.c.bf16 %v609_v24, %v608_v22 }
 0x2b8   : > { %v1856_v31 = vpop.eup %1855  ;;  %v978_v51 = vpop.permute.xlu1 %977 }
 0x2b9   : > { %v611_v33 = vmul.f32 %v1856_v31, %v1842_v61  ;;  %1694 = vmatmul.mubr.msk.bf16.vlgmr.msra.gmra.mrb[8].mxu1 %vm525_vm6, %v615_v30  ;;  %v1858_v35 = vpop.eup %1857  ;;  %v820_v36 = vpop.permute.xlu0 %819  ;;  %v983_v52 = vsel %vm327_vm5, %v978_v51, 0 }
 0x2ba   : > { %1704 = vmatpush3.bf16.msra.mxu1 %v760_v5  ;;  %1705 = vmatprep.mubr.msk.bf16.mxu1 %vm1934_vm4, %v1933_v6  ;;  %v612_v42 = vmul.f32 %v1858_v35, %v2136_v60 }
 0x2bb   : > { %v616_v40 = vpack.c.bf16 %v611_v33, %v610_v32  ;;  %1715 = vmatprep.subr.bf16.mxu1 %v1933_v6 }
 0x2bc   : > { %v1860_v41 = vpop.eup %1859  ;;  %v976_v55 = vpop.permute.xlu1 %975 }
 0x2bd   : > { %v613_v44 = vmul.f32 %v1860_v41, %v1844_v1  ;;  %1700 = vmatmul.mubr.msk.bf16.vlgmr.msra.gmra.mrb[12].mxu0 %vm525_vm6, %v616_v40  ;;  %v926_v49 = vpop.permute.xlu0 %925 }
 0x2be   : > { %1710 = vmatpush3.bf16.xpose.msra.mxu0 %v827_v38  ;;  %1711 = vmatprep.mubr.msk.bf16.mxu0 %vm1934_vm4, %v1933_v6  ;;  %v931_v50 = vsel %vm327_vm5, %v926_v49, 0 }
 0x2bf   : > { %v617_v45 = vpack.c.bf16 %v613_v44, %v612_v42  ;;  %1721 = vmatprep.subr.bf16.mxu0 %v1933_v6 }
 0x2c1   : > { %1706 = vmatmul.mubr.msk.bf16.vlgmr.msra.gmra.mrb[12].mxu1 %vm525_vm6, %v617_v45  ;;  %v924_v54 = vpop.permute.xlu0 %923 }
 0x2c2   : > { %1717 = vmatprep.mubr.msk.bf16.mxu1 %vm1934_vm4, %v1933_v6 }
 0x2c3   : > { %1716 = vmatpush3.bf16.xpose.msra.mxu1 %v879_v47 }
 0x2c4   : > { %1727 = vmatprep.subr.bf16.mxu1 %v1933_v6 }
 0x2c5   : > { %1712 = vmatmul.mubr.msk.bf16.vlgmr.msra.gmra.mrb[16].mxu0 %vm327_vm5, %v820_v36 }
 0x2c6   : > { %1722 = vmatpush3.bf16.xpose.msra.mxu0 %v931_v50  ;;  %1723 = vmatprep.mubr.msk.bf16.mxu0 %vm1934_vm4, %v1933_v6 }
 0x2c7   : > { %1733 = vmatprep.subr.bf16.mxu0 %v1933_v6 }
 0x2ca   : > { %1718 = vmatmul.mubr.msk.bf16.vlgmr.msra.gmra.mrb[16].mxu1 %vm327_vm5, %v872_v46 }
 0x2cb   : > { %1728 = vmatpush3.bf16.xpose.msra.mxu1 %v983_v52  ;;  %1729 = vmatprep.mubr.msk.bf16.mxu1 %vm1934_vm4, %v1933_v6 }
 0x2cc   : > { %1739 = vmatprep.subr.bf16.mxu1 %v1933_v6 }
 0x2cd   : > { %1724 = vmatmul.mubr.msk.bf16.vlgmr.msra.gmra.mrb[20].mxu0 %vm327_vm5, %v924_v54 }
 0x2ce   : > { %1735 = vmatprep.mubr.msk.bf16.mxu0 %vm1934_vm4, %v1933_v6 }
 0x2d2   : > { %1730 = vmatmul.mubr.msk.bf16.vlgmr.msra.gmra.mrb[20].mxu1 %vm327_vm5, %v976_v55 }
 0x2d3   : > { %1741 = vmatprep.mubr.msk.bf16.mxu1 %vm1934_vm4, %v1933_v6 }
 0x385   : > { %v658_v56 = vpop.f32.mrb[8].mxu0 }
 0x386   : > { %v1689_v57 = vpop.f32.mrb[9].mxu0 }
 0x387   : > { %v661_v59 = vpop.f32.mrb[10].mxu0 }
 0x388   : > { %v806_v60 = vpack.c.bf16 %v661_v59, %v658_v56  ;;  %v1690_v61 = vpop.f32.mrb[11].mxu0 }
 0x38a   : > { %810 = vst.msk [vmem:[#allocation3] sm:$0xff] %vm327_vm5, %v806_v60 }
 0x38c   : > { %v705_v63 = vpop.f32.mrb[8].mxu1 }
 0x38d   : > { %v1695_v0 = vpop.f32.mrb[9].mxu1 }
 0x38e   : > { %v708_v1 = vpop.f32.mrb[10].mxu1 }
 0x38f   : > { %v807_v2 = vpack.c.bf16 %v708_v1, %v705_v63  ;;  %v1696_v3 = vpop.f32.mrb[11].mxu1 }
 0x390   : > { %v752_v5 = vpop.f32.mrb[12].mxu0 }
 0x391   : > { %811 = vst.msk [vmem:[#allocation3 + $0x8] sm:$0xff] %vm327_vm5, %v807_v2  ;;  %v1701_v7 = vpop.f32.mrb[13].mxu0 }
 0x392   : > { %v755_v8 = vpop.f32.mrb[14].mxu0 }
 0x393   : > { %v808_v9 = vpack.c.bf16 %v755_v8, %v752_v5  ;;  %v1702_v10 = vpop.f32.mrb[15].mxu0 }
 0x394   : > { %v799_v11 = vpop.f32.mrb[12].mxu1 }
 0x395   : > { %812 = vst.msk [vmem:[#allocation3 + $0x10] sm:$0xff] %vm327_vm5, %v808_v9  ;;  %v1707_v12 = vpop.f32.mrb[13].mxu1 }
 0x396   : > { %v802_v13 = vpop.f32.mrb[14].mxu1 }
 0x397   : > { %v809_v14 = vpack.c.bf16 %v802_v13, %v799_v11  ;;  %v1708_v15 = vpop.f32.mrb[15].mxu1 }
 0x398   : > { %v863_v16 = vpop.f32.mrb[16].mxu0 }
 0x399   : > { %813 = vst.msk [vmem:[#allocation3 + $0x18] sm:$0xff] %vm327_vm5, %v809_v14  ;;  %v864_v17 = vadd.f32 %v863_v16, %v2080_v37  ;;  %v1713_v18 = vpop.f32.mrb[17].mxu0 }
 0x39a   : > { %v866_v19 = vpop.f32.mrb[18].mxu0 }
 0x39b   : > { %v867_v20 = vadd.f32 %v866_v19, %v2083_v39  ;;  %v1714_v21 = vpop.f32.mrb[19].mxu0  ;;  %v1026_v22 = vsel %vm525_vm6, %v864_v17, -inf }
 0x39c   : > { %1027 = vmax.xlane.f32.xlu0 %v1026_v22 }
 0x39d   : > { %v915_v24 = vpop.f32.mrb[16].mxu1  ;;  %v1029_v25 = vsel %vm525_vm6, %v867_v20, -inf }
 0x39e   : > { %v916_v29 = vadd.f32 %v915_v24, %v2087_v43  ;;  %v1719_v30 = vpop.f32.mrb[17].mxu1  ;;  %1030 = vmax.xlane.f32.xlu1 %v1029_v25 }
 0x39f   : > { %v918_v31 = vpop.f32.mrb[18].mxu1 }
 0x3a0   : > { %v919_v32 = vadd.f32 %v918_v31, %v2092_v48  ;;  %v1720_v33 = vpop.f32.mrb[19].mxu1  ;;  %v1032_v37 = vsel %vm525_vm6, %v916_v29, -inf  ;;  %v967_v34 = vpop.f32.mrb[20].mxu0 }
 0x3a1   : > { %1033 = vmax.xlane.f32.xlu0 %v1032_v37  ;;  %v968_v39 = vadd.f32 %v967_v34, %v2097_v53  ;;  %v1725_v35 = vpop.f32.mrb[21].mxu0 }
 0x3a2   : > { %v970_v36 = vpop.f32.mrb[22].mxu0  ;;  %v1035_v43 = vsel %vm525_vm6, %v919_v32, -inf }
 0x3a3   : > { %v1726_v38 = vpop.f32.mrb[23].mxu0  ;;  %v1038_v40 = vsel %vm525_vm6, %v968_v39, -inf  ;;  %v971_v41 = vadd.f32 %v970_v36, %v2102_v58 }
 0x3a4   : > { %1039 = vmax.xlane.f32.xlu1 %v1038_v40 }
 0x3a5   : > { %v1019_v42 = vpop.f32.mrb[20].mxu1  ;;  %1036 = vmax.xlane.f32.xlu0 %v1035_v43  ;;  %v1041_v49 = vsel %vm525_vm6, %v971_v41, -inf }
 0x3a6   : > { %v1020_v48 = vadd.f32 %v1019_v42, %v2106_v62  ;;  %v1731_v44 = vpop.f32.mrb[21].mxu1 }
 0x3a7   : > { %v1022_v45 = vpop.f32.mrb[22].mxu1 }
 0x3a8   : > { %v1023_v46 = vadd.f32 %v1022_v45, %v2112_v4  ;;  %v1732_v47 = vpop.f32.mrb[23].mxu1  ;;  %v1044_v53 = vsel %vm525_vm6, %v1020_v48, -inf }
 0x3a9   : > { %1045 = vmax.xlane.f32.xlu1 %v1044_v53  ;;  %1042 = vmax.xlane.f32.xlu0 %v1041_v49 }
 0x3aa   : > { %v1047_v58 = vsel %vm525_vm6, %v1023_v46, -inf }
 0x3ad   : > { %1048 = vmax.xlane.f32.xlu0 %v1047_v58 }
 0x3ba   : > { %1118 = vrot.lane.b32.xlu1 %v2032_v23, %s1939_s4 }
 0x429   : > { %v1028_v50 = vpop.xlane.xlu0 %1027 }
 0x42a   : > { %v1050_v62 = vsub.f32 %v864_v17, %v1028_v50 }
 0x42b   : > { %v1031_v51 = vpop.xlane.xlu1 %1030 }
 0x42c   : > { %v1058_v52 = vmul.f32 1.442695, %v1050_v62  ;;  %v1051_v54 = vsub.f32 %v867_v20, %v1031_v51 }
 0x42e   : > { %1861 = vpow2.f32 %v1058_v52  ;;  %v1060_v4 = vmul.f32 1.442695, %v1051_v54  ;;  %v1034_v55 = vpop.xlane.xlu0 %1033 }
 0x42f   : > { %v1052_v56 = vsub.f32 %v916_v29, %v1034_v55 }
 0x430   : > { %1863 = vpow2.f32 %v1060_v4 }
 0x431   : > { %v1062_v57 = vmul.f32 1.442695, %v1052_v56  ;;  %v1040_v59 = vpop.xlane.xlu1 %1039 }
 0x432   : > { %v1054_v60 = vsub.f32 %v968_v39, %v1040_v59  ;;  %v1037_v61 = vpop.xlane.xlu0 %1036 }
 0x433   : > { %1865 = vpow2.f32 %v1062_v57  ;;  %v1053_v63 = vsub.f32 %v919_v32, %v1037_v61 }
 0x434   : > { %v1066_v0 = vmul.f32 1.442695, %v1054_v60 }
 0x435   : > { %v1064_v1 = vmul.f32 1.442695, %v1053_v63 }
 0x436   : > { %1867 = vpow2.f32 %v1066_v0  ;;  %v1046_v23 = vpop.xlane.xlu1 %1045  ;;  %v1043_v2 = vpop.xlane.xlu0 %1042 }
 0x437   : > { %1869 = vpow2.f32 %v1064_v1  ;;  %v1056_v3 = vsub.f32 %v1020_v48, %v1046_v23  ;;  %v1055_v5 = vsub.f32 %v971_v41, %v1043_v2 }
 0x438   : > { %v1862_v7 = vpop.eup %1861 }
 0x439   : > { %v1070_v8 = vmul.f32 1.442695, %v1056_v3  ;;  %v1068_v9 = vmul.f32 1.442695, %v1055_v5  ;;  %v1074_v10 = vsel %vm525_vm6, %v1862_v7, 0.0 }
 0x43a   : > { %v1864_v11 = vpop.eup %1863  ;;  %v1049_v12 = vpop.xlane.xlu0 %1048  ;;  %1075 = vadd.xlane.f32.xlu1 %v1074_v10 }
 0x43b   : > { %v1119_v13 = vpop.permute.xlu1 %1118  ;;  %1871 = vpow2.f32 %v1070_v8  ;;  %v1057_v14 = vsub.f32 %v1023_v46, %v1049_v12  ;;  %v1077_v15 = vsel %vm525_vm6, %v1864_v11, 0.0 }
 0x43c   : > { %1734 = vmatpush3.bf16.msra.mxu0 %v1119_v13  ;;  %1873 = vpow2.f32 %v1068_v9  ;;  %1078 = vadd.xlane.f32.xlu0 %v1077_v15 }
 0x43d   : > { %1745 = vmatprep.subr.bf16.mxu0 %v1933_v6  ;;  %v1866_v16 = vpop.eup %1865  ;;  %v1072_v17 = vmul.f32 1.442695, %v1057_v14 }
 0x43e   : > { %v1080_v18 = vsel %vm525_vm6, %v1866_v16, 0.0 }
 0x43f   : > { %1875 = vpow2.f32 %v1072_v17  ;;  %1081 = vadd.xlane.f32.xlu1 %v1080_v18 }
 0x440   : > { %v1868_v19 = vpop.eup %1867 }
 0x441   : > { %v1870_v20 = vpop.eup %1869  ;;  %v1086_v21 = vsel %vm525_vm6, %v1868_v19, 0.0 }
 0x442   : > { %v1083_v22 = vsel %vm525_vm6, %v1870_v20, 0.0 }
 0x443   : > { %1087 = vadd.xlane.f32.xlu1 %v1086_v21  ;;  %1084 = vadd.xlane.f32.xlu0 %v1083_v22 }
 0x445   : > { %v1872_v24 = vpop.eup %1871 }
 0x446   : > { %v1874_v25 = vpop.eup %1873  ;;  %v1092_v29 = vsel %vm525_vm6, %v1872_v24, 0.0 }
 0x447   : > { %1093 = vadd.xlane.f32.xlu1 %v1092_v29  ;;  %v1089_v30 = vsel %vm525_vm6, %v1874_v25, 0.0 }
 0x448   : > { %1090 = vadd.xlane.f32.xlu0 %v1089_v30 }
 0x449   : > { %v1876_v31 = vpop.eup %1875 }
 0x44a   : > { %v1095_v32 = vsel %vm525_vm6, %v1876_v31, 0.0 }
 0x44c   : > { %1096 = vadd.xlane.f32.xlu0 %v1095_v32 }
 0x458   : > { %1212 = vrot.lane.b32.xlu1 %v2043_v27, %s1939_s4 }
 0x45c   : > { %1259 = vrot.lane.b32.xlu1 %v2046_v28, %s1939_s4 }
 0x462   : > { %1165 = vrot.lane.b32.xlu0 %v2039_v26, %s1939_s4 }
 0x4c7   : > { %v1076_v33 = vpop.xlane.xlu1 %1075 }
 0x4c8   : > { %1877 = vrcp.f32 %v1076_v33 }
 0x4c9   : > { %v1079_v37 = vpop.xlane.xlu0 %1078 }
 0x4ca   : > { %1879 = vrcp.f32 %v1079_v37 }
 0x4cc   : > { %v1082_v34 = vpop.xlane.xlu1 %1081 }
 0x4cd   : > { %1881 = vrcp.f32 %v1082_v34 }
 0x4d0   : > { %v1088_v39 = vpop.xlane.xlu1 %1087  ;;  %v1085_v35 = vpop.xlane.xlu0 %1084 }
 0x4d1   : > { %1883 = vrcp.f32 %v1085_v35 }
 0x4d2   : > { %v1878_v36 = vpop.eup %1877  ;;  %1885 = vrcp.f32 %v1088_v39 }
 0x4d3   : > { %v1106_v27 = vmul.f32 %v1878_v36, %v1862_v7 }
 0x4d4   : > { %v1880_v38 = vpop.eup %1879  ;;  %v1094_v40 = vpop.xlane.xlu1 %1093 }
 0x4d5   : > { %v1107_v41 = vmul.f32 %v1880_v38, %v1864_v11  ;;  %v1091_v43 = vpop.xlane.xlu0 %1090 }
 0x4d6   : > { %1887 = vrcp.f32 %v1091_v43 }
 0x4d7   : > { %v1114_v28 = vpack.c.bf16 %v1107_v41, %v1106_v27  ;;  %1889 = vrcp.f32 %v1094_v40  ;;  %v1882_v48 = vpop.eup %1881 }
 0x4d8   : > { %v1213_v26 = vpop.permute.xlu1 %1212  ;;  %v1108_v45 = vmul.f32 %v1882_v48, %v1866_v16 }
 0x4d9   : > { %v1097_v42 = vpop.xlane.xlu0 %1096  ;;  %1736 = vmatmul.mubr.msk.bf16.vlgmr.msra.gmra.mrb[24].mxu0 %vm525_vm6, %v1114_v28 }
 0x4da   : > { %1891 = vrcp.f32 %v1097_v42  ;;  %1746 = vmatpush3.bf16.msra.mxu0 %v1213_v26  ;;  %1747 = vmatprep.mubr.msk.bf16.mxu0 %vm1934_vm4, %v1933_v6 }
 0x4db   : > { %v1884_v44 = vpop.eup %1883 }
 0x4dc   : > { %v1109_v46 = vmul.f32 %v1884_v44, %v1870_v20  ;;  %v1886_v53 = vpop.eup %1885  ;;  %v1260_v58 = vpop.permute.xlu1 %1259 }
 0x4dd   : > { %v1166_v47 = vpop.permute.xlu0 %1165  ;;  %v1110_v62 = vmul.f32 %v1886_v53, %v1868_v19 }
 0x4de   : > { %1740 = vmatpush3.bf16.msra.mxu1 %v1166_v47  ;;  %v1115_v49 = vpack.c.bf16 %v1109_v46, %v1108_v45 }
 0x4df   : > { %1751 = vmatprep.subr.bf16.mxu1 %v1933_v6 }
 0x4e0   : > { %v1888_v50 = vpop.eup %1887 }
 0x4e1   : > { %v1111_v51 = vmul.f32 %v1888_v50, %v1874_v25  ;;  %1742 = vmatmul.mubr.msk.bf16.vlgmr.msra.gmra.mrb[24].mxu1 %vm525_vm6, %v1115_v49  ;;  %v1890_v52 = vpop.eup %1889 }
 0x4e2   : > { %1752 = vmatpush3.bf16.msra.mxu1 %v1260_v58  ;;  %1753 = vmatprep.mubr.msk.bf16.mxu1 %vm1934_vm4, %v1933_v6  ;;  %v1112_v55 = vmul.f32 %v1890_v52, %v1872_v24 }
 0x4e3   : > { %v1116_v54 = vpack.c.bf16 %v1111_v51, %v1110_v62 }
 0x4e4   : > { %v1892_v4 = vpop.eup %1891 }
 0x4e5   : > { %v1113_v56 = vmul.f32 %v1892_v4, %v1876_v31  ;;  %1748 = vmatmul.mubr.msk.bf16.vlgmr.msra.gmra.mrb[28].mxu0 %vm525_vm6, %v1116_v54 }
 0x4e7   : > { %v1117_v57 = vpack.c.bf16 %v1113_v56, %v1112_v55 }
 0x4e9   : > { %1754 = vmatmul.mubr.msk.bf16.vlgmr.msra.gmra.mrb[28].mxu1 %vm525_vm6, %v1117_v57 }
 0x5ac   : > { %v1158_v59 = vpop.f32.mrb[24].mxu0 }
 0x5ad   : > { %v1737_v60 = vpop.f32.mrb[25].mxu0 }
 0x5ae   : > { %v1161_v61 = vpop.f32.mrb[26].mxu0 }
 0x5af   : > { %v1306_v63 = vpack.c.bf16 %v1161_v61, %v1158_v59  ;;  %v1738_v0 = vpop.f32.mrb[27].mxu0 }
 0x5b1   : > { %1314 = vrot.lane.b32.xlu0 %v1306_v63, %s1940_s5 }
 0x5b4   : > { %v1205_v1 = vpop.f32.mrb[24].mxu1 }
 0x5b5   : > { %v1743_v23 = vpop.f32.mrb[25].mxu1 }
 0x5b6   : > { %v1208_v2 = vpop.f32.mrb[26].mxu1 }
 0x5b7   : > { %v1307_v6 = vpack.c.bf16 %v1208_v2, %v1205_v1  ;;  %v1744_v3 = vpop.f32.mrb[27].mxu1 }
 0x5b8   : > { %v1252_v5 = vpop.f32.mrb[28].mxu0 }
 0x5b9   : > { %v1749_v7 = vpop.f32.mrb[29].mxu0  ;;  %1316 = vrot.lane.b32.xlu1 %v1307_v6, %s1940_s5 }
 0x5ba   : > { %v1255_v8 = vpop.f32.mrb[30].mxu0 }
 0x5bb   : > { %v1308_v9 = vpack.c.bf16 %v1255_v8, %v1252_v5  ;;  %v1750_v10 = vpop.f32.mrb[31].mxu0 }
 0x5bc   : > { %v1299_v11 = vpop.f32.mrb[28].mxu1 }
 0x5bd   : > { %1318 = vrot.lane.b32.xlu0 %v1308_v9, %s1940_s5  ;;  %v1755_v12 = vpop.f32.mrb[29].mxu1 }
 0x5be   : > { %v1302_v13 = vpop.f32.mrb[30].mxu1 }
 0x5bf   : > { %v1309_v14 = vpack.c.bf16 %v1302_v13, %v1299_v11  ;;  %v1756_v15 = vpop.f32.mrb[31].mxu1 }
 0x5c1   : > { %1320 = vrot.lane.b32.xlu1 %v1309_v14, %s1940_s5 }
 0x623   : > { %v1315_v16 = vpop.permute.xlu0 %1314 }
 0x624   : > { %1327 = vst.msk [vmem:[#allocation3] sm:$0xff] %vm1326_vm7, %v1315_v16 }
 0x62b   : > { %v1331_v17 = vld [vmem:[#allocation3] sm:$0x3]  ;;  %v1317_v18 = vpop.permute.xlu1 %1316  ;;  %v1818_v20 = vld [vmem:[#allocation3 + $0x4] ss:$0 sps:$4 sm:$0x33]  }
 0x62c   : > { %1333 = vst.msk [vmem:[%s2239_s8] sm:$0x3] %vm1332_vm8, %v1331_v17  ;;  %v1817_v19 = vld [vmem:[#allocation3] ss:$0 sps:$4 sm:$0xcc]  }
 0x62d   : > { %1328 = vst.msk [vmem:[#allocation3 + $0x8] sm:$0xff] %vm1326_vm7, %v1317_v18  ;;  %v1819_v21 = vld [vmem:[#allocation3 + $0x4] ss:$0 sps:$4 sm:$0xcc]   ;;  %v1599_v22 = vrot.slane %v1817_v19, 10 }
 0x62e   : > { %1602 = vst.msk [vmem:[%s2239_s8 + $0x10] sm:$0x3] %vm1332_vm8, %v1818_v20  ;;  %v1604_v24 = vrot.slane %v1819_v21, 10 }
 0x62f   : > { %v1319_v25 = vpop.permute.xlu0 %1318  ;;  %1600 = vst.msk [vmem:[%s2239_s8 + $0x8] sm:$0x3] %vm1332_vm8, %v1599_v22 }
 0x630   : > { %1329 = vst.msk [vmem:[#allocation3 + $0x10] sm:$0xff] %vm1326_vm7, %v1319_v25 }
 0x631   : > { %1605 = vst.msk [vmem:[%s2239_s8 + $0x18] sm:$0x3] %vm1332_vm8, %v1604_v24 }
 0x633   : > { %v1321_v30 = vpop.permute.xlu1 %1320 }
 0x634   : > { %v1820_v29 = vld [vmem:[#allocation3 + $0x8] ss:$0 sps:$4 sm:$0x33]   ;;  %v1368_v31 = vld [vmem:[#allocation3 + $0x8] sm:$0xc]  ;;  %1330 = vst.msk [vmem:[#allocation3 + $0x18] sm:$0xff] %vm1326_vm7, %v1321_v30 }
 0x635   : > { %v1364_v32 = vrot.slane %v1820_v29, 6  ;;  %1607 = vst.msk [vmem:[%s2239_s8 + $0x8] sm:$0xc] %vm1366_vm9, %v1368_v31  ;;  %v1821_v33 = vld [vmem:[#allocation3 + $0xc] ss:$0 sps:$4 sm:$0x33]  }
 0x636   : > { %v1822_v37 = vld [vmem:[#allocation3 + $0xc] ss:$0 sps:$4 sm:$0xcc]   ;;  %v1374_v34 = vrot.slane %v1821_v33, 6 }
 0x637   : > { %1367 = vst.msk [vmem:[%s2239_s8] sm:$0xc] %vm1366_vm9, %v1364_v32  ;;  %v1384_v39 = vld [vmem:[#allocation3 + $0x10] sm:$0x3]  ;;  %1611 = vst.msk [vmem:[%s2239_s8 + $0x18] sm:$0xc] %vm1366_vm9, %v1822_v37 }
 0x638   : > { %1385 = vst.msk [vmem:[%s2239_s8 + $0x4] sm:$0x3] %vm1332_vm8, %v1384_v39  ;;  %v1823_v35 = vld [vmem:[#allocation3 + $0x10] ss:$0 sps:$4 sm:$0xcc]  }
 0x639   : > { %1609 = vst.msk [vmem:[%s2239_s8 + $0x10] sm:$0xc] %vm1366_vm9, %v1374_v34  ;;  %v1824_v36 = vld [vmem:[#allocation3 + $0x14] ss:$0 sps:$4 sm:$0x33]   ;;  %v1613_v38 = vrot.slane %v1823_v35, 10 }
 0x63a   : > { %v1825_v40 = vld [vmem:[#allocation3 + $0x14] ss:$0 sps:$4 sm:$0xcc]   ;;  %1616 = vst.msk [vmem:[%s2239_s8 + $0x14] sm:$0x3] %vm1332_vm8, %v1824_v36 }
 0x63b   : > { %v1826_v27 = vld [vmem:[#allocation3 + $0x18] ss:$0 sps:$4 sm:$0x33]   ;;  %1614 = vst.msk [vmem:[%s2239_s8 + $0xc] sm:$0x3] %vm1332_vm8, %v1613_v38  ;;  %v1618_v41 = vrot.slane %v1825_v40, 10 }
 0x63c   : > { %v1416_v43 = vld [vmem:[#allocation3 + $0x18] sm:$0xc]  ;;  %v1413_v28 = vrot.slane %v1826_v27, 6  ;;  %v1827_v26 = vld [vmem:[#allocation3 + $0x1c] ss:$0 sps:$4 sm:$0x33]  }
 0x63d   : > { %1621 = vst.msk [vmem:[%s2239_s8 + $0xc] sm:$0xc] %vm1366_vm9, %v1416_v43  ;;  %v1828_v42 = vld [vmem:[#allocation3 + $0x1c] ss:$0 sps:$4 sm:$0xcc]   ;;  %v1422_v48 = vrot.slane %v1827_v26, 6 }
 0x63e   : > { %1619 = vst.msk [vmem:[%s2239_s8 + $0x1c] sm:$0x3] %vm1332_vm8, %v1618_v41 }
 0x63f   : > { %1415 = vst.msk [vmem:[%s2239_s8 + $0x4] sm:$0xc] %vm1366_vm9, %v1413_v28  ;;  %1625 = vst.msk [vmem:[%s2239_s8 + $0x1c] sm:$0xc] %vm1366_vm9, %v1828_v42 }
 0x640   : > { %1623 = vst.msk [vmem:[%s2239_s8 + $0x14] sm:$0xc] %vm1366_vm9, %v1422_v48 }
 0x641 PF: > { %s12_s13 = sadd.s32 1, %s1931_s13   ;;  %s2294_s9 = smov %s1923_s11 }
 0x642   : > { %p9_p7 = scmp.ge.s32.totalorder %s12_s13, 10   ;;  %s2295_s10 = smov %s1927_s12 }
 0x643   : > { %s2296_s11 = smov %s2299_s14  ;;  %s2297_s12 = smov %s2303_s15 }
 0x644   :  { %11 = sbr.rel (!%p9_p7) target bundleno = 3 (0x3), region = 73 }

// kernel: a_call__.5
= control target key start
LH: loop header
LB: loop body
LE: loop exit
PB: predicated region body
PF: predicated region fallthrough
CT: control target
= control target key end

     0   :  { %s1197_s12 = smov 0   ;;  %s1199_s13 = smov 0   ;;  %s1575_s0 = inlined_call_operand.vmem [shape: bf16[2,16,16,16], index: 0, kind: input, shape index: {}]   ;;  %s1576_s1 = inlined_call_operand.vmem [shape: bf16[144,16], index: 1, kind: input, shape index: {}]   ;;  %s1577_s2 = inlined_call_operand.vmem [shape: f32[1,16], index: 2, kind: input, shape index: {}]   ;;  %s1578_s3 = inlined_call_operand.vmem [shape: f32[2,256,16], index: 3, kind: output, shape index: {}]  }
   0x1   :  { %s1201_s14 = smov 0   ;;  %s1203_s15 = smov 0  }
   0x2   :  { %s1205_s16 = smov 0  }
   0x3 LB: > { %s22_s17 = sadd.s32 1, %s1158_s14  ;;  %s25_s18 = sadd.s32 1, %s1162_s15  ;;  %s1166_s16 = sphi %s1205_s16, %s13_s16   ;;  %s1162_s15 = sphi %s1203_s15, %s1582_s15   ;;  %s1158_s14 = sphi %s1201_s14, %s1581_s14   ;;  %s1154_s13 = sphi %s1199_s13, %s1580_s13   ;;  %s1150_s12 = sphi %s1197_s12, %s1579_s12  }
   0x4   : > { %p23_p0 = scmp.ge.s32.totalorder %s22_s17, 4  ;;  %p895_p1 = scmp.ge.s32.totalorder %s1166_s16, 1 }
   0x5   : > { %p151_p2 = scmp.lt.s32.totalorder %s1166_s16, 9 }
   0x6   : > { %s1584_s17 = smov (%p23_p0, %s22_s17), 0  ;;  %s1586_s18 = smov (!%p23_p0, %s25_s18), %s1162_s15 }
   0x7   : > { %p152_p3 = pnand %p895_p1, %p151_p2  ;;  %p27_p4 = scmp.ge.s32.totalorder %s1586_s18, 2 }
   0x8   : > { %p179_p5 = scmp.lt.s32.totalorder (!%p152_p3), %s1154_s13, 1  ;;  %s898_s19 = sshll.u32 (!%p152_p3), %s1150_s12, 3 }
   0x9   : > { %s1588_s18 = smov (%p27_p4, %s1586_s18), 0  ;;  %155 = sbr.rel (%p152_p3) target bundleno = 464 (0x1d0), region = 32 }
   0xa   : > { %p187_p6 = scmp.lt.s32.totalorder (!%p152_p3), %s898_s19, 31  ;;  %p901_p7 = scmp.ne.s32.totalorder (!%p152_p3), %s1150_s12, 0 }
  0x10   : > { %s1590_s13 = smov (!%p179_p5, %s1154_s13), 1  ;;  %s1592_s19 = smov (!%p187_p6, %s898_s19), 31 }
  0x11   : > { %s972_s20 = sshll.u32 %s1590_s13, 7  ;;  %s899_s21 = sshll.u32 %s1590_s13, 5  ;;  %vm199_vm0 = vcmask (!%p901_p7), 130048   ;;  %vm202_vm1 = vcmask (!%p901_p7), 123904   ;;  %v1168_v3 = vmov (!%p901_p7), 0.0  }
  0x12   : > { %s1233_s24 = scalar_lea.vmem %s1575_s0, %s972_s20  ;;  %s190_s25 = sadd.s32 %s899_s21, %s1592_s19  ;;  %204 = vst.msk [vmem:[#allocation2 + $0x18] sm:$0xff] (!%p901_p7), %vm199_vm0, %v1168_v3  ;;  %200 = vst.msk [vmem:[#allocation2] sm:$0xff] (!%p901_p7), %vm199_vm0, %v1168_v3 }
  0x13   : > { %s900_s26 = sshll.u32 %s190_s25, 3  ;;  %198 = sbr.rel (%p901_p7) target bundleno = 62 (0x3e), region = 36  ;;  %v1242_v0 = vld [vmem:[%s1233_s24] sm:$0xff] (!%p901_p7)   ;;  %v1245_v1 = vld [vmem:[%s1233_s24 + $0x8] sm:$0xff] (!%p901_p7)   ;;  %v1248_v2 = vld [vmem:[%s1233_s24 + $0x10] sm:$0xff] (!%p901_p7)   ;;  %201 = vst.msk [vmem:[#allocation2 + $0x8] sm:$0xff] (!%p901_p7), %vm199_vm0, %v1168_v3 }
  0x14   : > { %s1238_s29 = scalar_lea.vmem %s1578_s3, %s900_s26  ;;  %205 = vst.msk [vmem:[#allocation2 + $0x20] sm:$0xff] (!%p901_p7), %vm199_vm0, %v1168_v3  ;;  %207 = vst.msk [vmem:[#allocation2 + $0x30] sm:$0xff] (!%p901_p7), %vm199_vm0, %v1168_v3  ;;  %v975_v4 = vunpack.c.l.bf16 (!%p901_p7), %v1242_v0  ;;  %v976_v5 = vunpack.c.h.bf16 (!%p901_p7), %v1242_v0  ;;  %v979_v6 = vunpack.c.l.bf16 (!%p901_p7), %v1245_v1  ;;  %v980_v7 = vunpack.c.h.bf16 (!%p901_p7), %v1245_v1  ;;  %v1039_v8 = vld [vmem:[%s1233_s24 + $0x18] sm:$0xff] (!%p901_p7)   ;;  %v1040_v9 = vld [vmem:[%s1233_s24 + $0x20] sm:$0xff] (!%p901_p7)  }
  0x15   : > { %208 = vst.msk [vmem:[#allocation2 + $0x38] sm:$0xff] (!%p901_p7), %vm199_vm0, %v1168_v3  ;;  %210 = vst.msk [vmem:[#allocation2 + $0x48] sm:$0xff] (!%p901_p7), %vm199_vm0, %v1168_v3  ;;  %v1041_v10 = vld [vmem:[%s1233_s24 + $0x28] sm:$0xff] (!%p901_p7)   ;;  %v983_v11 = vunpack.c.l.bf16 (!%p901_p7), %v1248_v2  ;;  %v984_v12 = vunpack.c.h.bf16 (!%p901_p7), %v1248_v2  ;;  %v987_v13 = vunpack.c.l.bf16 (!%p901_p7), %v1039_v8  ;;  %v988_v14 = vunpack.c.h.bf16 (!%p901_p7), %v1039_v8  ;;  %v1042_v15 = vld [vmem:[%s1233_s24 + $0x30] sm:$0xff] (!%p901_p7)  }
  0x16   : > { %211 = vst.msk [vmem:[#allocation2 + $0x50] sm:$0xff] (!%p901_p7), %vm199_vm0, %v1168_v3  ;;  %213 = vst.msk [vmem:[#allocation2 + $0x60] sm:$0xff] (!%p901_p7), %vm199_vm0, %v1168_v3  ;;  %v1043_v16 = vld [vmem:[%s1233_s24 + $0x38] sm:$0xff] (!%p901_p7)   ;;  %v1044_v17 = vld [vmem:[%s1233_s24 + $0x40] sm:$0xff] (!%p901_p7)   ;;  %v991_v18 = vunpack.c.l.bf16 (!%p901_p7), %v1040_v9  ;;  %v992_v19 = vunpack.c.h.bf16 (!%p901_p7), %v1040_v9  ;;  %v995_v20 = vunpack.c.l.bf16 (!%p901_p7), %v1041_v10  ;;  %v996_v21 = vunpack.c.h.bf16 (!%p901_p7), %v1041_v10 }
  0x17   : > { %214 = vst.msk [vmem:[#allocation2 + $0x68] sm:$0xff] (!%p901_p7), %vm199_vm0, %v1168_v3  ;;  %216 = vst.msk [vmem:[#allocation2 + $0x78] sm:$0xff] (!%p901_p7), %vm199_vm0, %v1168_v3  ;;  %v1045_v22 = vld [vmem:[%s1233_s24 + $0x48] sm:$0xff] (!%p901_p7)   ;;  %v1046_v23 = vld [vmem:[%s1233_s24 + $0x50] sm:$0xff] (!%p901_p7)   ;;  %v999_v25 = vunpack.c.l.bf16 (!%p901_p7), %v1042_v15  ;;  %v1000_v26 = vunpack.c.h.bf16 (!%p901_p7), %v1042_v15  ;;  %v1003_v27 = vunpack.c.l.bf16 (!%p901_p7), %v1043_v16  ;;  %v1004_v28 = vunpack.c.h.bf16 (!%p901_p7), %v1043_v16 }
  0x18   : > { %217 = vst.msk [vmem:[#allocation2 + $0x80] sm:$0xff] (!%p901_p7), %vm199_vm0, %v1168_v3  ;;  %219 = vst.msk [vmem:[#allocation2 + $0x90] sm:$0xff] (!%p901_p7), %vm199_vm0, %v1168_v3  ;;  %v1047_v24 = vld [vmem:[%s1233_s24 + $0x58] sm:$0xff] (!%p901_p7)   ;;  %v1048_v29 = vld [vmem:[%s1233_s24 + $0x60] sm:$0xff] (!%p901_p7)   ;;  %v1007_v31 = vunpack.c.l.bf16 (!%p901_p7), %v1044_v17  ;;  %v1008_v32 = vunpack.c.h.bf16 (!%p901_p7), %v1044_v17  ;;  %v1011_v33 = vunpack.c.l.bf16 (!%p901_p7), %v1045_v22  ;;  %v1012_v34 = vunpack.c.h.bf16 (!%p901_p7), %v1045_v22 }
  0x19   : > { %220 = vst.msk [vmem:[#allocation2 + $0x98] sm:$0xff] (!%p901_p7), %vm199_vm0, %v1168_v3  ;;  %222 = vst.msk [vmem:[#allocation2 + $0xa8] sm:$0xff] (!%p901_p7), %vm199_vm0, %v1168_v3  ;;  %v1049_v30 = vld [vmem:[%s1233_s24 + $0x68] sm:$0xff] (!%p901_p7)   ;;  %v1050_v35 = vld [vmem:[%s1233_s24 + $0x70] sm:$0xff] (!%p901_p7)   ;;  %v1015_v37 = vunpack.c.l.bf16 (!%p901_p7), %v1046_v23  ;;  %v1016_v38 = vunpack.c.h.bf16 (!%p901_p7), %v1046_v23  ;;  %v1019_v39 = vunpack.c.l.bf16 (!%p901_p7), %v1047_v24  ;;  %v1020_v40 = vunpack.c.h.bf16 (!%p901_p7), %v1047_v24 }
  0x1a   : > { %223 = vst.msk [vmem:[#allocation2 + $0xb0] sm:$0xff] %vm199_vm0, %v1168_v3  ;;  %225 = vst.msk [vmem:[#allocation2 + $0xc0] sm:$0xff] %vm199_vm0, %v1168_v3  ;;  %v1051_v36 = vld [vmem:[%s1233_s24 + $0x78] sm:$0xff]   ;;  %v1023_v41 = vunpack.c.l.bf16 %v1048_v29  ;;  %v1024_v42 = vunpack.c.h.bf16 %v1048_v29  ;;  %v1027_v43 = vunpack.c.l.bf16 %v1049_v30  ;;  %v1028_v44 = vunpack.c.h.bf16 %v1049_v30 }
  0x1b   : > { %226 = vst.msk [vmem:[#allocation2 + $0xc8] sm:$0xff] %vm199_vm0, %v1168_v3  ;;  %228 = vst.msk [vmem:[#allocation2 + $0xd8] sm:$0xff] %vm199_vm0, %v1168_v3  ;;  %v1031_v45 = vunpack.c.l.bf16 %v1050_v35  ;;  %v1032_v46 = vunpack.c.h.bf16 %v1050_v35  ;;  %v1035_v47 = vunpack.c.l.bf16 %v1051_v36  ;;  %v1036_v48 = vunpack.c.h.bf16 %v1051_v36 }
  0x1c   : > { %229 = vst.msk [vmem:[#allocation2 + $0xe0] sm:$0xff] %vm199_vm0, %v1168_v3  ;;  %231 = vst.msk [vmem:[#allocation2 + $0xf0] sm:$0xff] %vm199_vm0, %v1168_v3 }
  0x1d   : > { %232 = vst.msk [vmem:[#allocation2 + $0xf8] sm:$0xff] %vm199_vm0, %v1168_v3  ;;  %234 = vst.msk [vmem:[#allocation2 + $0x108] sm:$0xff] %vm199_vm0, %v1168_v3 }
  0x1e   : > { %235 = vst.msk [vmem:[#allocation2 + $0x110] sm:$0xff] %vm199_vm0, %v1168_v3  ;;  %237 = vst.msk [vmem:[#allocation2 + $0x120] sm:$0xff] %vm199_vm0, %v1168_v3 }
  0x1f   : > { %238 = vst.msk [vmem:[#allocation2 + $0x128] sm:$0xff] %vm199_vm0, %v1168_v3  ;;  %240 = vst.msk [vmem:[#allocation2 + $0x138] sm:$0xff] %vm199_vm0, %v1168_v3 }
  0x20   : > { %241 = vst.msk [vmem:[#allocation2 + $0x140] sm:$0xff] %vm199_vm0, %v1168_v3  ;;  %243 = vst.msk [vmem:[#allocation2 + $0x150] sm:$0xff] %vm199_vm0, %v1168_v3 }
  0x21   : > { %244 = vst.msk [vmem:[#allocation2 + $0x158] sm:$0xff] %vm199_vm0, %v1168_v3  ;;  %246 = vst.msk [vmem:[#allocation2 + $0x168] sm:$0xff] %vm199_vm0, %v1168_v3 }
  0x22   : > { %247 = vst.msk [vmem:[#allocation2 + $0x170] sm:$0xff] %vm199_vm0, %v1168_v3  ;;  %249 = vst.msk [vmem:[#allocation2 + $0x180] sm:$0xff] %vm199_vm0, %v1168_v3 }
  0x23   : > { %250 = vst.msk [vmem:[#allocation2 + $0x188] sm:$0xff] %vm199_vm0, %v1168_v3  ;;  %252 = vst.msk [vmem:[#allocation2 + $0x198] sm:$0xff] %vm199_vm0, %v1168_v3 }
  0x24   : > { %253 = vst.msk [vmem:[#allocation2 + $0x1a0] sm:$0xff] %vm199_vm0, %v1168_v3  ;;  %320 = vst.msk [vmem:[#allocation2 + $0x19] sm:$0xff] %vm199_vm0, %v975_v4 }
  0x25   : > { %206 = vst.msk [vmem:[#allocation2 + $0x28] sm:$0x3] %vm202_vm1, %v1168_v3  ;;  %203 = vst.msk [vmem:[#allocation2 + $0x10] sm:$0x3] %vm202_vm1, %v1168_v3 }
  0x26   : > { %209 = vst.msk [vmem:[#allocation2 + $0x40] sm:$0x3] %vm202_vm1, %v1168_v3  ;;  %212 = vst.msk [vmem:[#allocation2 + $0x58] sm:$0x3] %vm202_vm1, %v1168_v3 }
  0x27   : > { %215 = vst.msk [vmem:[#allocation2 + $0x70] sm:$0x3] %vm202_vm1, %v1168_v3  ;;  %218 = vst.msk [vmem:[#allocation2 + $0x88] sm:$0x3] %vm202_vm1, %v1168_v3 }
  0x28   : > { %221 = vst.msk [vmem:[#allocation2 + $0xa0] sm:$0x3] %vm202_vm1, %v1168_v3  ;;  %224 = vst.msk [vmem:[#allocation2 + $0xb8] sm:$0x3] %vm202_vm1, %v1168_v3 }
  0x29   : > { %227 = vst.msk [vmem:[#allocation2 + $0xd0] sm:$0x3] %vm202_vm1, %v1168_v3  ;;  %230 = vst.msk [vmem:[#allocation2 + $0xe8] sm:$0x3] %vm202_vm1, %v1168_v3 }
  0x2a   : > { %233 = vst.msk [vmem:[#allocation2 + $0x100] sm:$0x3] %vm202_vm1, %v1168_v3  ;;  %236 = vst.msk [vmem:[#allocation2 + $0x118] sm:$0x3] %vm202_vm1, %v1168_v3 }
  0x2b   : > { %239 = vst.msk [vmem:[#allocation2 + $0x130] sm:$0x3] %vm202_vm1, %v1168_v3  ;;  %242 = vst.msk [vmem:[#allocation2 + $0x148] sm:$0x3] %vm202_vm1, %v1168_v3 }
  0x2c   : > { %245 = vst.msk [vmem:[#allocation2 + $0x160] sm:$0x3] %vm202_vm1, %v1168_v3  ;;  %248 = vst.msk [vmem:[#allocation2 + $0x178] sm:$0x3] %vm202_vm1, %v1168_v3 }
  0x2d   : > { %251 = vst.msk [vmem:[#allocation2 + $0x190] sm:$0x3] %vm202_vm1, %v1168_v3  ;;  %254 = vst.msk [vmem:[#allocation2 + $0x1a8] sm:$0x3] %vm202_vm1, %v1168_v3 }
  0x2e   : > { %321 = vst.msk [vmem:[#allocation2 + $0x21] sm:$0xff] %vm199_vm0, %v976_v5  ;;  %322 = vst.msk [vmem:[#allocation2 + $0x31] sm:$0xff] %vm199_vm0, %v979_v6 }
  0x2f   : > { %323 = vst.msk [vmem:[#allocation2 + $0x39] sm:$0xff] %vm199_vm0, %v980_v7  ;;  %324 = vst.msk [vmem:[#allocation2 + $0x49] sm:$0xff] %vm199_vm0, %v983_v11 }
  0x30   : > { %325 = vst.msk [vmem:[#allocation2 + $0x51] sm:$0xff] %vm199_vm0, %v984_v12  ;;  %326 = vst.msk [vmem:[#allocation2 + $0x61] sm:$0xff] %vm199_vm0, %v987_v13 }
  0x31   : > { %327 = vst.msk [vmem:[#allocation2 + $0x69] sm:$0xff] %vm199_vm0, %v988_v14  ;;  %328 = vst.msk [vmem:[#allocation2 + $0x79] sm:$0xff] %vm199_vm0, %v991_v18 }
  0x32   : > { %329 = vst.msk [vmem:[#allocation2 + $0x81] sm:$0xff] %vm199_vm0, %v992_v19  ;;  %330 = vst.msk [vmem:[#allocation2 + $0x91] sm:$0xff] %vm199_vm0, %v995_v20 }
  0x33   : > { %331 = vst.msk [vmem:[#allocation2 + $0x99] sm:$0xff] %vm199_vm0, %v996_v21  ;;  %332 = vst.msk [vmem:[#allocation2 + $0xa9] sm:$0xff] %vm199_vm0, %v999_v25 }
  0x34   : > { %333 = vst.msk [vmem:[#allocation2 + $0xb1] sm:$0xff] %vm199_vm0, %v1000_v26  ;;  %334 = vst.msk [vmem:[#allocation2 + $0xc1] sm:$0xff] %vm199_vm0, %v1003_v27 }
  0x35   : > { %335 = vst.msk [vmem:[#allocation2 + $0xc9] sm:$0xff] %vm199_vm0, %v1004_v28  ;;  %336 = vst.msk [vmem:[#allocation2 + $0xd9] sm:$0xff] %vm199_vm0, %v1007_v31 }
  0x36   : > { %337 = vst.msk [vmem:[#allocation2 + $0xe1] sm:$0xff] %vm199_vm0, %v1008_v32  ;;  %338 = vst.msk [vmem:[#allocation2 + $0xf1] sm:$0xff] %vm199_vm0, %v1011_v33 }
  0x37   : > { %339 = vst.msk [vmem:[#allocation2 + $0xf9] sm:$0xff] %vm199_vm0, %v1012_v34  ;;  %340 = vst.msk [vmem:[#allocation2 + $0x109] sm:$0xff] %vm199_vm0, %v1015_v37 }
  0x38   : > { %341 = vst.msk [vmem:[#allocation2 + $0x111] sm:$0xff] %vm199_vm0, %v1016_v38  ;;  %342 = vst.msk [vmem:[#allocation2 + $0x121] sm:$0xff] %vm199_vm0, %v1019_v39 }
  0x39   : > { %343 = vst.msk [vmem:[#allocation2 + $0x129] sm:$0xff] %vm199_vm0, %v1020_v40  ;;  %344 = vst.msk [vmem:[#allocation2 + $0x139] sm:$0xff] %vm199_vm0, %v1023_v41 }
  0x3a   : > { %345 = vst.msk [vmem:[#allocation2 + $0x141] sm:$0xff] %vm199_vm0, %v1024_v42  ;;  %346 = vst.msk [vmem:[#allocation2 + $0x151] sm:$0xff] %vm199_vm0, %v1027_v43 }
  0x3b   : > { %347 = vst.msk [vmem:[#allocation2 + $0x159] sm:$0xff] %vm199_vm0, %v1028_v44  ;;  %348 = vst.msk [vmem:[#allocation2 + $0x169] sm:$0xff] %vm199_vm0, %v1031_v45 }
  0x3c   : > { %349 = vst.msk [vmem:[#allocation2 + $0x171] sm:$0xff] %vm199_vm0, %v1032_v46  ;;  %350 = vst.msk [vmem:[#allocation2 + $0x181] sm:$0xff] %vm199_vm0, %v1035_v47 }
  0x3d   : > { %351 = vst.msk [vmem:[#allocation2 + $0x189] sm:$0xff] %vm199_vm0, %v1036_v48 }
  0x3e PF: > { %s903_s30 = smul.u32 96, %s1150_s12  ;;  %v1119_v49 = vld [vmem:[%s1576_s1] sm:$0xff]   ;;  %v1169_v50 = vmov 0   ;;  %s1170_s7 = smov 32   ;;  %vm367_vm2 = vcmask 130048   ;;  %v1120_v22 = vld [vmem:[%s1576_s1 + $0x8] sm:$0xff]  }
  0x3f   : > { %724 = vmatprep.subr.bf16.mxu0 %v1169_v50  ;;  %1052 = vmatprep.subr.bf16.mxu1 %v1169_v50  ;;  %s1171_s8 = smov 16   ;;  %s1172_s9 = smov 48   ;;  %v1121_v26 = vld [vmem:[%s1576_s1 + $0x10] sm:$0xff]   ;;  %v1122_v30 = vld [vmem:[%s1576_s1 + $0x18] sm:$0xff]   ;;  %v1123_v36 = vld [vmem:[%s1576_s1 + $0x20] sm:$0xff]   ;;  %vm400_vm3 = vcmask 261248  }
  0x40   : > { %725 = vmatpush1.bf16.msra.mxu0 %v1119_v49  ;;  %1061 = vmatpush1.bf16.msra.mxu1 %v1119_v49  ;;  %s1361_s6 = scalar_lea.vmem [#allocation2], %s903_s30  ;;  %s1173_s19 = smov 64   ;;  %v1124_v38 = vld [vmem:[%s1576_s1 + $0x28] sm:$0xff]   ;;  %v1125_v39 = vld [vmem:[%s1576_s1 + $0x30] sm:$0xff]   ;;  %v1126_v40 = vld [vmem:[%s1576_s1 + $0x38] sm:$0xff]   ;;  %vm433_vm4 = vcmask 392448  }
  0x41   : > { %726 = vmatprep.subr.bf16.mxu0 %v1169_v50  ;;  %1053 = vmatprep.subr.bf16.mxu1 %v1169_v50  ;;  %s1174_s22 = smov 80   ;;  %s1175_s25 = smov 96   ;;  %v1127_v41 = vld [vmem:[%s1576_s1 + $0x40] sm:$0xff]   ;;  %vm469_vm5 = vcmask 523648   ;;  %vm502_vm6 = vcmask 654848   ;;  %vm535_vm7 = vcmask 786048  }
  0x42   : > { %s1176_s28 = smov 112   ;;  %vm571_vm8 = vcmask 917248   ;;  %vm604_vm9 = vcmask 1048448  }
  0x44   : > { %v405_v51 = vld [vmem:[%s1361_s6 + $0x2] sm:$0xff]  ;;  %v406_v52 = vld [vmem:[%s1361_s6 + $0xa] sm:$0xff]  ;;  %v409_v56 = vld [vmem:[%s1361_s6 + $0x32] sm:$0xff]  ;;  %727 = vmatpush1.bf16.msra.mxu0 %v1120_v22  ;;  %1062 = vmatpush1.bf16.msra.mxu1 %v1120_v22 }
  0x45   : > { %v372_v53 = vld [vmem:[%s1361_s6 + $0x1] sm:$0xff]  ;;  %v413_v54 = vpack.c.bf16 %v406_v52, %v405_v51  ;;  %v373_v55 = vld [vmem:[%s1361_s6 + $0x9] sm:$0xff]  ;;  %v376_v60 = vld [vmem:[%s1361_s6 + $0x31] sm:$0xff]  ;;  %728 = vmatprep.subr.bf16.mxu0 %v1169_v50  ;;  %1054 = vmatprep.subr.bf16.mxu1 %v1169_v50 }
  0x46   : > { %v410_v57 = vld [vmem:[%s1361_s6 + $0x3a] sm:$0xff]  ;;  %v380_v58 = vpack.c.bf16 %v373_v55, %v372_v53  ;;  %v910_v62 = vld [vmem:[%s1361_s6 + $0x48] sm:$0xff]  ;;  %v911_v63 = vld [vmem:[%s1361_s6 + $0x50] sm:$0xff] }
  0x47   : > { %v1371_v59 = vpack.c.bf16 %v410_v57, %v409_v56  ;;  %v377_v61 = vld [vmem:[%s1361_s6 + $0x39] sm:$0xff]  ;;  %421 = vrot.lane.b32.xlu1 %v413_v54, %s1170_s7  ;;  %v1383_v3 = vpack.c.bf16 %v911_v63, %v910_v62  ;;  %v926_v5 = vld [vmem:[%s1361_s6 + $0x4a] sm:$0xff]  ;;  %v928_v13 = vld [vmem:[%s1361_s6 + $0x62] sm:$0xff] }
  0x48   : > { %v906_v0 = vld [vmem:[%s1361_s6 + $0x18] sm:$0xff]  ;;  %v907_v1 = vld [vmem:[%s1361_s6 + $0x20] sm:$0xff]  ;;  %388 = vrot.lane.b32.xlu0 %v380_v58, %s1171_s8  ;;  %v1381_v2 = vpack.c.bf16 %v377_v61, %v376_v60  ;;  %v932_v8 = vld [vmem:[%s1361_s6 + $0x30] sm:$0xff]  ;;  %729 = vmatpush1.bf16.msra.mxu0 %v1121_v26 }
  0x49   : > { %v449_v4 = vpack.c.bf16 %v907_v1, %v906_v0  ;;  %621 = vst.msk [vmem:[#allocation3 + $0x8] sm:$0xff] %vm367_vm2, %v1371_v59  ;;  %v927_v6 = vld [vmem:[%s1361_s6 + $0x52] sm:$0xff]  ;;  %371 = vst.msk [vmem:[#allocation3 + $0x30] sm:$0xff] %vm367_vm2, %v1383_v3  ;;  %v918_v10 = vld [vmem:[%s1361_s6 + $0x49] sm:$0xff]  ;;  %1063 = vmatpush1.bf16.msra.mxu1 %v1121_v26  ;;  %730 = vmatprep.subr.bf16.mxu0 %v1169_v50 }
  0x4a   : > { %v1389_v7 = vpack.c.bf16 %v927_v6, %v926_v5  ;;  %v933_v9 = vld [vmem:[%s1361_s6 + $0x38] sm:$0xff]  ;;  %v915_v15 = vld [vmem:[%s1361_s6 + $0x21] sm:$0xff]  ;;  %v929_v16 = vld [vmem:[%s1361_s6 + $0x6a] sm:$0xff]  ;;  %1055 = vmatprep.subr.bf16.mxu1 %v1169_v50 }
  0x4b   : > { %369 = vst.msk [vmem:[#allocation3 + $0x10] sm:$0xff] %vm367_vm2, %v449_v4  ;;  %425 = vrot.lane.b32.xlu1 %v1371_v59, %s1170_s7  ;;  %v919_v11 = vld [vmem:[%s1361_s6 + $0x51] sm:$0xff]  ;;  %v1402_v12 = vpack.c.bf16 %v933_v9, %v932_v8  ;;  %v914_v14 = vld [vmem:[%s1361_s6 + $0x19] sm:$0xff]  ;;  %v1410_v17 = vpack.c.bf16 %v929_v16, %v928_v13  ;;  %v356_v21 = vld [vmem:[%s1361_s6 + $0x8] sm:$0xff] }
  0x4c   : > { %392 = vrot.lane.b32.xlu0 %v1381_v2, %s1171_s8  ;;  %622 = vst.msk [vmem:[#allocation3 + $0x18] sm:$0xff] %vm367_vm2, %v1389_v7  ;;  %v355_v18 = vld [vmem:[%s1361_s6] sm:$0xff]  ;;  %v1417_v19 = vpack.c.bf16 %v919_v11, %v918_v10  ;;  %v482_v23 = vpack.c.bf16 %v915_v15, %v914_v14  ;;  %v937_v29 = vld [vmem:[%s1361_s6 + $0x68] sm:$0xff]  ;;  %731 = vmatpush1.bf16.msra.mxu0 %v1122_v30  ;;  %v938_v45 = vld [vmem:[%s1361_s6 + $0x78] sm:$0xff] }
  0x4d   : > { %370 = vst.msk [vmem:[#allocation3 + $0x20] sm:$0xff] %vm367_vm2, %v1402_v12  ;;  %v922_v20 = vld [vmem:[%s1361_s6 + $0x1a] sm:$0xff]  ;;  %v923_v24 = vld [vmem:[%s1361_s6 + $0x22] sm:$0xff]  ;;  %v363_v25 = vpack.c.bf16 %v356_v21, %v355_v18  ;;  %623 = vst.msk [vmem:[#allocation3 + $0x28] sm:$0xff] %vm367_vm2, %v1410_v17  ;;  %1064 = vmatpush1.bf16.msra.mxu1 %v1122_v30  ;;  %732 = vmatprep.subr.bf16.mxu0 %v1169_v50 }
  0x4e   : > { %v936_v27 = vld [vmem:[%s1361_s6 + $0x60] sm:$0xff]  ;;  %v515_v28 = vpack.c.bf16 %v923_v24, %v922_v20  ;;  %v945_v34 = vld [vmem:[%s1361_s6 + $0x69] sm:$0xff]  ;;  %1056 = vmatprep.subr.bf16.mxu1 %v1169_v50 }
  0x4f   : > { %461 = vrot.lane.b32.xlu1 %v1383_v3, %s1172_s9  ;;  %368 = vst.msk [vmem:[#allocation3] sm:$0xff] %vm367_vm2, %v363_v25  ;;  %v553_v31 = vpack.c.bf16 %v937_v29, %v936_v27  ;;  %v944_v33 = vld [vmem:[%s1361_s6 + $0x61] sm:$0xff]  ;;  %v946_v48 = vld [vmem:[%s1361_s6 + $0x79] sm:$0xff] }
  0x50   : > { %457 = vrot.lane.b32.xlu0 %v449_v4, %s1172_s9  ;;  %v626_v32 = vld [vmem:[#allocation3 + $0x8] sm:$0xff]  ;;  %v586_v37 = vpack.c.bf16 %v945_v34, %v944_v33  ;;  %733 = vmatpush1.bf16.msra.mxu0 %v1123_v36  ;;  %v955_v43 = vld [vmem:[%s1361_s6 + $0x82] sm:$0xff]  ;;  %v956_v21 = vld [vmem:[%s1577_s2] ss:$0 sm:$0xff] }
  0x51   : > { %966 = vmatprep.mubr.msk.bf16.mxu0 %vm367_vm2, %v626_v32  ;;  %1065 = vmatpush1.bf16.msra.mxu1 %v1123_v36  ;;  %v954_v42 = vld [vmem:[%s1361_s6 + $0x7a] sm:$0xff] }
  0x52   : > { %734 = vmatprep.subr.bf16.mxu0 %v1169_v50  ;;  %1057 = vmatprep.subr.bf16.mxu1 %v1169_v50  ;;  %v620_v44 = vpack.c.bf16 %v955_v43, %v954_v42  ;;  %v939_v46 = vld [vmem:[%s1361_s6 + $0x80] sm:$0xff] }
  0x53   : > { %494 = vrot.lane.b32.xlu1 %v1417_v19, %s1173_s19  ;;  %v554_v47 = vpack.c.bf16 %v939_v46, %v938_v45  ;;  %v947_v49 = vld [vmem:[%s1361_s6 + $0x81] sm:$0xff] }
  0x54   : > { %490 = vrot.lane.b32.xlu0 %v482_v23, %s1173_s19  ;;  %v630_v35 = vld [vmem:[#allocation3 + $0x28] sm:$0xff]  ;;  %735 = vmatpush1.bf16.msra.mxu0 %v1124_v38  ;;  %624 = vst.msk [vmem:[#allocation3 + $0x38] sm:$0xff] %vm367_vm2, %v620_v44  ;;  %v628_v6 = vld [vmem:[#allocation3 + $0x18] sm:$0xff] }
  0x55   : > { %968 = vmatprep.mubr.msk.bf16.mxu1 %vm367_vm2, %v630_v35  ;;  %1066 = vmatpush1.bf16.msra.mxu1 %v1124_v38 }
  0x56   : > { %736 = vmatprep.subr.bf16.mxu0 %v1169_v50  ;;  %1058 = vmatprep.subr.bf16.mxu1 %v1169_v50 }
  0x57   : > { %527 = vrot.lane.b32.xlu1 %v1389_v7, %s1174_s22 }
  0x58   : > { %523 = vrot.lane.b32.xlu0 %v515_v28, %s1174_s22  ;;  %737 = vmatpush1.bf16.msra.mxu0 %v1125_v39 }
  0x59   : > { %1067 = vmatpush1.bf16.msra.mxu1 %v1125_v39  ;;  %738 = vmatprep.subr.bf16.mxu0 %v1169_v50 }
  0x5a   : > { %1059 = vmatprep.subr.bf16.mxu1 %v1169_v50 }
  0x5b   : > { %563 = vrot.lane.b32.xlu1 %v553_v31, %s1175_s25 }
  0x5c   : > { %559 = vrot.lane.b32.xlu0 %v1402_v12, %s1175_s25  ;;  %739 = vmatpush1.bf16.msra.mxu0 %v1126_v40 }
  0x5d   : > { %1068 = vmatpush1.bf16.msra.mxu1 %v1126_v40  ;;  %740 = vmatprep.subr.bf16.mxu0 %v1169_v50 }
  0x5e   : > { %1060 = vmatprep.subr.bf16.mxu1 %v1169_v50  ;;  %v587_v50 = vpack.c.bf16 %v947_v49, %v946_v48 }
  0x5f   : > { %596 = vrot.lane.b32.xlu1 %v586_v37, %s1176_s28 }
  0x60   : > { %592 = vrot.lane.b32.xlu0 %v1381_v2, %s1176_s28  ;;  %741 = vmatpush1.bf16.msra.mxu0 %v1127_v41 }
  0x61   : > { %1069 = vmatpush1.bf16.msra.mxu1 %v1127_v41 }
  0x63   : > { %394 = vrot.lane.b32.xlu1 %v1417_v19, %s1171_s8 }
  0x64   : > { %390 = vrot.lane.b32.xlu0 %v482_v23, %s1171_s8 }
  0x67   : > { %427 = vrot.lane.b32.xlu1 %v1389_v7, %s1170_s7 }
  0x68   : > { %423 = vrot.lane.b32.xlu0 %v515_v28, %s1170_s7 }
  0x6b   : > { %463 = vrot.lane.b32.xlu1 %v553_v31, %s1172_s9 }
  0x6c   : > { %459 = vrot.lane.b32.xlu0 %v1402_v12, %s1172_s9 }
  0x6f   : > { %496 = vrot.lane.b32.xlu1 %v586_v37, %s1173_s19 }
  0x70   : > { %492 = vrot.lane.b32.xlu0 %v1381_v2, %s1173_s19 }
  0x73   : > { %529 = vrot.lane.b32.xlu1 %v1410_v17, %s1174_s22 }
  0x74   : > { %525 = vrot.lane.b32.xlu0 %v1371_v59, %s1174_s22 }
  0x77   : > { %565 = vrot.lane.b32.xlu1 %v554_v47, %s1175_s25 }
  0x78   : > { %561 = vrot.lane.b32.xlu0 %v1383_v3, %s1175_s25  ;;  %v632_v3 = vld [vmem:[#allocation3 + $0x38] sm:$0xff] }
  0x7b   : > { %598 = vrot.lane.b32.xlu1 %v587_v50, %s1176_s28 }
  0x7c   : > { %594 = vrot.lane.b32.xlu0 %v1417_v19, %s1176_s28 }
  0xb9   : > { %v422_v51 = vpop.permute.xlu1 %421 }
  0xba   : > { %v389_v52 = vpop.permute.xlu0 %388 }
  0xbb   : > { %401 = vst.msk [vmem:[#allocation3] sm:$0xff] %vm400_vm3, %v389_v52 }
  0xbc   : > { %434 = vst.msk [vmem:[#allocation3] sm:$0xff] %vm433_vm4, %v422_v51 }
  0xbd   : > { %v426_v53 = vpop.permute.xlu1 %425 }
  0xbe   : > { %v393_v54 = vpop.permute.xlu0 %392 }
  0xbf   : > { %403 = vst.msk [vmem:[#allocation3 + $0x20] sm:$0xff] %vm400_vm3, %v393_v54 }
  0xc0   : > { %436 = vst.msk [vmem:[#allocation3 + $0x20] sm:$0xff] %vm433_vm4, %v426_v53 }
  0xc1   : > { %v462_v55 = vpop.permute.xlu1 %461 }
  0xc2   : > { %472 = vst.msk [vmem:[#allocation3 + $0x20] sm:$0xff] %vm469_vm5, %v462_v55  ;;  %v458_v56 = vpop.permute.xlu0 %457 }
  0xc3   : > { %470 = vst.msk [vmem:[#allocation3] sm:$0xff] %vm469_vm5, %v458_v56 }
  0xc5   : > { %v495_v57 = vpop.permute.xlu1 %494 }
  0xc6   : > { %505 = vst.msk [vmem:[#allocation3 + $0x20] sm:$0xff] %vm502_vm6, %v495_v57  ;;  %v491_v58 = vpop.permute.xlu0 %490 }
  0xc7   : > { %503 = vst.msk [vmem:[#allocation3] sm:$0xff] %vm502_vm6, %v491_v58 }
  0xc9   : > { %v528_v59 = vpop.permute.xlu1 %527 }
  0xca   : > { %538 = vst.msk [vmem:[#allocation3 + $0x20] sm:$0xff] %vm535_vm7, %v528_v59  ;;  %v524_v60 = vpop.permute.xlu0 %523 }
  0xcb   : > { %536 = vst.msk [vmem:[#allocation3] sm:$0xff] %vm535_vm7, %v524_v60 }
  0xcd   : > { %v564_v61 = vpop.permute.xlu1 %563 }
  0xce   : > { %574 = vst.msk [vmem:[#allocation3 + $0x20] sm:$0xff] %vm571_vm8, %v564_v61  ;;  %v560_v62 = vpop.permute.xlu0 %559 }
  0xcf   : > { %572 = vst.msk [vmem:[#allocation3] sm:$0xff] %vm571_vm8, %v560_v62 }
  0xd1   : > { %v597_v63 = vpop.permute.xlu1 %596 }
  0xd2   : > { %607 = vst.msk [vmem:[#allocation3 + $0x20] sm:$0xff] %vm604_vm9, %v597_v63  ;;  %v593_v0 = vpop.permute.xlu0 %592 }
  0xd3   : > { %605 = vst.msk [vmem:[#allocation3] sm:$0xff] %vm604_vm9, %v593_v0 }
  0xd5   : > { %v395_v1 = vpop.permute.xlu1 %394 }
  0xd6   : > { %404 = vst.msk [vmem:[#allocation3 + $0x30] sm:$0xff] %vm400_vm3, %v395_v1  ;;  %v391_v2 = vpop.permute.xlu0 %390 }
  0xd7   : > { %402 = vst.msk [vmem:[#allocation3 + $0x10] sm:$0xff] %vm400_vm3, %v391_v2 }
  0xd9   : > { %v428_v4 = vpop.permute.xlu1 %427  ;;  %v629_v5 = vld [vmem:[#allocation3 + $0x20] sm:$0xff] }
  0xda   : > { %437 = vst.msk [vmem:[#allocation3 + $0x30] sm:$0xff] %vm433_vm4, %v428_v4  ;;  %v424_v7 = vpop.permute.xlu0 %423  ;;  %v625_v8 = vld [vmem:[#allocation3] sm:$0xff]  ;;  %773 = vmatmul.mubr.bf16.vlgmr.msra.gmra.mrb[0].mxu1 %v629_v5 }
  0xdb   : > { %435 = vst.msk [vmem:[#allocation3 + $0x10] sm:$0xff] %vm433_vm4, %v424_v7  ;;  %757 = vmatmul.mubr.bf16.vlgmr.msra.gmra.mrb[0].mxu0 %v625_v8  ;;  %969 = vmatprep.mubr.msk.bf16.mxu1 %vm367_vm2, %v632_v3 }
  0xdc   : > { %967 = vmatprep.mubr.msk.bf16.mxu0 %vm367_vm2, %v628_v6 }
  0xdd   : > { %v464_v9 = vpop.permute.xlu1 %463 }
  0xde   : > { %473 = vst.msk [vmem:[#allocation3 + $0x30] sm:$0xff] %vm469_vm5, %v464_v9  ;;  %v460_v10 = vpop.permute.xlu0 %459 }
  0xdf   : > { %471 = vst.msk [vmem:[#allocation3 + $0x10] sm:$0xff] %vm469_vm5, %v460_v10 }
  0xe1   : > { %v497_v11 = vpop.permute.xlu1 %496 }
  0xe2   : > { %506 = vst.msk [vmem:[#allocation3 + $0x30] sm:$0xff] %vm502_vm6, %v497_v11  ;;  %v493_v12 = vpop.permute.xlu0 %492 }
  0xe3   : > { %504 = vst.msk [vmem:[#allocation3 + $0x10] sm:$0xff] %vm502_vm6, %v493_v12 }
  0xe5   : > { %v530_v13 = vpop.permute.xlu1 %529 }
  0xe6   : > { %539 = vst.msk [vmem:[#allocation3 + $0x30] sm:$0xff] %vm535_vm7, %v530_v13  ;;  %v526_v14 = vpop.permute.xlu0 %525 }
  0xe7   : > { %537 = vst.msk [vmem:[#allocation3 + $0x10] sm:$0xff] %vm535_vm7, %v526_v14 }
  0xe9   : > { %v566_v15 = vpop.permute.xlu1 %565 }
  0xea   : > { %575 = vst.msk [vmem:[#allocation3 + $0x30] sm:$0xff] %vm571_vm8, %v566_v15  ;;  %v562_v16 = vpop.permute.xlu0 %561 }
  0xeb   : > { %573 = vst.msk [vmem:[#allocation3 + $0x10] sm:$0xff] %vm571_vm8, %v562_v16 }
  0xed   : > { %v599_v17 = vpop.permute.xlu1 %598 }
  0xee   : > { %608 = vst.msk [vmem:[#allocation3 + $0x30] sm:$0xff] %vm604_vm9, %v599_v17  ;;  %v595_v18 = vpop.permute.xlu0 %594 }
  0xef   : > { %606 = vst.msk [vmem:[#allocation3 + $0x10] sm:$0xff] %vm604_vm9, %v595_v18 }
  0xf5   : > { %v631_v19 = vld [vmem:[#allocation3 + $0x30] sm:$0xff] }
  0xf6   : > { %v627_v20 = vld [vmem:[#allocation3 + $0x10] sm:$0xff]  ;;  %781 = vmatmul.mubr.bf16.gmra.mrb[4].mxu1 %v631_v19 }
  0xf7   : > { %765 = vmatmul.mubr.bf16.gmra.mrb[4].mxu0 %v627_v20 }
 0x1ad   : > { %v774_v22 = vpop.f32.mrb[0].mxu1 }
 0x1ae   : > { %v758_v23 = vpop.f32.mrb[0].mxu0  ;;  %v775_v24 = vadd.f32 %v956_v21, %v774_v22  ;;  %v776_v25 = vpop.f32.mrb[1].mxu1 }
 0x1af   : > { %v759_v26 = vadd.f32 %v956_v21, %v758_v23  ;;  %v760_v27 = vpop.f32.mrb[1].mxu0  ;;  %v777_v28 = vpop.f32.mrb[2].mxu1 }
 0x1b0   : > { %793 = vst.msk [vmem:[%s1238_s29 + $0x20] sm:$0xff] %vm367_vm2, %v775_v24  ;;  %v761_v29 = vpop.f32.mrb[2].mxu0  ;;  %v778_v30 = vadd.f32 %v956_v21, %v777_v28  ;;  %v779_v31 = vpop.f32.mrb[3].mxu1 }
 0x1b1   : > { %789 = vst.msk [vmem:[%s1238_s29] sm:$0xff] %vm367_vm2, %v759_v26  ;;  %v762_v32 = vadd.f32 %v956_v21, %v761_v29  ;;  %v763_v33 = vpop.f32.mrb[3].mxu0 }
 0x1b2   : > { %794 = vst.msk [vmem:[%s1238_s29 + $0x28] sm:$0xff] %vm367_vm2, %v778_v30 }
 0x1b3   : > { %790 = vst.msk [vmem:[%s1238_s29 + $0x8] sm:$0xff] %vm367_vm2, %v762_v32 }
 0x1c9   : > { %v782_v34 = vpop.f32.mrb[4].mxu1 }
 0x1ca   : > { %v766_v35 = vpop.f32.mrb[4].mxu0  ;;  %v783_v36 = vadd.f32 %v956_v21, %v782_v34  ;;  %v784_v37 = vpop.f32.mrb[5].mxu1 }
 0x1cb   : > { %v767_v38 = vadd.f32 %v956_v21, %v766_v35  ;;  %v768_v39 = vpop.f32.mrb[5].mxu0  ;;  %v785_v40 = vpop.f32.mrb[6].mxu1 }
 0x1cc   : > { %795 = vst.msk [vmem:[%s1238_s29 + $0x30] sm:$0xff] %vm367_vm2, %v783_v36  ;;  %v769_v41 = vpop.f32.mrb[6].mxu0  ;;  %v786_v42 = vadd.f32 %v956_v21, %v785_v40  ;;  %v787_v43 = vpop.f32.mrb[7].mxu1 }
 0x1cd   : > { %791 = vst.msk [vmem:[%s1238_s29 + $0x10] sm:$0xff] %vm367_vm2, %v767_v38  ;;  %v770_v44 = vadd.f32 %v956_v21, %v769_v41  ;;  %v771_v45 = vpop.f32.mrb[7].mxu0 }
 0x1ce   : > { %796 = vst.msk [vmem:[%s1238_s29 + $0x38] sm:$0xff] %vm367_vm2, %v786_v42 }
 0x1cf   : > { %792 = vst.msk [vmem:[%s1238_s29 + $0x18] sm:$0xff] %vm367_vm2, %v770_v44 }
 0x1d0 PF: > { %s13_s16 = sadd.s32 1, %s1166_s16   ;;  %s1579_s12 = smov %s1158_s14 }
 0x1d1   : > { %p10_p8 = scmp.ge.s32.totalorder %s13_s16, 10   ;;  %s1580_s13 = smov %s1162_s15 }
 0x1d2   : > { %s1581_s14 = smov %s1584_s17  ;;  %s1582_s15 = smov %s1588_s18 }
 0x1d3   :  { %12 = sbr.rel (!%p10_p8) target bundleno = 3 (0x3), region = 70 }

</bundles_post_ra>
